<compile_context>
chip_gen: v7x
topology: tpu7x:2x2x1
jax: 0.10.0
libtpu: 0.0.40
codegen_flags: <defaults>
</compile_context>

<pallas_src>
import functools

import jax
import jax.numpy as jnp
from jax.experimental import pallas as pl
from jax.experimental.pallas import tpu as pltpu

BN_EPS = 1e-5
NUM_NODE = 120          # hard-coded in the PyTorch module (self.num_node = 120)
OUT_DIM_PER_NODE = 2
FEAT = 64               # graph feature channels
EMB_DIM = 8
# Literal reading of the reference forward with edge_importance_weighting=False
# (softmax(leaky_relu(1)) == 1, added to the normalized laplacian every layer).
EDGE_IMPORTANCE_ADD = 1.0


# ----------------------------------------------------------------------------
# Fused graph-stage Pallas kernel (per batch element):
#   conv1(+BN+ReLU) -> split conv2(+type-embedding, +BN+ReLU) -> 3 chained GCNs.
# Canonical activation layout: (V, T*C), columns t-major (col = t*C + c).
# Everything stays resident in VMEM; no transposes / concats / relayouts.
# ----------------------------------------------------------------------------
def _fused_graph_kernel(a_ref, x_ref, emb_ref, w1_ref, b1_ref,
                        w2a_ref, w2b_ref, b2_ref, wg_ref, bg_ref, o_ref):
    a = a_ref[0]                      # (V, V)
    x = x_ref[0]                      # (V, T*Cin)
    emb = emb_ref[0]                  # (V, EMB_DIM)

    # conv_stage1: 1x1 conv + folded BN + ReLU (block-diag weight keeps layout).
    h = jnp.dot(x, w1_ref[...], preferred_element_type=jnp.float32) + b1_ref[...]
    h = jnp.maximum(h, 0.0)                                       # (V, T*32)

    # conv_stage2: concat([h, type_embed]) @ W2 == h @ W2a_bd + emb @ W2b_tiled.
    h = (jnp.dot(h, w2a_ref[...], preferred_element_type=jnp.float32)
         + jnp.dot(emb, w2b_ref[...], preferred_element_type=jnp.float32)
         + b2_ref[...])
    h = jnp.maximum(h, 0.0)                                       # (V, T*64)

    # 3 chained Graph_Conv_Blocks:  y = ReLU( A @ (x @ W) + b + x )  per timestep.
    # In the (V, T*C) layout both matmuls are single lane-dense dots:
    #   channel mix: (120, 384) @ (384, 384)   (block-diag W, per-timestep mixing)
    #   node mix   : (120, 120) @ (120, 384)
    for l in range(3):
        hw = jnp.dot(h, wg_ref[l], preferred_element_type=jnp.float32)
        ah = jnp.dot(a, hw, preferred_element_type=jnp.float32)
        h = jnp.maximum(ah + bg_ref[l] + h, 0.0)

    o_ref[0] = h.astype(o_ref.dtype)                              # (V, T*64)


def fused_graph_stage(a_eff, x2, emb, w1_bd, b1_t, w2a_bd, w2b_t, b2_t,
                      wg_bd, bg_t):
    n, v, tcin = x2.shape
    tc = wg_bd.shape[-1]
    # TODO(synk): for large N, tile several batch elements per grid step to
    #             amortize the ~0.35us/step overhead (VMEM use is only ~2MB/elem).
    return pl.pallas_call(
        _fused_graph_kernel,
        out_shape=jax.ShapeDtypeStruct((n, v, tc), jnp.float32),
        grid_spec=pltpu.PrefetchScalarGridSpec(
            num_scalar_prefetch=0,
            grid=(n,),
            in_specs=[
                pl.BlockSpec((1, v, v), lambda i: (i, 0, 0)),            # A_eff
                pl.BlockSpec((1, v, tcin), lambda i: (i, 0, 0)),         # x packed
                pl.BlockSpec((1, v, emb.shape[-1]), lambda i: (i, 0, 0)),# type emb
                pl.BlockSpec(w1_bd.shape, lambda i: (0, 0)),
                pl.BlockSpec(b1_t.shape, lambda i: (0, 0)),
                pl.BlockSpec(w2a_bd.shape, lambda i: (0, 0)),
                pl.BlockSpec(w2b_t.shape, lambda i: (0, 0)),
                pl.BlockSpec(b2_t.shape, lambda i: (0, 0)),
                pl.BlockSpec(wg_bd.shape, lambda i: (0, 0, 0)),
                pl.BlockSpec(bg_t.shape, lambda i: (0, 0, 0)),
            ],
            out_specs=pl.BlockSpec((1, v, tc), lambda i: (i, 0, 0)),     # lane-dense
        ),
        compiler_params=pltpu.CompilerParams(
            dimension_semantics=("parallel",)),
    )(a_eff, x2, emb, w1_bd, b1_t, w2a_bd, w2b_t, b2_t, wg_bd, bg_t)


# ----------------------------------------------------------------------------
# Plain-JAX glue: laplacian, embedding gather, and the hidden-size-2 GRU
# Seq2Seq heads (lane width 2 -> far below any MXU/VPU break-even, kept in XLA
# but batched across the 3 heads and scanned).
# ----------------------------------------------------------------------------
def calculate_laplacian_with_self_loop(a):
    # a: (N, V, V)
    v = a.shape[1]
    a = a + jnp.eye(v, dtype=a.dtype)
    row_sum = a.sum(-1)
    d_inv_sqrt = row_sum ** -0.5
    d_inv_sqrt = jnp.where(jnp.isinf(d_inv_sqrt), 0.0, d_inv_sqrt)
    d_mat = jax.vmap(jnp.diag)(d_inv_sqrt)
    return d_mat @ a @ d_mat


def gru_cell(x, h, w_ih, w_hh, b_ih, b_hh):
    gx = x @ w_ih.T + b_ih
    gh = h @ w_hh.T + b_hh
    xr, xz, xn = jnp.split(gx, 3, axis=-1)
    hr, hz, hn = jnp.split(gh, 3, axis=-1)
    r = jax.nn.sigmoid(xr + hr)
    z = jax.nn.sigmoid(xz + hz)
    cand = jnp.tanh(xn + r * hn)
    return (1.0 - z) * cand + z * h


def gru_layer_scan(x_seq, layer_params):
    """Full-sequence GRU layer; input projection hoisted out of the scan."""
    w_ih, w_hh, b_ih, b_hh = layer_params
    gx_seq = jnp.einsum('btf,gf->btg', x_seq, w_ih) + b_ih            # (B, T, 3H)
    h0 = jnp.zeros((x_seq.shape[0], w_hh.shape[1]), jnp.float32)

    def step(h, gx_t):
        gh = h @ w_hh.T + b_hh
        xr, xz, xn = jnp.split(gx_t, 3, axis=-1)
        hr, hz, hn = jnp.split(gh, 3, axis=-1)
        r = jax.nn.sigmoid(xr + hr)
        z = jax.nn.sigmoid(xz + hz)
        cand = jnp.tanh(xn + r * hn)
        h_new = (1.0 - z) * cand + z * h
        return h_new, h_new

    h_last, ys = jax.lax.scan(step, h0, jnp.swapaxes(gx_seq, 0, 1))
    return jnp.swapaxes(ys, 0, 1), h_last


def seq2seq_forward(p, in_data, last_location, pred_length):
    # encoder: 2-layer GRU (eval -> no dropout)
    x = in_data
    hidden = []
    for layer in p["enc"]:
        x, h_last = gru_layer_scan(x, layer)
        hidden.append(h_last)
    hidden = tuple(hidden)

    dec_params = p["dec"]
    lin_w, lin_b = p["lin_w"], p["lin_b"]
    dec_in0 = last_location[:, 0, :]

    # decoder: feed last location, residual outputs, no teacher forcing.
    # TODO(synk): the whole decode loop (tiny hidden-2 GRUs) could be fused into
    #             a small Pallas kernel over the N*V rows; left in XLA here.
    def step(carry, _):
        hid, dec_in = carry
        inp = dec_in
        new_hid = []
        for l in range(len(dec_params)):
            h_new = gru_cell(inp, hid[l], *dec_params[l])
            new_hid.append(h_new)
            inp = h_new
        out = inp @ lin_w.T + lin_b + dec_in
        return (tuple(new_hid), out), out

    _, outs = jax.lax.scan(step, (hidden, dec_in0), None, length=pred_length)
    return jnp.swapaxes(outs, 0, 1)                     # (NV, pred_length, 2)


# ----------------------------------------------------------------------------
# Full forward pass
# ----------------------------------------------------------------------------
def _fold_bn(w, b, bn):
    """Fold eval-mode BatchNorm2d into a pointwise conv (w: (Cin, Cout))."""
    scale = bn["gamma"] * jax.lax.rsqrt(bn["var"] + BN_EPS)
    return w * scale[None, :], (b - bn["mean"]) * scale + bn["beta"]


def forward(params, pra_x, pra_A, agent_type_ids, pred_length):
    n, c_in, t, v = pra_x.shape
    assert v == NUM_NODE, "num_node is hard-coded to 120 in the PyTorch module"

    # fold eval-mode BatchNorm (explicit gamma/beta/mean/var) into the 1x1 convs
    w1, b1 = _fold_bn(params["conv1_w"], params["conv1_b"], params["bn1"])
    w2, b2 = _fold_bn(params["conv2_w"], params["conv2_b"], params["bn2"])
    w2a, w2b = w2[:32], w2[32:]          # channel-concat with embedding -> split

    # block-diag / lane-tiled weights for the single (V, T*C) kernel layout
    eye_t = jnp.eye(t, dtype=jnp.float32)
    w1_bd = jnp.kron(eye_t, w1)                                   # (T*Cin, T*32)
    w2a_bd = jnp.kron(eye_t, w2a)                                 # (T*32,  T*64)
    w2b_t = jnp.tile(w2b, (1, t))                                 # (EMB,   T*64)
    b1_t = jnp.tile(b1.reshape(1, -1), (1, t))                    # (1, T*32)
    b2_t = jnp.tile(b2.reshape(1, -1), (1, t))                    # (1, T*64)
    wg_bd = jnp.stack([jnp.kron(eye_t, w) for (w, _) in params["gcn"]])
    bg_t = jnp.stack([jnp.tile(b.reshape(1, -1), (1, t))
                      for (_, b) in params["gcn"]])               # (3, 1, T*64)

    # pack the input to (N, V, T*Cin): row = node, cols t-major then channel
    x2 = jnp.transpose(pra_x, (0, 3, 2, 1)).reshape(n, v, t * c_in)

    # type embedding (gather stays in XLA)
    ids = jnp.clip(agent_type_ids[:, 0, 0, :] - 1, 0, 4).astype(jnp.int32)
    emb = params["embed"][ids]                                    # (N, V, 8)

    # adjacency: normalized laplacian (+ scalar "edge importance" per the spec)
    a_eff = calculate_laplacian_with_self_loop(pra_A) + EDGE_IMPORTANCE_ADD

    # one fused Pallas kernel for the entire conv + GCN stage
    graph_out = fused_graph_stage(a_eff, x2, emb, w1_bd, b1_t, w2a_bd, w2b_t,
                                  b2_t, wg_bd, bg_t)              # (N, V, T*64)

    # reshape_for_lstm: output layout is already (node, time, channel) -> free reshape
    graph_feat = graph_out.reshape(n * v, t, FEAT)
    last_loc = jnp.transpose(pra_x[:, :2, -1, :], (0, 2, 1)).reshape(n * v, 1, 2)

    # three Seq2Seq heads batched via stacked params + vmap
    s2s_stacked = jax.tree_util.tree_map(lambda *xs: jnp.stack(xs), *params["s2s"])
    preds = jax.vmap(
        lambda p: seq2seq_forward(p, graph_feat, last_loc, pred_length))(s2s_stacked)
    pred = preds.mean(axis=0)                                     # (N*V, PL, 2)
    pred = pred.reshape(n, NUM_NODE, pred_length, OUT_DIM_PER_NODE)
    return jnp.transpose(pred, (0, 3, 2, 1))                      # (N, 2, PL, V)


# ----------------------------------------------------------------------------
# Deterministic parameter init
# ----------------------------------------------------------------------------
def init_params(key, in_channels):
    keys = iter(jax.random.split(key, 96))

    def nrm(shape, scale=0.1):
        return scale * jax.random.normal(next(keys), shape, dtype=jnp.float32)

    def bn(ch):
        return {"gamma": jnp.ones((ch,), jnp.float32),
                "beta": jnp.zeros((ch,), jnp.float32),
                "mean": jnp.zeros((ch,), jnp.float32),
                "var": jnp.ones((ch,), jnp.float32)}

    def gru_params(in_size, hid):
        return (nrm((3 * hid, in_size)), nrm((3 * hid, hid)),
                nrm((3 * hid,), 0.01), nrm((3 * hid,), 0.01))

    def seq2seq_params():
        return {
            "enc": [gru_params(FEAT, 2), gru_params(2, 2)],
            "dec": [gru_params(2, 2), gru_params(2, 2)],
            "lin_w": nrm((2, 2)),
            "lin_b": nrm((2,), 0.01),
        }

    return {
        "conv1_w": nrm((in_channels, 32)),
        "conv1_b": nrm((32,), 0.01),
        "bn1": bn(32),
        "embed": nrm((5, EMB_DIM)),
        "conv2_w": nrm((32 + EMB_DIM, FEAT)),
        "conv2_b": nrm((FEAT,), 0.01),
        "bn2": bn(FEAT),
        "gcn": [(nrm((FEAT, FEAT), 0.05), nrm((FEAT,), 0.01)) for _ in range(3)],
        "s2s": [seq2seq_params() for _ in range(3)],
    }


if __name__ == "__main__":
    key = jax.random.PRNGKey(0)
    kx, ka, kt, kp = jax.random.split(key, 4)

    N, C_IN, T, V = 2, 4, 6, NUM_NODE
    PRED_LENGTH = 5

    x = jax.random.normal(kx, (N, C_IN, T, V), dtype=jnp.float32)
    adj = (jax.random.uniform(ka, (N, V, V)) > 0.7).astype(jnp.float32)
    type_ids = jax.random.randint(kt, (N, 1, 1, V), 1, 6, dtype=jnp.int32)
    params = init_params(kp, C_IN)

    fwd = jax.jit(functools.partial(forward, pred_length=PRED_LENGTH))
    out = fwd(params, x, adj, type_ids)
    out = jax.block_until_ready(out)

    assert out.shape == (N, OUT_DIM_PER_NODE, PRED_LENGTH, V), out.shape
    assert bool(jnp.all(jnp.isfinite(out)))
    print("KERNEL_OK")
</pallas_src>

<mosaic_0001>
module attributes {stable_mosaic.version = 11 : i64} {
  func.func @_fused_graph_kernel(%arg0: i32, %arg1: memref<1x120x120xf32, #tpu.memory_space<vmem>>, %arg2: memref<1x120x24xf32, #tpu.memory_space<vmem>>, %arg3: memref<1x120x8xf32, #tpu.memory_space<vmem>>, %arg4: memref<24x192xf32, #tpu.memory_space<vmem>>, %arg5: memref<1x192xf32, #tpu.memory_space<vmem>>, %arg6: memref<192x384xf32, #tpu.memory_space<vmem>>, %arg7: memref<8x384xf32, #tpu.memory_space<vmem>>, %arg8: memref<1x384xf32, #tpu.memory_space<vmem>>, %arg9: memref<3x384x384xf32, #tpu.memory_space<vmem>>, %arg10: memref<3x1x384xf32, #tpu.memory_space<vmem>>, %arg11: memref<1x120x384xf32, #tpu.memory_space<vmem>>) attributes {dimension_semantics = [#tpu.dimension_semantics<parallel>], iteration_bounds = array<i64: 2>, scalar_prefetch = 0 : i64, scratch_operands = 0 : i64, tpu.core_type = #tpu.core_type<tc>, window_params = [{transform_indices = @transform_0, window_bounds = array<i64: 1, 120, 120>}, {transform_indices = @transform_1, window_bounds = array<i64: 1, 120, 24>}, {transform_indices = @transform_2, window_bounds = array<i64: 1, 120, 8>}, {pipeline_mode = #tpu.pipeline_mode<synchronous>, transform_indices = @transform_3, window_bounds = array<i64: 24, 192>}, {pipeline_mode = #tpu.pipeline_mode<synchronous>, transform_indices = @transform_4, window_bounds = array<i64: 1, 192>}, {pipeline_mode = #tpu.pipeline_mode<synchronous>, transform_indices = @transform_5, window_bounds = array<i64: 192, 384>}, {pipeline_mode = #tpu.pipeline_mode<synchronous>, transform_indices = @transform_6, window_bounds = array<i64: 8, 384>}, {pipeline_mode = #tpu.pipeline_mode<synchronous>, transform_indices = @transform_7, window_bounds = array<i64: 1, 384>}, {pipeline_mode = #tpu.pipeline_mode<synchronous>, transform_indices = @transform_8, window_bounds = array<i64: 3, 384, 384>}, {pipeline_mode = #tpu.pipeline_mode<synchronous>, transform_indices = @transform_9, window_bounds = array<i64: 3, 1, 384>}, {transform_indices = @transform_10, window_bounds = array<i64: 1, 120, 384>}]} {
    %c0 = arith.constant 0 : index
    %c0_0 = arith.constant 0 : index
    %c0_1 = arith.constant 0 : index
    %0 = vector.load %arg1[%c0, %c0_0, %c0_1] : memref<1x120x120xf32, #tpu.memory_space<vmem>>, vector<1x120x120xf32>
    %1 = vector.shape_cast %0 : vector<1x120x120xf32> to vector<120x120xf32>
    %c0_2 = arith.constant 0 : index
    %c0_3 = arith.constant 0 : index
    %c0_4 = arith.constant 0 : index
    %2 = vector.load %arg2[%c0_2, %c0_3, %c0_4] : memref<1x120x24xf32, #tpu.memory_space<vmem>>, vector<1x120x24xf32>
    %3 = vector.shape_cast %2 : vector<1x120x24xf32> to vector<120x24xf32>
    %c0_5 = arith.constant 0 : index
    %c0_6 = arith.constant 0 : index
    %c0_7 = arith.constant 0 : index
    %4 = vector.load %arg3[%c0_5, %c0_6, %c0_7] : memref<1x120x8xf32, #tpu.memory_space<vmem>>, vector<1x120x8xf32>
    %5 = vector.shape_cast %4 : vector<1x120x8xf32> to vector<120x8xf32>
    %c0_8 = arith.constant 0 : index
    %c0_9 = arith.constant 0 : index
    %6 = vector.load %arg4[%c0_8, %c0_9] : memref<24x192xf32, #tpu.memory_space<vmem>>, vector<24x192xf32>
    %cst = arith.constant dense<0.000000e+00> : vector<120x192xf32>
    %7 = tpu.matmul %3, %6, %cst {dimension_numbers = #tpu.dot_dimension_numbers<[1], [0], [0], [1], [0, 0, 1, 1], [], []>} : vector<120x24xf32>, vector<24x192xf32>, vector<120x192xf32> -> vector<120x192xf32>
    %c0_10 = arith.constant 0 : index
    %c0_11 = arith.constant 0 : index
    %8 = vector.load %arg5[%c0_10, %c0_11] : memref<1x192xf32, #tpu.memory_space<vmem>>, vector<1x192xf32>
    %9 = vector.broadcast %8 : vector<1x192xf32> to vector<120x192xf32>
    %10 = arith.addf %7, %9 : vector<120x192xf32>
    %cst_12 = arith.constant 0.000000e+00 : f32
    %11 = vector.broadcast %cst_12 : f32 to vector<120x192xf32>
    %12 = arith.maximumf %10, %11 : vector<120x192xf32>
    %c0_13 = arith.constant 0 : index
    %c0_14 = arith.constant 0 : index
    %13 = vector.load %arg6[%c0_13, %c0_14] : memref<192x384xf32, #tpu.memory_space<vmem>>, vector<192x384xf32>
    %cst_15 = arith.constant dense<0.000000e+00> : vector<120x384xf32>
    %14 = tpu.matmul %12, %13, %cst_15 {dimension_numbers = #tpu.dot_dimension_numbers<[1], [0], [0], [1], [0, 0, 1, 1], [], []>} : vector<120x192xf32>, vector<192x384xf32>, vector<120x384xf32> -> vector<120x384xf32>
    %c0_16 = arith.constant 0 : index
    %c0_17 = arith.constant 0 : index
    %15 = vector.load %arg7[%c0_16, %c0_17] : memref<8x384xf32, #tpu.memory_space<vmem>>, vector<8x384xf32>
    %cst_18 = arith.constant dense<0.000000e+00> : vector<120x384xf32>
    %16 = tpu.matmul %5, %15, %cst_18 {dimension_numbers = #tpu.dot_dimension_numbers<[1], [0], [0], [1], [0, 0, 1, 1], [], []>} : vector<120x8xf32>, vector<8x384xf32>, vector<120x384xf32> -> vector<120x384xf32>
    %17 = arith.addf %14, %16 : vector<120x384xf32>
    %c0_19 = arith.constant 0 : index
    %c0_20 = arith.constant 0 : index
    %18 = vector.load %arg8[%c0_19, %c0_20] : memref<1x384xf32, #tpu.memory_space<vmem>>, vector<1x384xf32>
    %19 = vector.broadcast %18 : vector<1x384xf32> to vector<120x384xf32>
    %20 = arith.addf %17, %19 : vector<120x384xf32>
    %cst_21 = arith.constant 0.000000e+00 : f32
    %21 = vector.broadcast %cst_21 : f32 to vector<120x384xf32>
    %22 = arith.maximumf %20, %21 : vector<120x384xf32>
    %c0_22 = arith.constant 0 : index
    %c0_23 = arith.constant 0 : index
    %c0_24 = arith.constant 0 : index
    %23 = vector.load %arg9[%c0_22, %c0_23, %c0_24] : memref<3x384x384xf32, #tpu.memory_space<vmem>>, vector<1x384x384xf32>
    %24 = vector.shape_cast %23 : vector<1x384x384xf32> to vector<384x384xf32>
    %cst_25 = arith.constant dense<0.000000e+00> : vector<120x384xf32>
    %25 = tpu.matmul %22, %24, %cst_25 {dimension_numbers = #tpu.dot_dimension_numbers<[1], [0], [0], [1], [0, 0, 1, 1], [], []>} : vector<120x384xf32>, vector<384x384xf32>, vector<120x384xf32> -> vector<120x384xf32>
    %cst_26 = arith.constant dense<0.000000e+00> : vector<120x384xf32>
    %26 = tpu.matmul %1, %25, %cst_26 {dimension_numbers = #tpu.dot_dimension_numbers<[1], [0], [0], [1], [0, 0, 1, 1], [], []>} : vector<120x120xf32>, vector<120x384xf32>, vector<120x384xf32> -> vector<120x384xf32>
    %c0_27 = arith.constant 0 : index
    %c0_28 = arith.constant 0 : index
    %c0_29 = arith.constant 0 : index
    %27 = vector.load %arg10[%c0_27, %c0_28, %c0_29] : memref<3x1x384xf32, #tpu.memory_space<vmem>>, vector<1x1x384xf32>
    %28 = vector.shape_cast %27 : vector<1x1x384xf32> to vector<1x384xf32>
    %29 = vector.broadcast %28 : vector<1x384xf32> to vector<120x384xf32>
    %30 = arith.addf %26, %29 : vector<120x384xf32>
    %31 = arith.addf %30, %22 : vector<120x384xf32>
    %cst_30 = arith.constant 0.000000e+00 : f32
    %32 = vector.broadcast %cst_30 : f32 to vector<120x384xf32>
    %33 = arith.maximumf %31, %32 : vector<120x384xf32>
    %c1 = arith.constant 1 : index
    %c0_31 = arith.constant 0 : index
    %c0_32 = arith.constant 0 : index
    %34 = vector.load %arg9[%c1, %c0_31, %c0_32] : memref<3x384x384xf32, #tpu.memory_space<vmem>>, vector<1x384x384xf32>
    %35 = vector.shape_cast %34 : vector<1x384x384xf32> to vector<384x384xf32>
    %cst_33 = arith.constant dense<0.000000e+00> : vector<120x384xf32>
    %36 = tpu.matmul %33, %35, %cst_33 {dimension_numbers = #tpu.dot_dimension_numbers<[1], [0], [0], [1], [0, 0, 1, 1], [], []>} : vector<120x384xf32>, vector<384x384xf32>, vector<120x384xf32> -> vector<120x384xf32>
    %cst_34 = arith.constant dense<0.000000e+00> : vector<120x384xf32>
    %37 = tpu.matmul %1, %36, %cst_34 {dimension_numbers = #tpu.dot_dimension_numbers<[1], [0], [0], [1], [0, 0, 1, 1], [], []>} : vector<120x120xf32>, vector<120x384xf32>, vector<120x384xf32> -> vector<120x384xf32>
    %c1_35 = arith.constant 1 : index
    %c0_36 = arith.constant 0 : index
    %c0_37 = arith.constant 0 : index
    %38 = vector.load %arg10[%c1_35, %c0_36, %c0_37] : memref<3x1x384xf32, #tpu.memory_space<vmem>>, vector<1x1x384xf32>
    %39 = vector.shape_cast %38 : vector<1x1x384xf32> to vector<1x384xf32>
    %40 = vector.broadcast %39 : vector<1x384xf32> to vector<120x384xf32>
    %41 = arith.addf %37, %40 : vector<120x384xf32>
    %42 = arith.addf %41, %33 : vector<120x384xf32>
    %cst_38 = arith.constant 0.000000e+00 : f32
    %43 = vector.broadcast %cst_38 : f32 to vector<120x384xf32>
    %44 = arith.maximumf %42, %43 : vector<120x384xf32>
    %c2 = arith.constant 2 : index
    %c0_39 = arith.constant 0 : index
    %c0_40 = arith.constant 0 : index
    %45 = vector.load %arg9[%c2, %c0_39, %c0_40] : memref<3x384x384xf32, #tpu.memory_space<vmem>>, vector<1x384x384xf32>
    %46 = vector.shape_cast %45 : vector<1x384x384xf32> to vector<384x384xf32>
    %cst_41 = arith.constant dense<0.000000e+00> : vector<120x384xf32>
    %47 = tpu.matmul %44, %46, %cst_41 {dimension_numbers = #tpu.dot_dimension_numbers<[1], [0], [0], [1], [0, 0, 1, 1], [], []>} : vector<120x384xf32>, vector<384x384xf32>, vector<120x384xf32> -> vector<120x384xf32>
    %cst_42 = arith.constant dense<0.000000e+00> : vector<120x384xf32>
    %48 = tpu.matmul %1, %47, %cst_42 {dimension_numbers = #tpu.dot_dimension_numbers<[1], [0], [0], [1], [0, 0, 1, 1], [], []>} : vector<120x120xf32>, vector<120x384xf32>, vector<120x384xf32> -> vector<120x384xf32>
    %c2_43 = arith.constant 2 : index
    %c0_44 = arith.constant 0 : index
    %c0_45 = arith.constant 0 : index
    %49 = vector.load %arg10[%c2_43, %c0_44, %c0_45] : memref<3x1x384xf32, #tpu.memory_space<vmem>>, vector<1x1x384xf32>
    %50 = vector.shape_cast %49 : vector<1x1x384xf32> to vector<1x384xf32>
    %51 = vector.broadcast %50 : vector<1x384xf32> to vector<120x384xf32>
    %52 = arith.addf %48, %51 : vector<120x384xf32>
    %53 = arith.addf %52, %44 : vector<120x384xf32>
    %cst_46 = arith.constant 0.000000e+00 : f32
    %54 = vector.broadcast %cst_46 : f32 to vector<120x384xf32>
    %55 = arith.maximumf %53, %54 : vector<120x384xf32>
    %c0_47 = arith.constant 0 : index
    %c0_48 = arith.constant 0 : index
    %c0_49 = arith.constant 0 : index
    %56 = vector.load %arg11[%c0_47, %c0_48, %c0_49] : memref<1x120x384xf32, #tpu.memory_space<vmem>>, vector<1x120x384xf32>
    %57 = vector.shape_cast %56 : vector<1x120x384xf32> to vector<120x384xf32>
    %58 = vector.shape_cast %55 : vector<120x384xf32> to vector<1x120x384xf32>
    tpu.vector_store %arg11[%c0_47, %c0_48, %c0_49], %58 {strides = array<i32>} : memref<1x120x384xf32, #tpu.memory_space<vmem>>, vector<1x120x384xf32>,
    return
  }
  func.func @transform_0(%arg0: i32) -> (i32, i32, i32) {
    %c0_i32 = arith.constant 0 : i32
    %c0_i32_0 = arith.constant 0 : i32
    %c0_i32_1 = arith.constant 0 : i32
    return %arg0, %c0_i32, %c0_i32_0 : i32, i32, i32
  }
  func.func @transform_1(%arg0: i32) -> (i32, i32, i32) {
    %c0_i32 = arith.constant 0 : i32
    %c0_i32_0 = arith.constant 0 : i32
    %c0_i32_1 = arith.constant 0 : i32
    return %arg0, %c0_i32, %c0_i32_0 : i32, i32, i32
  }
  func.func @transform_2(%arg0: i32) -> (i32, i32, i32) {
    %c0_i32 = arith.constant 0 : i32
    %c0_i32_0 = arith.constant 0 : i32
    %c0_i32_1 = arith.constant 0 : i32
    return %arg0, %c0_i32, %c0_i32_0 : i32, i32, i32
  }
  func.func @transform_3(%arg0: i32) -> (i32, i32) {
    %c0_i32 = arith.constant 0 : i32
    %c0_i32_0 = arith.constant 0 : i32
    %c0_i32_1 = arith.constant 0 : i32
    return %c0_i32, %c0_i32_0 : i32, i32
  }
  func.func @transform_4(%arg0: i32) -> (i32, i32) {
    %c0_i32 = arith.constant 0 : i32
    %c0_i32_0 = arith.constant 0 : i32
    %c0_i32_1 = arith.constant 0 : i32
    return %c0_i32, %c0_i32_0 : i32, i32
  }
  func.func @transform_5(%arg0: i32) -> (i32, i32) {
    %c0_i32 = arith.constant 0 : i32
    %c0_i32_0 = arith.constant 0 : i32
    %c0_i32_1 = arith.constant 0 : i32
    return %c0_i32, %c0_i32_0 : i32, i32
  }
  func.func @transform_6(%arg0: i32) -> (i32, i32) {
    %c0_i32 = arith.constant 0 : i32
    %c0_i32_0 = arith.constant 0 : i32
    %c0_i32_1 = arith.constant 0 : i32
    return %c0_i32, %c0_i32_0 : i32, i32
  }
  func.func @transform_7(%arg0: i32) -> (i32, i32) {
    %c0_i32 = arith.constant 0 : i32
    %c0_i32_0 = arith.constant 0 : i32
    %c0_i32_1 = arith.constant 0 : i32
    return %c0_i32, %c0_i32_0 : i32, i32
  }
  func.func @transform_8(%arg0: i32) -> (i32, i32, i32) {
    %c0_i32 = arith.constant 0 : i32
    %c0_i32_0 = arith.constant 0 : i32
    %c0_i32_1 = arith.constant 0 : i32
    %c0_i32_2 = arith.constant 0 : i32
    return %c0_i32, %c0_i32_0, %c0_i32_1 : i32, i32, i32
  }
  func.func @transform_9(%arg0: i32) -> (i32, i32, i32) {
    %c0_i32 = arith.constant 0 : i32
    %c0_i32_0 = arith.constant 0 : i32
    %c0_i32_1 = arith.constant 0 : i32
    %c0_i32_2 = arith.constant 0 : i32
    return %c0_i32, %c0_i32_0, %c0_i32_1 : i32, i32, i32
  }
  func.func @transform_10(%arg0: i32) -> (i32, i32, i32) {
    %c0_i32 = arith.constant 0 : i32
    %c0_i32_0 = arith.constant 0 : i32
    %c0_i32_1 = arith.constant 0 : i32
    return %arg0, %c0_i32, %c0_i32_0 : i32, i32, i32
  }
}

</mosaic_0001>

<bundles_post_ra>
// kernel: tile.29
= control target key start
LH: loop header
LB: loop body
LE: loop exit
PB: predicated region body
PF: predicated region fallthrough
CT: control target
= control target key end

     0   :  { %vm44_vm0 = vcmask 1047556   ;;  %vm3_vm1 = vcmask 523264   ;;  %s95_s14 = smov 64   ;;  %vm48_vm2 = vcmask 1048064   ;;  %s189_s0 = inlined_call_operand.vmem [shape: f32[8,6,64], index: 0, kind: input, shape index: {}]   ;;  %s190_s1 = inlined_call_operand.vmem [shape: f32[8,384], index: 1, kind: output, shape index: {}]  }
   0x1   :  { %v86_v0 = vld [vmem:[%s189_s0 + $0x1] ss:$8 sm:$0xf]   ;;  %v91_v3 = vld [vmem:[%s189_s0 + $0x5] ss:$8 sm:$0xf]  }
   0x2   :  { %v87_v1 = vld [vmem:[%s189_s0 + $0x1] ss:$8 sm:$0xf0]   ;;  %v92_v4 = vld [vmem:[%s189_s0 + $0x5] ss:$8 sm:$0xf0]  }
   0x3   :  { %v45_v2 = vsel %vm44_vm0, %v87_v1, %v86_v0  ;;  %v66_v5 = vsel %vm44_vm0, %v92_v4, %v91_v3  ;;  %v88_v6 = vld [vmem:[%s189_s0 + $0x3] ss:$8 sm:$0xf]   ;;  %v2_v9 = vld [vmem:[%s189_s0] ss:$2 sm:$0x7]  }
   0x4   :  { %46 = vrot.lane.b32.xlu0 %v45_v2, %s95_s14  ;;  %v89_v7 = vld [vmem:[%s189_s0 + $0x3] ss:$8 sm:$0xf0]   ;;  %67 = vrot.lane.b32.xlu1 %v66_v5, %s95_s14  ;;  %v72_v10 = vld [vmem:[%s189_s0 + $0x8] ss:$2 sm:$0x7]  }
   0x5   :  { %v55_v8 = vsel %vm44_vm0, %v89_v7, %v88_v6  ;;  %4 = vst.msk [vmem:[%s190_s1] ss:$8 sm:$0x7] %vm3_vm1, %v2_v9   ;;  %73 = vst.msk [vmem:[%s190_s1 + $0x1] ss:$8 sm:$0x7] %vm3_vm1, %v72_v10  }
   0x6   :  { %v74_v11 = vld [vmem:[%s189_s0 + $0x10] ss:$2 sm:$0x7]   ;;  %v76_v12 = vld [vmem:[%s189_s0 + $0x18] ss:$2 sm:$0x7]  }
   0x7   :  { %75 = vst.msk [vmem:[%s190_s1 + $0x2] ss:$8 sm:$0x7] %vm3_vm1, %v74_v11   ;;  %77 = vst.msk [vmem:[%s190_s1 + $0x3] ss:$8 sm:$0x7] %vm3_vm1, %v76_v12  }
   0x8   :  { %v78_v13 = vld [vmem:[%s189_s0 + $0x20] ss:$2 sm:$0x7]   ;;  %v80_v14 = vld [vmem:[%s189_s0 + $0x28] ss:$2 sm:$0x7]   ;;  %56 = vrot.lane.b32.xlu0 %v55_v8, %s95_s14 }
   0x9   :  { %79 = vst.msk [vmem:[%s190_s1 + $0x4] ss:$8 sm:$0x7] %vm3_vm1, %v78_v13   ;;  %81 = vst.msk [vmem:[%s190_s1 + $0x5] ss:$8 sm:$0x7] %vm3_vm1, %v80_v14  }
   0xa   :  { %v82_v15 = vld [vmem:[%s189_s0 + $0x30] ss:$2 sm:$0x7]   ;;  %v84_v16 = vld [vmem:[%s189_s0 + $0x38] ss:$2 sm:$0x7]  }
   0xb   :  { %83 = vst.msk [vmem:[%s190_s1 + $0x6] ss:$8 sm:$0x7] %vm3_vm1, %v82_v15   ;;  %85 = vst.msk [vmem:[%s190_s1 + $0x7] ss:$8 sm:$0x7] %vm3_vm1, %v84_v16  }
  0x76   :  { %v47_v17 = vpop.permute.xlu0 %46   ;;  %v68_v18 = vpop.permute.xlu1 %67  }
  0x77   :  { %49 = vst.msk [vmem:[%s190_s1] sm:$0xff] %vm48_vm2, %v47_v17   ;;  %93 = vst.msk [vmem:[%s190_s1 + $0x10] sm:$0xff] %vm48_vm2, %v68_v18  }
  0x7a   :  { %v57_v19 = vpop.permute.xlu0 %56  }
  0x7b   :  { %90 = vst.msk [vmem:[%s190_s1 + $0x8] sm:$0xff] %vm48_vm2, %v57_v19  }

// kernel: custom-call.5
= control target key start
LH: loop header
LB: loop body
LE: loop exit
PB: predicated region body
PF: predicated region fallthrough
CT: control target
= control target key end

     0   :  { %s6_s0 = inlined_call_operand.vmem [shape: bf16[6,3,240,2], index: 0, kind: output, shape index: {}]  }

// kernel: custom-call
= control target key start
LH: loop header
LB: loop body
LE: loop exit
PB: predicated region body
PF: predicated region fallthrough
CT: control target
= control target key end

     0   :  { %s6_s0 = inlined_call_operand.vmem [shape: f32[3,240,2], index: 0, kind: output, shape index: {}]  }

// kernel: custom-call.4
= control target key start
LH: loop header
LB: loop body
LE: loop exit
PB: predicated region body
PF: predicated region fallthrough
CT: control target
= control target key end

     0   :  { %s6_s0 = inlined_call_operand.vmem [shape: f32[5,3,240,2], index: 0, kind: output, shape index: {}]  }

// kernel: forward.1
= control target key start
LH: loop header
LB: loop body
LE: loop exit
PB: predicated region body
PF: predicated region fallthrough
CT: control target
= control target key end

     0   :  { %s7475_s13 = smov 0   ;;  %s11089_s0 = inlined_call_operand.vmem [shape: f32[2,120,120], index: 0, kind: input, shape index: {}]   ;;  %s11090_s1 = inlined_call_operand.vmem [shape: f32[2,120,24], index: 1, kind: input, shape index: {}]   ;;  %s11091_s2 = inlined_call_operand.vmem [shape: f32[2,120,8], index: 2, kind: input, shape index: {}]   ;;  %s11092_s3 = inlined_call_operand.vmem [shape: f32[24,192], index: 3, kind: input, shape index: {}]   ;;  %s11093_s4 = inlined_call_operand.vmem [shape: f32[1,192], index: 4, kind: input, shape index: {}]   ;;  %s11094_s5 = inlined_call_operand.vmem [shape: f32[192,384], index: 5, kind: input, shape index: {}]   ;;  %s11095_s6 = inlined_call_operand.vmem [shape: f32[8,384], index: 6, kind: input, shape index: {}]   ;;  %s11096_s7 = inlined_call_operand.vmem [shape: f32[1,384], index: 7, kind: input, shape index: {}]   ;;  %s11097_s8 = inlined_call_operand.vmem [shape: f32[3,384,384], index: 8, kind: input, shape index: {}]   ;;  %s11098_s9 = inlined_call_operand.vmem [shape: f32[3,1,384], index: 9, kind: input, shape index: {}]   ;;  %s11099_s10 = inlined_call_operand.vmem [shape: f32[2,120,384], index: 10, kind: output, shape index: {}]  }
   0x1 LB: > { %s5140_s14 = sadd.s32 4294967295, %s7415_s13   ;;  %p5144_p0 = scmp.ge.s32.totalorder %s7415_s13, 1  ;;  %s7415_s13 = sphi %s7475_s13, %s20_s13  }
   0x2   : > { %p332_p1 = scmp.lt.s32.totalorder %s7415_s13, 3 }
   0x4   : > { %p333_p2 = pnand %p5144_p0, %p332_p1 }
   0x6   : > { %336 = sbr.rel (%p333_p2) target bundleno = 2192 (0x890), region = 60 }
   0xd   : > { %v446_v0 = vld [vmem:[%s11092_s3 + $0x8] sm:$0xff]  ;;  %v448_v1 = vld [vmem:[%s11092_s3 + $0x18] sm:$0xff]  ;;  %v445_v2 = vld [vmem:[%s11092_s3] sm:$0xff]  ;;  %p380_p3 = scmp.lt.s32.totalorder %s5140_s14, 1  ;;  %v11105_v5 = vmov 0.0   ;;  %vm463_vm0 = vcmask 195584  }
   0xe   : > { %v6539_v3 = vpack.c.bf16 %v448_v1, %v446_v0  ;;  %v447_v4 = vld [vmem:[%s11092_s3 + $0x10] sm:$0xff]  ;;  %573 = vmatprep.mubr.f32.mxu0 %v11105_v5  ;;  %879 = vmatprep.mubr.f32.mxu1 %v11105_v5  ;;  %v450_v7 = vld [vmem:[%s11092_s3 + $0x28] sm:$0xff]  ;;  %v766_v9 = vld [vmem:[%s11095_s6] sm:$0xff]  ;;  %v11100_v19 = vmov 0.0|0.0   ;;  %vm769_vm1 = vcmask 64512   ;;  %vm7419_vm2 = vmmov 0  }
   0xf   : > { %v6541_v6 = vpack.c.bf16 %v447_v4, %v445_v2  ;;  %s11282_s14 = smov (!%p380_p3, %s5140_s14), 1  ;;  %v767_v8 = vld [vmem:[%s11095_s6 + $0x8] sm:$0xff]  ;;  %v696_v10 = vld [vmem:[%s11094_s5 + $0x10] sm:$0xff]  ;;  %v449_v12 = vld [vmem:[%s11092_s3 + $0x20] sm:$0xff]  ;;  %vm1110_vm3 = vcmask 523264   ;;  %vm2309_vm4 = vcmask 982016  }
  0x10   : > { %6540 = vmatprep.subr.bf16.mxu0 %v6539_v3  ;;  %815 = vmatprep.subr.mxu1 %v767_v8  ;;  %s7509_s29 = smul.u32 120, %s11282_s14  ;;  %v699_v11 = vld [vmem:[%s11094_s5 + $0x28] sm:$0xff]  ;;  %v702_v15 = vld [vmem:[%s11094_s5 + $0x40] sm:$0xff]  ;;  %v705_v16 = vld [vmem:[%s11094_s5 + $0x58] sm:$0xff] }
  0x11   : > { %6542 = vmatpush1.bf16.msra.mxu0 %v6541_v6  ;;  %816 = vmatpush1.msra.mxu1 %v766_v9  ;;  %v6592_v13 = vpack.c.bf16 %v699_v11, %v696_v10  ;;  %v695_v17 = vld [vmem:[%s11094_s5 + $0x8] sm:$0xff]  ;;  %v698_v18 = vld [vmem:[%s11094_s5 + $0x20] sm:$0xff]  ;;  %v6595_v21 = vpack.c.bf16 %v705_v16, %v702_v15  ;;  %v768_v23 = vld [vmem:[%s11095_s6 + $0x10] sm:$0xff]  ;;  %s7367_s26 = smul.u32 360, %s11282_s14 }
  0x12   : > { %513 = vmatprep.subr.mxu0 %v450_v7  ;;  %6036 = vmatprep.subr.mxu1 %v11105_v5  ;;  %s7525_s20 = scalar_lea.vmem %s11090_s1, %s7509_s29  ;;  %s7539_s27 = scalar_lea.vmem %s11091_s2, %s7509_s29  ;;  %v6543_v24 = vpack.c.bf16 %v698_v18, %v695_v17  ;;  %v708_v29 = vld [vmem:[%s11094_s5 + $0x70] sm:$0xff]  ;;  %v711_v30 = vld [vmem:[%s11094_s5 + $0x88] sm:$0xff]  ;;  %v714_v32 = vld [vmem:[%s11094_s5 + $0xa0] sm:$0xff] }
  0x13   : > { %v415_v14 = vld [vmem:[%s7525_s20] sm:$0xff]  ;;  %v416_v20 = vld [vmem:[%s7525_s20 + $0x8] sm:$0xff]  ;;  %v417_v25 = vld [vmem:[%s7525_s20 + $0x10] sm:$0xff]  ;;  %v6598_v31 = vpack.c.bf16 %v711_v30, %v708_v29  ;;  %s8894_s23 = scalar_lea.vmem %s11089_s0, %s7509_s29  ;;  %s10953_s29 = scalar_lea.vmem %s11099_s10, %s7367_s26 }
  0x14   : > { %v7552_v22 = vld [vmem:[%s7539_s27] sm:$0xff]  ;;  %v7564_v26 = vld [vmem:[%s7539_s27 + $0x8] sm:$0xff]  ;;  %v418_v27 = vld [vmem:[%s7525_s20 + $0x18] sm:$0xff] }
  0x15   : > { %514 = vmatpush1.msra.mxu0 %v449_v12  ;;  %5164 = vmatmul.mubr.msk.f32.vlgmr.msra.gmra.mrb[0].mxu1 %vm769_vm1, %v7552_v22  ;;  %v7574_v28 = vld [vmem:[%s7539_s27 + $0x10] sm:$0xff]  ;;  %v717_v33 = vld [vmem:[%s11094_s5 + $0xb8] sm:$0xff]  ;;  %v419_v34 = vld [vmem:[%s7525_s20 + $0x20] sm:$0xff] }
  0x16   : > { %5149 = vmatmul.mubr.msk.f32.vlgmr.msra.gmra.mrb[0].mxu0 %vm463_vm0, %v415_v14  ;;  %6591 = vmatprep.subr.bf16.mxu0 %v11100_v19  ;;  %v7595_v35 = vld [vmem:[%s7539_s27 + $0x18] sm:$0xff]  ;;  %v6601_v36 = vpack.c.bf16 %v717_v33, %v714_v32  ;;  %v720_v37 = vld [vmem:[%s11094_s5 + $0xd0] sm:$0xff]  ;;  %v723_v38 = vld [vmem:[%s11094_s5 + $0xe8] sm:$0xff] }
  0x17   : > { %579 = vmatprep.mubr.f32.mxu0 %v11105_v5  ;;  %6593 = vmatpush1.bf16.msra.mxu0 %v6592_v13  ;;  %v420_v39 = vld [vmem:[%s7525_s20 + $0x28] sm:$0xff]  ;;  %v7611_v40 = vld [vmem:[%s7539_s27 + $0x20] sm:$0xff]  ;;  %v6604_v41 = vpack.c.bf16 %v723_v38, %v720_v37  ;;  %v729_v43 = vld [vmem:[%s11094_s5 + $0x118] sm:$0xff] }
  0x18   : > { %6594 = vmatprep.subr.bf16.mxu0 %v11100_v19  ;;  %885 = vmatprep.mubr.f32.mxu1 %v11105_v5  ;;  %v726_v42 = vld [vmem:[%s11094_s5 + $0x100] sm:$0xff]  ;;  %v421_v44 = vld [vmem:[%s7525_s20 + $0x30] sm:$0xff]  ;;  %v7627_v45 = vld [vmem:[%s7539_s27 + $0x28] sm:$0xff] }
  0x19   : > { %6037 = vmatpush3.msra.mxu1 %v768_v23  ;;  %v6607_v46 = vpack.c.bf16 %v729_v43, %v726_v42  ;;  %v732_v47 = vld [vmem:[%s11094_s5 + $0x130] sm:$0xff]  ;;  %v735_v48 = vld [vmem:[%s11094_s5 + $0x148] sm:$0xff]  ;;  %v422_v49 = vld [vmem:[%s7525_s20 + $0x38] sm:$0xff] }
  0x1a   : > { %5150 = vmatmul.mubr.msk.f32.gmra.mrb[2].mxu0 %vm463_vm0, %v416_v20  ;;  %6544 = vmatprep.subr.bf16.mxu1 %v6543_v24  ;;  %v7643_v50 = vld [vmem:[%s7539_s27 + $0x30] sm:$0xff]  ;;  %v6610_v51 = vpack.c.bf16 %v735_v48, %v732_v47  ;;  %v738_v52 = vld [vmem:[%s11094_s5 + $0x160] sm:$0xff]  ;;  %v741_v53 = vld [vmem:[%s11094_s5 + $0x178] sm:$0xff] }
  0x1b   : > { %585 = vmatprep.mubr.f32.mxu0 %v11105_v5  ;;  %6596 = vmatpush1.bf16.msra.mxu0 %v6595_v21  ;;  %v423_v54 = vld [vmem:[%s7525_s20 + $0x40] sm:$0xff]  ;;  %v7659_v55 = vld [vmem:[%s7539_s27 + $0x38] sm:$0xff]  ;;  %v6613_v56 = vpack.c.bf16 %v741_v53, %v738_v52  ;;  %v744_v57 = vld [vmem:[%s11094_s5 + $0x190] sm:$0xff] }
  0x1c   : > { %6597 = vmatprep.subr.bf16.mxu0 %v11100_v19  ;;  %5165 = vmatmul.mubr.msk.f32.gmra.mrb[2].mxu1 %vm769_vm1, %v7564_v26  ;;  %v747_v58 = vld [vmem:[%s11094_s5 + $0x1a8] sm:$0xff]  ;;  %v7675_v60 = vld [vmem:[%s7539_s27 + $0x40] sm:$0xff]  ;;  %v753_v63 = vld [vmem:[%s11094_s5 + $0x1d8] sm:$0xff] }
  0x1d   : > { %891 = vmatprep.mubr.f32.mxu1 %v11105_v5  ;;  %v424_v59 = vld [vmem:[%s7525_s20 + $0x48] sm:$0xff]  ;;  %v6616_v61 = vpack.c.bf16 %v747_v58, %v744_v57  ;;  %v750_v62 = vld [vmem:[%s11094_s5 + $0x1c0] sm:$0xff]  ;;  %v425_v0 = vld [vmem:[%s7525_s20 + $0x50] sm:$0xff] }
  0x1e   : > { %5151 = vmatmul.mubr.msk.f32.gmra.mrb[4].mxu0 %vm463_vm0, %v417_v25  ;;  %v7691_v1 = vld [vmem:[%s7539_s27 + $0x48] sm:$0xff]  ;;  %v6619_v2 = vpack.c.bf16 %v753_v63, %v750_v62  ;;  %v426_v3 = vld [vmem:[%s7525_s20 + $0x58] sm:$0xff]  ;;  %v7701_v4 = vld [vmem:[%s7539_s27 + $0x50] sm:$0xff] }
  0x1f   : > { %591 = vmatprep.mubr.f32.mxu0 %v11105_v5  ;;  %6599 = vmatpush1.bf16.msra.mxu0 %v6598_v31  ;;  %v427_v6 = vld [vmem:[%s7525_s20 + $0x60] sm:$0xff]  ;;  %v7711_v7 = vld [vmem:[%s7539_s27 + $0x58] sm:$0xff]  ;;  %v428_v8 = vld [vmem:[%s7525_s20 + $0x68] sm:$0xff] }
  0x20   : > { %5166 = vmatmul.mubr.msk.f32.gmra.mrb[4].mxu1 %vm769_vm1, %v7574_v28  ;;  %6600 = vmatprep.subr.bf16.mxu0 %v11100_v19  ;;  %v7720_v9 = vld [vmem:[%s7539_s27 + $0x60] sm:$0xff]  ;;  %v429_v10 = vld [vmem:[%s7525_s20 + $0x70] sm:$0xff]  ;;  %v7729_v11 = vld [vmem:[%s7539_s27 + $0x68] sm:$0xff] }
  0x21   : > { %897 = vmatprep.mubr.f32.mxu1 %v11105_v5  ;;  %v7736_v12 = vld [vmem:[%s7539_s27 + $0x70] sm:$0xff]  ;;  %v694_v13 = vld [vmem:[%s11094_s5] sm:$0xff]  ;;  %v697_v14 = vld [vmem:[%s11094_s5 + $0x18] sm:$0xff] }
  0x22   : > { %5152 = vmatmul.mubr.msk.f32.gmra.mrb[6].mxu0 %vm463_vm0, %v418_v27  ;;  %v701_v15 = vld [vmem:[%s11094_s5 + $0x38] sm:$0xff]  ;;  %v704_v16 = vld [vmem:[%s11094_s5 + $0x50] sm:$0xff]  ;;  %v6545_v17 = vpack.c.bf16 %v697_v14, %v694_v13  ;;  %v703_v21 = vld [vmem:[%s11094_s5 + $0x48] sm:$0xff] }
  0x23   : > { %597 = vmatprep.mubr.f32.mxu0 %v11105_v5  ;;  %6602 = vmatpush1.bf16.msra.mxu0 %v6601_v36  ;;  %v6547_v18 = vpack.c.bf16 %v704_v16, %v701_v15  ;;  %v700_v20 = vld [vmem:[%s11094_s5 + $0x30] sm:$0xff]  ;;  %v707_v23 = vld [vmem:[%s11094_s5 + $0x68] sm:$0xff]  ;;  %v710_v24 = vld [vmem:[%s11094_s5 + $0x80] sm:$0xff] }
  0x24   : > { %5167 = vmatmul.mubr.msk.f32.gmra.mrb[6].mxu1 %vm769_vm1, %v7595_v35  ;;  %6603 = vmatprep.subr.bf16.mxu0 %v11100_v19  ;;  %v6549_v25 = vpack.c.bf16 %v703_v21, %v700_v20  ;;  %v6551_v27 = vpack.c.bf16 %v710_v24, %v707_v23  ;;  %v706_v29 = vld [vmem:[%s11094_s5 + $0x60] sm:$0xff]  ;;  %v709_v30 = vld [vmem:[%s11094_s5 + $0x78] sm:$0xff]  ;;  %v715_v36 = vld [vmem:[%s11094_s5 + $0xa8] sm:$0xff] }
  0x25   : > { %903 = vmatprep.mubr.f32.mxu1 %v11105_v5  ;;  %v713_v31 = vld [vmem:[%s11094_s5 + $0x98] sm:$0xff]  ;;  %v6553_v32 = vpack.c.bf16 %v709_v30, %v706_v29  ;;  %v719_v37 = vld [vmem:[%s11094_s5 + $0xc8] sm:$0xff]  ;;  %v724_v47 = vld [vmem:[%s11094_s5 + $0xf0] sm:$0xff] }
  0x26   : > { %5153 = vmatmul.mubr.msk.f32.gmra.mrb[8].mxu0 %vm463_vm0, %v419_v34  ;;  %v712_v34 = vld [vmem:[%s11094_s5 + $0x90] sm:$0xff]  ;;  %v721_v42 = vld [vmem:[%s11094_s5 + $0xd8] sm:$0xff]  ;;  %v727_v48 = vld [vmem:[%s11094_s5 + $0x108] sm:$0xff] }
  0x27   : > { %603 = vmatprep.mubr.f32.mxu0 %v11105_v5  ;;  %6605 = vmatpush1.bf16.msra.mxu0 %v6604_v41  ;;  %v6557_v38 = vpack.c.bf16 %v715_v36, %v712_v34  ;;  %v718_v41 = vld [vmem:[%s11094_s5 + $0xc0] sm:$0xff]  ;;  %v725_v43 = vld [vmem:[%s11094_s5 + $0xf8] sm:$0xff]  ;;  %v6565_v52 = vpack.c.bf16 %v727_v48, %v724_v47  ;;  %v759_v53 = vld [vmem:[%s11094_s5 + $0x208] sm:$0xff] }
  0x28   : > { %5168 = vmatmul.mubr.msk.f32.gmra.mrb[8].mxu1 %vm769_vm1, %v7611_v40  ;;  %6606 = vmatprep.subr.bf16.mxu0 %v11100_v19  ;;  %v737_v58 = vld [vmem:[%s11094_s5 + $0x158] sm:$0xff]  ;;  %v742_v14 = vld [vmem:[%s11094_s5 + $0x180] sm:$0xff]  ;;  %v752_v16 = vld [vmem:[%s11094_s5 + $0x1d0] sm:$0xff] }
  0x29   : > { %909 = vmatprep.mubr.f32.mxu1 %v11105_v5  ;;  %v765_v63 = vld [vmem:[%s11094_s5 + $0x238] sm:$0xff]  ;;  %v748_v20 = vld [vmem:[%s11094_s5 + $0x1b0] sm:$0xff]  ;;  %v751_v21 = vld [vmem:[%s11094_s5 + $0x1c8] sm:$0xff] }
  0x2a   : > { %5154 = vmatmul.mubr.msk.f32.gmra.mrb[10].mxu0 %vm463_vm0, %v420_v39  ;;  %v745_v15 = vld [vmem:[%s11094_s5 + $0x198] sm:$0xff]  ;;  %v755_v23 = vld [vmem:[%s11094_s5 + $0x1e8] sm:$0xff]  ;;  %v6581_v24 = vpack.c.bf16 %v751_v21, %v748_v20 }
  0x2b   : > { %609 = vmatprep.mubr.f32.mxu0 %v11105_v5  ;;  %6608 = vmatpush1.bf16.msra.mxu0 %v6607_v46  ;;  %v757_v29 = vld [vmem:[%s11094_s5 + $0x1f8] sm:$0xff]  ;;  %v1611_v34 = vld [vmem:[%s11097_s8 + $0x1a8] sm:$0xff] }
  0x2c   : > { %5169 = vmatmul.mubr.msk.f32.gmra.mrb[10].mxu1 %vm769_vm1, %v7627_v45  ;;  %6609 = vmatprep.subr.bf16.mxu0 %v11100_v19  ;;  %v761_v30 = vld [vmem:[%s11094_s5 + $0x218] sm:$0xff] }
  0x2d   : > { %915 = vmatprep.mubr.f32.mxu1 %v11105_v5  ;;  %v1565_v48 = vld [vmem:[%s11097_s8 + $0x38] sm:$0xff] }
  0x2e   : > { %5155 = vmatmul.mubr.msk.f32.gmra.mrb[12].mxu0 %vm463_vm0, %v421_v44  ;;  %v6561_v44 = vpack.c.bf16 %v721_v42, %v718_v41  ;;  %v1573_v20 = vld [vmem:[%s11097_s8 + $0x78] sm:$0xff] }
  0x2f   : > { %615 = vmatprep.mubr.f32.mxu0 %v11105_v5  ;;  %6611 = vmatpush1.bf16.msra.mxu0 %v6610_v51  ;;  %v756_v51 = vld [vmem:[%s11094_s5 + $0x1f0] sm:$0xff] }
  0x30   : > { %5170 = vmatmul.mubr.msk.f32.gmra.mrb[12].mxu1 %vm769_vm1, %v7643_v50  ;;  %6612 = vmatprep.subr.bf16.mxu0 %v11100_v19  ;;  %v6622_v57 = vpack.c.bf16 %v759_v53, %v756_v51  ;;  %v1614_v53 = vld [vmem:[%s11097_s8 + $0x1c0] sm:$0xff] }
  0x31   : > { %921 = vmatprep.mubr.f32.mxu1 %v11105_v5 }
  0x32   : > { %5156 = vmatmul.mubr.msk.f32.gmra.mrb[14].mxu0 %vm463_vm0, %v422_v49  ;;  %v731_v49 = vld [vmem:[%s11094_s5 + $0x128] sm:$0xff] }
  0x33   : > { %621 = vmatprep.mubr.f32.mxu0 %v11105_v5  ;;  %6614 = vmatpush1.bf16.msra.mxu0 %v6613_v56  ;;  %v730_v56 = vld [vmem:[%s11094_s5 + $0x120] sm:$0xff] }
  0x34   : > { %5171 = vmatmul.mubr.msk.f32.gmra.mrb[14].mxu1 %vm769_vm1, %v7659_v55  ;;  %6615 = vmatprep.subr.bf16.mxu0 %v11100_v19 }
  0x35   : > { %927 = vmatprep.mubr.f32.mxu1 %v11105_v5 }
  0x36   : > { %5157 = vmatmul.mubr.msk.f32.gmra.mrb[16].mxu0 %vm463_vm0, %v423_v54 }
  0x37   : > { %627 = vmatprep.mubr.f32.mxu0 %v11105_v5  ;;  %6617 = vmatpush1.bf16.msra.mxu0 %v6616_v61  ;;  %v762_v61 = vld [vmem:[%s11094_s5 + $0x220] sm:$0xff] }
  0x38   : > { %5172 = vmatmul.mubr.msk.f32.gmra.mrb[16].mxu1 %vm769_vm1, %v7675_v60  ;;  %6618 = vmatprep.subr.bf16.mxu0 %v11100_v19 }
  0x39   : > { %933 = vmatprep.mubr.f32.mxu1 %v11105_v5 }
  0x3a   : > { %5158 = vmatmul.mubr.msk.f32.gmra.mrb[18].mxu0 %vm463_vm0, %v424_v59  ;;  %v740_v59 = vld [vmem:[%s11094_s5 + $0x170] sm:$0xff] }
  0x3b   : > { %633 = vmatprep.mubr.f32.mxu0 %v11105_v5  ;;  %6620 = vmatpush1.bf16.msra.mxu0 %v6619_v2  ;;  %v739_v2 = vld [vmem:[%s11094_s5 + $0x168] sm:$0xff] }
  0x3c   : > { %5173 = vmatmul.mubr.msk.f32.gmra.mrb[18].mxu1 %vm769_vm1, %v7691_v1  ;;  %6621 = vmatprep.subr.bf16.mxu0 %v11100_v19 }
  0x3d   : > { %939 = vmatprep.mubr.f32.mxu1 %v11105_v5 }
  0x3e   : > { %5159 = vmatmul.mubr.msk.f32.gmra.mrb[20].mxu0 %vm463_vm0, %v425_v0  ;;  %v6571_v0 = vpack.c.bf16 %v740_v59, %v737_v58  ;;  %v1564_v58 = vld [vmem:[%s11097_s8 + $0x30] sm:$0xff]  ;;  %v1567_v59 = vld [vmem:[%s11097_s8 + $0x48] sm:$0xff] }
  0x3f   : > { %639 = vmatprep.mubr.f32.mxu0 %v11105_v5  ;;  %6623 = vmatpush1.bf16.msra.mxu0 %v6622_v57 }
  0x40   : > { %5174 = vmatmul.mubr.msk.f32.gmra.mrb[20].mxu1 %vm769_vm1, %v7701_v4  ;;  %6624 = vmatprep.subr.bf16.mxu0 %v11100_v19 }
  0x41   : > { %945 = vmatprep.mubr.f32.mxu1 %v11105_v5 }
  0x42   : > { %5160 = vmatmul.mubr.msk.f32.gmra.mrb[22].mxu0 %vm463_vm0, %v426_v3  ;;  %v6625_v3 = vpack.c.bf16 %v765_v63, %v762_v61 }
  0x43   : > { %645 = vmatprep.mubr.f32.mxu0 %v11105_v5 }
  0x44   : > { %5175 = vmatmul.mubr.msk.f32.gmra.mrb[22].mxu1 %vm769_vm1, %v7711_v7  ;;  %6626 = vmatpush1.bf16.msra.mxu0 %v6625_v3 }
  0x45   : > { %951 = vmatprep.mubr.f32.mxu1 %v11105_v5 }
  0x46   : > { %5161 = vmatmul.mubr.msk.f32.gmra.mrb[24].mxu0 %vm463_vm0, %v427_v6  ;;  %v743_v6 = vld [vmem:[%s11094_s5 + $0x188] sm:$0xff] }
  0x47   : > { %651 = vmatprep.mubr.f32.mxu0 %v11105_v5 }
  0x48   : > { %5176 = vmatmul.mubr.msk.f32.gmra.mrb[24].mxu1 %vm769_vm1, %v7720_v9 }
  0x49   : > { %957 = vmatprep.mubr.f32.mxu1 %v11105_v5 }
  0x4a   : > { %5162 = vmatmul.mubr.msk.f32.gmra.mrb[26].mxu0 %vm463_vm0, %v428_v8  ;;  %v746_v8 = vld [vmem:[%s11094_s5 + $0x1a0] sm:$0xff] }
  0x4b   : > { %657 = vmatprep.mubr.f32.mxu0 %v11105_v5  ;;  %v6575_v13 = vpack.c.bf16 %v746_v8, %v743_v6  ;;  %v1566_v6 = vld [vmem:[%s11097_s8 + $0x40] sm:$0xff]  ;;  %v1569_v8 = vld [vmem:[%s11097_s8 + $0x58] sm:$0xff] }
  0x4c   : > { %5177 = vmatmul.mubr.msk.f32.gmra.mrb[26].mxu1 %vm769_vm1, %v7729_v11  ;;  %v6729_v21 = vpack.c.bf16 %v1569_v8, %v1566_v6  ;;  %v1592_v6 = vld [vmem:[%s11097_s8 + $0x110] sm:$0xff]  ;;  %v1638_v8 = vld [vmem:[%s11097_s8 + $0x280] sm:$0xff] }
  0x4d   : > { %963 = vmatprep.mubr.f32.mxu1 %v11105_v5 }
  0x4e   : > { %5163 = vmatmul.mubr.msk.f32.gmra.mrb[28].mxu0 %vm463_vm0, %v429_v10 }
  0x50   : > { %5178 = vmatmul.mubr.msk.f32.gmra.mrb[28].mxu1 %vm769_vm1, %v7736_v12 }
  0x51   : > { %6038 = vmatprep.mubr.msk.f32.mxu1 %vm7419_vm2, %v11105_v5 }
  0x54   : > { %6039 = vmatmul.mubr.msk.f32.vlgmr.msra.gmra.mrb[30].mxu1 %vm769_vm1, %v7552_v22  ;;  %v716_v22 = vld [vmem:[%s11094_s5 + $0xb0] sm:$0xff] }
  0x55   : > { %6041 = vmatprep.mubr.msk.f32.mxu1 %vm7419_vm2, %v11105_v5  ;;  %6546 = vmatpush1.bf16.msra.mxu1 %v6545_v17  ;;  %v6555_v33 = vpack.c.bf16 %v716_v22, %v713_v31  ;;  %v6577_v17 = vpack.c.bf16 %v745_v15, %v742_v14  ;;  %v1620_v14 = vld [vmem:[%s11097_s8 + $0x1f0] sm:$0xff]  ;;  %v1623_v15 = vld [vmem:[%s11097_s8 + $0x208] sm:$0xff] }
  0x56   : > { %6548 = vmatprep.subr.bf16.mxu1 %v6547_v18 }
  0x58   : > { %6042 = vmatmul.mubr.msk.f32.gmra.mrb[32].mxu1 %vm769_vm1, %v7564_v26  ;;  %v722_v26 = vld [vmem:[%s11094_s5 + $0xe0] sm:$0xff] }
  0x59   : > { %6044 = vmatprep.mubr.msk.f32.mxu1 %vm7419_vm2, %v11105_v5  ;;  %6550 = vmatpush1.bf16.msra.mxu1 %v6549_v25  ;;  %v6559_v39 = vpack.c.bf16 %v722_v26, %v719_v37 }
  0x5a   : > { %6552 = vmatprep.subr.bf16.mxu1 %v6551_v27  ;;  %v754_v27 = vld [vmem:[%s11094_s5 + $0x1e0] sm:$0xff] }
  0x5b   : > { %v6585_v31 = vpack.c.bf16 %v757_v29, %v754_v27  ;;  %v1577_v27 = vld [vmem:[%s11097_s8 + $0x98] sm:$0xff]  ;;  %v6731_v29 = vpack.c.bf16 %v1623_v15, %v1620_v14 }
  0x5c   : > { %6045 = vmatmul.mubr.msk.f32.gmra.mrb[34].mxu1 %vm769_vm1, %v7574_v28  ;;  %v728_v28 = vld [vmem:[%s11094_s5 + $0x110] sm:$0xff] }
  0x5d   : > { %6047 = vmatprep.mubr.msk.f32.mxu1 %vm7419_vm2, %v11105_v5  ;;  %6554 = vmatpush1.bf16.msra.mxu1 %v6553_v32  ;;  %v6563_v46 = vpack.c.bf16 %v728_v28, %v725_v43  ;;  %v760_v32 = vld [vmem:[%s11094_s5 + $0x210] sm:$0xff]  ;;  %v1558_v28 = vld [vmem:[%s11097_s8] sm:$0xff] }
  0x5e   : > { %6556 = vmatprep.subr.bf16.mxu1 %v6555_v33  ;;  %v763_v33 = vld [vmem:[%s11094_s5 + $0x228] sm:$0xff] }
  0x60   : > { %6048 = vmatmul.mubr.msk.f32.gmra.mrb[36].mxu1 %vm769_vm1, %v7595_v35  ;;  %v734_v35 = vld [vmem:[%s11094_s5 + $0x140] sm:$0xff] }
  0x61   : > { %6050 = vmatprep.mubr.msk.f32.mxu1 %vm7419_vm2, %v11105_v5  ;;  %6558 = vmatpush1.bf16.msra.mxu1 %v6557_v38  ;;  %v6567_v54 = vpack.c.bf16 %v734_v35, %v731_v49  ;;  %v451_v38 = vld [vmem:[%s11093_s4] sm:$0x3]  ;;  %v1560_v49 = vld [vmem:[%s11097_s8 + $0x10] sm:$0xff]  ;;  %v1563_v35 = vld [vmem:[%s11097_s8 + $0x28] sm:$0xff] }
  0x62   : > { %6560 = vmatprep.subr.bf16.mxu1 %v6559_v39  ;;  %v6725_v61 = vpack.c.bf16 %v1563_v35, %v1560_v49  ;;  %v1586_v49 = vld [vmem:[%s11097_s8 + $0xe0] sm:$0xff]  ;;  %v1632_v35 = vld [vmem:[%s11097_s8 + $0x250] sm:$0xff] }
  0x64   : > { %6051 = vmatmul.mubr.msk.f32.gmra.mrb[38].mxu1 %vm769_vm1, %v7611_v40  ;;  %v733_v40 = vld [vmem:[%s11094_s5 + $0x138] sm:$0xff] }
  0x65   : > { %6053 = vmatprep.mubr.msk.f32.mxu1 %vm7419_vm2, %v11105_v5  ;;  %6562 = vmatpush1.bf16.msra.mxu1 %v6561_v44  ;;  %v6569_v62 = vpack.c.bf16 %v733_v40, %v730_v56  ;;  %v1561_v44 = vld [vmem:[%s11097_s8 + $0x18] sm:$0xff] }
  0x66   : > { %6564 = vmatprep.subr.bf16.mxu1 %v6563_v46  ;;  %v6629_v57 = vpack.c.bf16 %v1561_v44, %v1558_v28  ;;  %v1583_v28 = vld [vmem:[%s11097_s8 + $0xc8] sm:$0xff] }
  0x68   : > { %6054 = vmatmul.mubr.msk.f32.gmra.mrb[40].mxu1 %vm769_vm1, %v7627_v45  ;;  %v736_v45 = vld [vmem:[%s11094_s5 + $0x150] sm:$0xff] }
  0x69   : > { %6056 = vmatprep.mubr.msk.f32.mxu1 %vm7419_vm2, %v11105_v5  ;;  %6566 = vmatpush1.bf16.msra.mxu1 %v6565_v52  ;;  %v6573_v10 = vpack.c.bf16 %v739_v2, %v736_v45  ;;  %v1568_v52 = vld [vmem:[%s11097_s8 + $0x50] sm:$0xff]  ;;  %v1571_v2 = vld [vmem:[%s11097_s8 + $0x68] sm:$0xff] }
  0x6a   : > { %6568 = vmatprep.subr.bf16.mxu1 %v6567_v54  ;;  %v1617_v54 = vld [vmem:[%s11097_s8 + $0x1d8] sm:$0xff]  ;;  %v6631_v45 = vpack.c.bf16 %v1568_v52, %v1565_v48 }
  0x6b   : > { %v6727_v3 = vpack.c.bf16 %v1617_v54, %v1614_v53 }
  0x6c   : > { %6057 = vmatmul.mubr.msk.f32.gmra.mrb[42].mxu1 %vm769_vm1, %v7643_v50  ;;  %v749_v50 = vld [vmem:[%s11094_s5 + $0x1b8] sm:$0xff] }
  0x6d   : > { %6059 = vmatprep.mubr.msk.f32.mxu1 %vm7419_vm2, %v11105_v5  ;;  %6570 = vmatpush1.bf16.msra.mxu1 %v6569_v62  ;;  %v6579_v18 = vpack.c.bf16 %v752_v16, %v749_v50 }
  0x6e   : > { %6572 = vmatprep.subr.bf16.mxu1 %v6571_v0 }
  0x70   : > { %6060 = vmatmul.mubr.msk.f32.gmra.mrb[44].mxu1 %vm769_vm1, %v7659_v55  ;;  %v758_v55 = vld [vmem:[%s11094_s5 + $0x200] sm:$0xff] }
  0x71   : > { %6062 = vmatprep.mubr.msk.f32.mxu1 %vm7419_vm2, %v11105_v5  ;;  %6574 = vmatpush1.bf16.msra.mxu1 %v6573_v10  ;;  %v6583_v25 = vpack.c.bf16 %v758_v55, %v755_v23 }
  0x72   : > { %6576 = vmatprep.subr.bf16.mxu1 %v6575_v13  ;;  %v1574_v13 = vld [vmem:[%s11097_s8 + $0x80] sm:$0xff] }
  0x74   : > { %6063 = vmatmul.mubr.msk.f32.gmra.mrb[46].mxu1 %vm769_vm1, %v7675_v60  ;;  %v764_v60 = vld [vmem:[%s11094_s5 + $0x230] sm:$0xff] }
  0x75   : > { %6065 = vmatprep.mubr.msk.f32.mxu1 %vm7419_vm2, %v11105_v5  ;;  %6578 = vmatpush1.bf16.msra.mxu1 %v6577_v17  ;;  %v6587_v22 = vpack.c.bf16 %v764_v60, %v761_v30  ;;  %v6633_v17 = vpack.c.bf16 %v1567_v59, %v1564_v58  ;;  %v1572_v30 = vld [vmem:[%s11097_s8 + $0x70] sm:$0xff]  ;;  %v1575_v60 = vld [vmem:[%s11097_s8 + $0x88] sm:$0xff] }
  0x76   : > { %6580 = vmatprep.subr.bf16.mxu1 %v6579_v18  ;;  %v1570_v18 = vld [vmem:[%s11097_s8 + $0x60] sm:$0xff] }
  0x78   : > { %6066 = vmatmul.mubr.msk.f32.gmra.mrb[48].mxu1 %vm769_vm1, %v7691_v1  ;;  %v6589_v1 = vpack.c.bf16 %v763_v33, %v760_v32  ;;  %v1626_v32 = vld [vmem:[%s11097_s8 + $0x220] sm:$0xff]  ;;  %v1629_v33 = vld [vmem:[%s11097_s8 + $0x238] sm:$0xff] }
  0x79   : > { %6068 = vmatprep.mubr.msk.f32.mxu1 %vm7419_vm2, %v11105_v5  ;;  %6582 = vmatpush1.bf16.msra.mxu1 %v6581_v24  ;;  %v6735_v44 = vpack.c.bf16 %v1629_v33, %v1626_v32 }
  0x7a   : > { %6584 = vmatprep.subr.bf16.mxu1 %v6583_v25  ;;  %v6635_v25 = vpack.c.bf16 %v1574_v13, %v1571_v2  ;;  %v1587_v2 = vld [vmem:[%s11097_s8 + $0xe8] sm:$0xff] }
  0x7c   : > { %6069 = vmatmul.mubr.msk.f32.gmra.mrb[50].mxu1 %vm769_vm1, %v7701_v4  ;;  %v1559_v4 = vld [vmem:[%s11097_s8 + $0x8] sm:$0xff] }
  0x7d   : > { %6071 = vmatprep.mubr.msk.f32.mxu1 %vm7419_vm2, %v11105_v5  ;;  %6586 = vmatpush1.bf16.msra.mxu1 %v6585_v31 }
  0x7e   : > { %6588 = vmatprep.subr.bf16.mxu1 %v6587_v22  ;;  %v1580_v22 = vld [vmem:[%s11097_s8 + $0xb0] sm:$0xff] }
  0x80   : > { %6072 = vmatmul.mubr.msk.f32.gmra.mrb[52].mxu1 %vm769_vm1, %v7711_v7  ;;  %v1562_v7 = vld [vmem:[%s11097_s8 + $0x20] sm:$0xff] }
  0x81   : > { %6074 = vmatprep.mubr.msk.f32.mxu1 %vm7419_vm2, %v11105_v5  ;;  %6590 = vmatpush1.bf16.msra.mxu1 %v6589_v1 }
  0x84   : > { %6075 = vmatmul.mubr.msk.f32.gmra.mrb[54].mxu1 %vm769_vm1, %v7720_v9  ;;  %v6627_v9 = vpack.c.bf16 %v1562_v7, %v1559_v4  ;;  %v6637_v7 = vpack.c.bf16 %v1573_v20, %v1570_v18 }
  0x85   : > { %6077 = vmatprep.mubr.msk.f32.mxu1 %vm7419_vm2, %v11105_v5 }
  0x86   : > { %6628 = vmatprep.subr.bf16.mxu0 %v6627_v9  ;;  %v1576_v9 = vld [vmem:[%s11097_s8 + $0x90] sm:$0xff] }
  0x88   : > { %6078 = vmatmul.mubr.msk.f32.gmra.mrb[56].mxu1 %vm769_vm1, %v7729_v11  ;;  %v1608_v11 = vld [vmem:[%s11097_s8 + $0x190] sm:$0xff] }
  0x89   : > { %6080 = vmatprep.mubr.msk.f32.mxu1 %vm7419_vm2, %v11105_v5  ;;  %v6723_v36 = vpack.c.bf16 %v1611_v34, %v1608_v11  ;;  %v1579_v11 = vld [vmem:[%s11097_s8 + $0xa8] sm:$0xff]  ;;  %v6733_v34 = vpack.c.bf16 %v1575_v60, %v1572_v30  ;;  %v1598_v30 = vld [vmem:[%s11097_s8 + $0x140] sm:$0xff]  ;;  %v1644_v60 = vld [vmem:[%s11097_s8 + $0x2b0] sm:$0xff] }
  0x8a   : > { %v6641_v54 = vpack.c.bf16 %v1579_v11, %v1576_v9 }
  0x8b   : > { %6724 = vmatprep.subr.bf16.mxu1 %v6723_v36 }
  0x8c   : > { %6081 = vmatmul.mubr.msk.f32.gmra.mrb[58].mxu1 %vm769_vm1, %v7736_v12  ;;  %v453_v12 = vlaneseq }
  0x8e   : > { %v7963_v37 = vshrl.u32 %v453_v12, 7 }
  0x90   : > { %v7966_v26 = vsub.s32 0, %v7963_v37  ;;  %v7972_v39 = vsub.s32 1, %v7963_v37 }
  0x92   : > { %v7975_v41 = vrot.slane %v451_v38, %v7966_v26  ;;  %v7978_v42 = vrot.slane %v451_v38, %v7972_v39 }
  0xe9   : > { %v575_v43 = vpop.f32.mrb[0].mxu0 }
  0xea   : > { %v576_v46 = vadd.f32 %v575_v43, %v7975_v41  ;;  %v577_v47 = vpop.f32.mrb[1].mxu0  ;;  %v6639_v43 = vpack.c.bf16 %v1580_v22, %v1577_v27  ;;  %v1593_v27 = vld [vmem:[%s11097_s8 + $0x118] sm:$0xff] }
  0xeb   : > { %v578_v51 = vadd.f32 %v577_v47, %v7978_v42  ;;  %v1581_v47 = vld [vmem:[%s11097_s8 + $0xb8] sm:$0xff] }
  0xec   : > { %v664_v62 = vmax.f32 %v576_v46, 0.0  ;;  %v1578_v46 = vld [vmem:[%s11097_s8 + $0xa0] sm:$0xff] }
  0xed   : > { %v665_v56 = vmax.f32 %v578_v51, 0.0  ;;  %v581_v40 = vpop.f32.mrb[2].mxu0  ;;  %v1635_v51 = vld [vmem:[%s11097_s8 + $0x268] sm:$0xff] }
  0xee   : > { %v582_v63 = vadd.f32 %v581_v40, %v7975_v41  ;;  %v583_v0 = vpop.f32.mrb[3].mxu0  ;;  %v1585_v40 = vld [vmem:[%s11097_s8 + $0xd8] sm:$0xff] }
  0xef   : > { %v584_v10 = vadd.f32 %v583_v0, %v7978_v42  ;;  %5194 = vmatprep.mubr.msk.f32.mxu1 %vm1110_vm3, %v665_v56  ;;  %5209 = vmatprep.mubr.msk.f32.mxu0 %vm1110_vm3, %v665_v56  ;;  %v1582_v56 = vld [vmem:[%s11097_s8 + $0xc0] sm:$0xff]  ;;  %v6739_v0 = vpack.c.bf16 %v1635_v51, %v1632_v35 }
  0xf0   : > { %1221 = vmatmul.mubr.f32.vlgmr.msra.gmra.mrb[0].mxu1 %v664_v62  ;;  %1376 = vmatmul.mubr.f32.vlgmr.msra.gmra.mrb[30].mxu0 %v664_v62  ;;  %v666_v23 = vmax.f32 %v582_v63, 0.0  ;;  %v6643_v62 = vpack.c.bf16 %v1586_v49, %v1583_v28  ;;  %v1589_v63 = vld [vmem:[%s11097_s8 + $0xf8] sm:$0xff]  ;;  %v6645_v15 = vpack.c.bf16 %v1585_v40, %v1582_v56  ;;  %v1604_v28 = vld [vmem:[%s11097_s8 + $0x170] sm:$0xff]  ;;  %v1607_v56 = vld [vmem:[%s11097_s8 + $0x188] sm:$0xff] }
  0xf1   : > { %v667_v50 = vmax.f32 %v584_v10, 0.0  ;;  %v587_v16 = vpop.f32.mrb[4].mxu0  ;;  %6630 = vmatpush1.bf16.msra.mxu0 %v6629_v57  ;;  %6726 = vmatpush3.bf16.msra.mxu1 %v6725_v61  ;;  %v6737_v57 = vpack.c.bf16 %v1581_v47, %v1578_v46  ;;  %v1641_v10 = vld [vmem:[%s11097_s8 + $0x298] sm:$0xff]  ;;  %v1610_v40 = vld [vmem:[%s11097_s8 + $0x1a0] sm:$0xff] }
  0xf2   : > { %v588_v55 = vadd.f32 %v587_v16, %v7975_v41  ;;  %v589_v24 = vpop.f32.mrb[5].mxu0  ;;  %6632 = vmatprep.subr.bf16.mxu0 %v6631_v45  ;;  %6728 = vmatprep.subr.bf16.mxu1 %v6727_v3  ;;  %v1584_v45 = vld [vmem:[%s11097_s8 + $0xd0] sm:$0xff]  ;;  %v1591_v16 = vld [vmem:[%s11097_s8 + $0x108] sm:$0xff] }
  0xf3   : > { %v590_v31 = vadd.f32 %v589_v24, %v7978_v42  ;;  %5195 = vmatprep.mubr.msk.f32.mxu1 %vm1110_vm3, %v667_v50  ;;  %5210 = vmatprep.mubr.msk.f32.mxu0 %vm1110_vm3, %v667_v50  ;;  %v1588_v50 = vld [vmem:[%s11097_s8 + $0xf0] sm:$0xff]  ;;  %v6743_v24 = vpack.c.bf16 %v1641_v10, %v1638_v8 }
  0xf4   : > { %1227 = vmatmul.mubr.f32.gmra.mrb[2].mxu1 %v666_v23  ;;  %1381 = vmatmul.mubr.f32.gmra.mrb[32].mxu0 %v666_v23  ;;  %v668_v36 = vmax.f32 %v588_v55, 0.0  ;;  %v6647_v23 = vpack.c.bf16 %v1592_v6, %v1589_v63  ;;  %v1595_v55 = vld [vmem:[%s11097_s8 + $0x128] sm:$0xff]  ;;  %v6649_v33 = vpack.c.bf16 %v1591_v16, %v1588_v50  ;;  %v1613_v6 = vld [vmem:[%s11097_s8 + $0x1b8] sm:$0xff]  ;;  %v1616_v8 = vld [vmem:[%s11097_s8 + $0x1d0] sm:$0xff] }
  0xf5   : > { %v669_v1 = vmax.f32 %v590_v31, 0.0  ;;  %v593_v4 = vpop.f32.mrb[6].mxu0  ;;  %6634 = vmatpush1.bf16.msra.mxu0 %v6633_v17  ;;  %6730 = vmatpush3.bf16.msra.mxu1 %v6729_v21  ;;  %v6741_v17 = vpack.c.bf16 %v1587_v2, %v1584_v45  ;;  %v1647_v31 = vld [vmem:[%s11097_s8 + $0x2c8] sm:$0xff]  ;;  %v6651_v11 = vpack.c.bf16 %v1598_v30, %v1595_v55  ;;  %v1606_v45 = vld [vmem:[%s11097_s8 + $0x180] sm:$0xff]  ;;  %v1609_v2 = vld [vmem:[%s11097_s8 + $0x198] sm:$0xff] }
  0xf6   : > { %v594_v12 = vadd.f32 %v593_v4, %v7975_v41  ;;  %v595_v38 = vpop.f32.mrb[7].mxu0  ;;  %6636 = vmatprep.subr.bf16.mxu0 %v6635_v25  ;;  %6732 = vmatprep.subr.bf16.mxu1 %v6731_v29  ;;  %v1590_v25 = vld [vmem:[%s11097_s8 + $0x100] sm:$0xff] }
  0xf7   : > { %v596_v48 = vadd.f32 %v595_v38, %v7978_v42  ;;  %5196 = vmatprep.mubr.msk.f32.mxu1 %vm1110_vm3, %v669_v1  ;;  %5211 = vmatprep.mubr.msk.f32.mxu0 %vm1110_vm3, %v669_v1  ;;  %v6745_v1 = vpack.c.bf16 %v1593_v27, %v1590_v25  ;;  %v1622_v55 = vld [vmem:[%s11097_s8 + $0x200] sm:$0xff] }
  0xf8   : > { %1233 = vmatmul.mubr.f32.gmra.mrb[4].mxu1 %v668_v36  ;;  %1386 = vmatmul.mubr.f32.gmra.mrb[34].mxu0 %v668_v36  ;;  %v670_v58 = vmax.f32 %v594_v12, 0.0  ;;  %v1597_v36 = vld [vmem:[%s11097_s8 + $0x138] sm:$0xff]  ;;  %v6747_v12 = vpack.c.bf16 %v1647_v31, %v1644_v60 }
  0xf9   : > { %v671_v52 = vmax.f32 %v596_v48, 0.0  ;;  %v599_v53 = vpop.f32.mrb[8].mxu0  ;;  %6638 = vmatpush1.bf16.msra.mxu0 %v6637_v7  ;;  %6734 = vmatpush3.bf16.msra.mxu1 %v6733_v34  ;;  %v1594_v34 = vld [vmem:[%s11097_s8 + $0x120] sm:$0xff] }
  0xfa   : > { %v600_v59 = vadd.f32 %v599_v53, %v7975_v41  ;;  %v601_v61 = vpop.f32.mrb[9].mxu0  ;;  %6640 = vmatprep.subr.bf16.mxu0 %v6639_v43  ;;  %6736 = vmatprep.subr.bf16.mxu1 %v6735_v44  ;;  %v1601_v43 = vld [vmem:[%s11097_s8 + $0x158] sm:$0xff]  ;;  %v6653_v47 = vpack.c.bf16 %v1597_v36, %v1594_v34  ;;  %v1603_v53 = vld [vmem:[%s11097_s8 + $0x168] sm:$0xff] }
  0xfb   : > { %v602_v3 = vadd.f32 %v601_v61, %v7978_v42  ;;  %5197 = vmatprep.mubr.msk.f32.mxu1 %vm1110_vm3, %v671_v52  ;;  %5212 = vmatprep.mubr.msk.f32.mxu0 %vm1110_vm3, %v671_v52  ;;  %v6655_v51 = vpack.c.bf16 %v1604_v28, %v1601_v43  ;;  %v1600_v52 = vld [vmem:[%s11097_s8 + $0x150] sm:$0xff]  ;;  %v1627_v28 = vld [vmem:[%s11097_s8 + $0x228] sm:$0xff] }
  0xfc   : > { %1239 = vmatmul.mubr.f32.gmra.mrb[6].mxu1 %v670_v58  ;;  %1391 = vmatmul.mubr.f32.gmra.mrb[36].mxu0 %v670_v58  ;;  %v672_v18 = vmax.f32 %v600_v59, 0.0  ;;  %v6657_v59 = vpack.c.bf16 %v1603_v53, %v1600_v52  ;;  %v1624_v43 = vld [vmem:[%s11097_s8 + $0x210] sm:$0xff] }
  0xfd   : > { %v673_v13 = vmax.f32 %v602_v3, 0.0  ;;  %v605_v14 = vpop.f32.mrb[10].mxu0  ;;  %6642 = vmatpush1.bf16.msra.mxu0 %v6641_v54  ;;  %6738 = vmatpush3.bf16.msra.mxu1 %v6737_v57 }
  0xfe   : > { %v606_v20 = vadd.f32 %v605_v14, %v7975_v41  ;;  %v607_v21 = vpop.f32.mrb[11].mxu0  ;;  %6644 = vmatprep.subr.bf16.mxu0 %v6643_v62  ;;  %6740 = vmatprep.subr.bf16.mxu1 %v6739_v0  ;;  %v6659_v0 = vpack.c.bf16 %v1610_v40, %v1607_v56  ;;  %v6661_v14 = vpack.c.bf16 %v1609_v2, %v1606_v45  ;;  %v1630_v56 = vld [vmem:[%s11097_s8 + $0x240] sm:$0xff]  ;;  %v1633_v40 = vld [vmem:[%s11097_s8 + $0x258] sm:$0xff] }
  0xff   : > { %v608_v29 = vadd.f32 %v607_v21, %v7978_v42  ;;  %5198 = vmatprep.mubr.msk.f32.mxu1 %vm1110_vm3, %v673_v13  ;;  %5213 = vmatprep.mubr.msk.f32.mxu0 %vm1110_vm3, %v673_v13 }
 0x100   : > { %1245 = vmatmul.mubr.f32.gmra.mrb[8].mxu1 %v672_v18  ;;  %1396 = vmatmul.mubr.f32.gmra.mrb[38].mxu0 %v672_v18  ;;  %v674_v4 = vmax.f32 %v606_v20, 0.0  ;;  %v1612_v18 = vld [vmem:[%s11097_s8 + $0x1b0] sm:$0xff]  ;;  %v1615_v20 = vld [vmem:[%s11097_s8 + $0x1c8] sm:$0xff] }
 0x101   : > { %v675_v22 = vmax.f32 %v608_v29, 0.0  ;;  %v611_v32 = vpop.f32.mrb[12].mxu0  ;;  %6646 = vmatpush1.bf16.msra.mxu0 %v6645_v15  ;;  %6742 = vmatpush3.bf16.msra.mxu1 %v6741_v17  ;;  %v6663_v17 = vpack.c.bf16 %v1616_v8, %v1613_v6  ;;  %v6665_v27 = vpack.c.bf16 %v1615_v20, %v1612_v18  ;;  %v1636_v6 = vld [vmem:[%s11097_s8 + $0x270] sm:$0xff]  ;;  %v1639_v8 = vld [vmem:[%s11097_s8 + $0x288] sm:$0xff] }
 0x102   : > { %v612_v7 = vadd.f32 %v611_v32, %v7975_v41  ;;  %v613_v9 = vpop.f32.mrb[13].mxu0  ;;  %6648 = vmatprep.subr.bf16.mxu0 %v6647_v23  ;;  %6744 = vmatprep.subr.bf16.mxu1 %v6743_v24  ;;  %v1619_v23 = vld [vmem:[%s11097_s8 + $0x1e8] sm:$0xff]  ;;  %v1621_v32 = vld [vmem:[%s11097_s8 + $0x1f8] sm:$0xff] }
 0x103   : > { %v614_v38 = vadd.f32 %v613_v9, %v7978_v42  ;;  %5199 = vmatprep.mubr.msk.f32.mxu1 %vm1110_vm3, %v675_v22  ;;  %5214 = vmatprep.mubr.msk.f32.mxu0 %vm1110_vm3, %v675_v22  ;;  %v6667_v31 = vpack.c.bf16 %v1622_v55, %v1619_v23  ;;  %v1618_v22 = vld [vmem:[%s11097_s8 + $0x1e0] sm:$0xff] }
 0x104   : > { %1251 = vmatmul.mubr.f32.gmra.mrb[10].mxu1 %v674_v4  ;;  %1401 = vmatmul.mubr.f32.gmra.mrb[40].mxu0 %v674_v4  ;;  %v676_v48 = vmax.f32 %v612_v7, 0.0  ;;  %v1628_v4 = vld [vmem:[%s11097_s8 + $0x230] sm:$0xff] }
 0x105   : > { %v677_v44 = vmax.f32 %v614_v38, 0.0  ;;  %v617_v46 = vpop.f32.mrb[14].mxu0  ;;  %6650 = vmatpush1.bf16.msra.mxu0 %v6649_v33  ;;  %6746 = vmatpush3.bf16.msra.mxu1 %v6745_v1  ;;  %v1625_v1 = vld [vmem:[%s11097_s8 + $0x218] sm:$0xff] }
 0x106   : > { %v618_v49 = vadd.f32 %v617_v46, %v7975_v41  ;;  %v619_v35 = vpop.f32.mrb[15].mxu0  ;;  %6652 = vmatprep.subr.bf16.mxu0 %v6651_v11  ;;  %6748 = vmatprep.subr.bf16.mxu1 %v6747_v12  ;;  %v6669_v11 = vpack.c.bf16 %v1621_v32, %v1618_v22  ;;  %v6671_v38 = vpack.c.bf16 %v1628_v4, %v1625_v1  ;;  %v1631_v46 = vld [vmem:[%s11097_s8 + $0x248] sm:$0xff]  ;;  %v1642_v4 = vld [vmem:[%s11097_s8 + $0x2a0] sm:$0xff] }
 0x107   : > { %v620_v54 = vadd.f32 %v619_v35, %v7978_v42  ;;  %5200 = vmatprep.mubr.msk.f32.mxu1 %vm1110_vm3, %v677_v44  ;;  %5215 = vmatprep.mubr.msk.f32.mxu0 %vm1110_vm3, %v677_v44  ;;  %v6673_v35 = vpack.c.bf16 %v1627_v28, %v1624_v43  ;;  %v1649_v43 = vld [vmem:[%s11097_s8 + $0x2d8] sm:$0xff]  ;;  %v1652_v28 = vld [vmem:[%s11097_s8 + $0x2f0] sm:$0xff] }
 0x108   : > { %1257 = vmatmul.mubr.f32.gmra.mrb[12].mxu1 %v676_v48  ;;  %1406 = vmatmul.mubr.f32.gmra.mrb[42].mxu0 %v676_v48  ;;  %v678_v61 = vmax.f32 %v618_v49, 0.0 }
 0x109   : > { %v679_v57 = vmax.f32 %v620_v54, 0.0  ;;  %v623_v58 = vpop.f32.mrb[16].mxu0  ;;  %6654 = vmatpush1.bf16.msra.mxu0 %v6653_v47  ;;  %v1634_v47 = vld [vmem:[%s11097_s8 + $0x260] sm:$0xff] }
 0x10a   : > { %v624_v62 = vadd.f32 %v623_v58, %v7975_v41  ;;  %v625_v63 = vpop.f32.mrb[17].mxu0  ;;  %6656 = vmatprep.subr.bf16.mxu0 %v6655_v51  ;;  %v6675_v54 = vpack.c.bf16 %v1634_v47, %v1631_v46  ;;  %v1637_v58 = vld [vmem:[%s11097_s8 + $0x278] sm:$0xff]  ;;  %v6687_v46 = vpack.c.bf16 %v1652_v28, %v1649_v43 }
 0x10b   : > { %v626_v3 = vadd.f32 %v625_v63, %v7978_v42  ;;  %5201 = vmatprep.mubr.msk.f32.mxu1 %vm1110_vm3, %v679_v57  ;;  %5216 = vmatprep.mubr.msk.f32.mxu0 %vm1110_vm3, %v679_v57  ;;  %v6677_v63 = vpack.c.bf16 %v1633_v40, %v1630_v56  ;;  %v1653_v47 = vld [vmem:[%s11097_s8 + $0x2f8] sm:$0xff] }
 0x10c   : > { %1263 = vmatmul.mubr.f32.gmra.mrb[14].mxu1 %v678_v61  ;;  %1411 = vmatmul.mubr.f32.gmra.mrb[44].mxu0 %v678_v61  ;;  %v680_v15 = vmax.f32 %v624_v62, 0.0 }
 0x10d   : > { %v681_v10 = vmax.f32 %v626_v3, 0.0  ;;  %v629_v13 = vpop.f32.mrb[18].mxu0  ;;  %6658 = vmatpush1.bf16.msra.mxu0 %v6657_v59  ;;  %v1640_v59 = vld [vmem:[%s11097_s8 + $0x290] sm:$0xff] }
 0x10e   : > { %v630_v50 = vadd.f32 %v629_v13, %v7975_v41  ;;  %v631_v16 = vpop.f32.mrb[19].mxu0  ;;  %6660 = vmatprep.subr.bf16.mxu0 %v6659_v0  ;;  %v6679_v3 = vpack.c.bf16 %v1640_v59, %v1637_v58  ;;  %v1643_v13 = vld [vmem:[%s11097_s8 + $0x2a8] sm:$0xff] }
 0x10f   : > { %v632_v21 = vadd.f32 %v631_v16, %v7978_v42  ;;  %5202 = vmatprep.mubr.msk.f32.mxu1 %vm1110_vm3, %v681_v10  ;;  %5217 = vmatprep.mubr.msk.f32.mxu0 %vm1110_vm3, %v681_v10  ;;  %v6681_v16 = vpack.c.bf16 %v1639_v8, %v1636_v6 }
 0x110   : > { %1269 = vmatmul.mubr.f32.gmra.mrb[16].mxu1 %v680_v15  ;;  %1416 = vmatmul.mubr.f32.gmra.mrb[46].mxu0 %v680_v15  ;;  %v682_v29 = vmax.f32 %v630_v50, 0.0 }
 0x111   : > { %v683_v24 = vmax.f32 %v632_v21, 0.0  ;;  %v635_v25 = vpop.f32.mrb[20].mxu0  ;;  %6662 = vmatpush1.bf16.msra.mxu0 %v6661_v14  ;;  %v1646_v14 = vld [vmem:[%s11097_s8 + $0x2c0] sm:$0xff] }
 0x112   : > { %v636_v30 = vadd.f32 %v635_v25, %v7975_v41  ;;  %v637_v60 = vpop.f32.mrb[21].mxu0  ;;  %6664 = vmatprep.subr.bf16.mxu0 %v6663_v17  ;;  %v6683_v21 = vpack.c.bf16 %v1646_v14, %v1643_v13 }
 0x113   : > { %v638_v33 = vadd.f32 %v637_v60, %v7978_v42  ;;  %5203 = vmatprep.mubr.msk.f32.mxu1 %vm1110_vm3, %v683_v24  ;;  %5218 = vmatprep.mubr.msk.f32.mxu0 %vm1110_vm3, %v683_v24 }
 0x114   : > { %1275 = vmatmul.mubr.f32.gmra.mrb[18].mxu1 %v682_v29  ;;  %1421 = vmatmul.mubr.f32.gmra.mrb[48].mxu0 %v682_v29  ;;  %v684_v34 = vmax.f32 %v636_v30, 0.0 }
 0x115   : > { %v685_v7 = vmax.f32 %v638_v33, 0.0  ;;  %v641_v9 = vpop.f32.mrb[22].mxu0  ;;  %6666 = vmatpush1.bf16.msra.mxu0 %v6665_v27 }
 0x116   : > { %v642_v36 = vadd.f32 %v641_v9, %v7975_v41  ;;  %v643_v12 = vpop.f32.mrb[23].mxu0  ;;  %6668 = vmatprep.subr.bf16.mxu0 %v6667_v31  ;;  %v1596_v9 = vld [vmem:[%s11097_s8 + $0x130] sm:$0xff] }
 0x117   : > { %v644_v44 = vadd.f32 %v643_v12, %v7978_v42  ;;  %5204 = vmatprep.mubr.msk.f32.mxu1 %vm1110_vm3, %v685_v7  ;;  %5219 = vmatprep.mubr.msk.f32.mxu0 %vm1110_vm3, %v685_v7  ;;  %v1645_v7 = vld [vmem:[%s11097_s8 + $0x2b8] sm:$0xff] }
 0x118   : > { %1281 = vmatmul.mubr.f32.gmra.mrb[20].mxu1 %v684_v34  ;;  %1426 = vmatmul.mubr.f32.gmra.mrb[50].mxu0 %v684_v34  ;;  %v686_v51 = vmax.f32 %v642_v36, 0.0  ;;  %v6685_v34 = vpack.c.bf16 %v1645_v7, %v1642_v4  ;;  %v1599_v36 = vld [vmem:[%s11097_s8 + $0x148] sm:$0xff]  ;;  %v1664_v4 = vld [vmem:[%s11097_s8 + $0x350] sm:$0xff] }
 0x119   : > { %v687_v48 = vmax.f32 %v644_v44, 0.0  ;;  %v647_v49 = vpop.f32.mrb[24].mxu0  ;;  %6670 = vmatpush1.bf16.msra.mxu0 %v6669_v11  ;;  %v1650_v44 = vld [vmem:[%s11097_s8 + $0x2e0] sm:$0xff] }
 0x11a   : > { %v648_v52 = vadd.f32 %v647_v49, %v7975_v41  ;;  %v649_v53 = vpop.f32.mrb[25].mxu0  ;;  %6672 = vmatprep.subr.bf16.mxu0 %v6671_v38  ;;  %v6749_v38 = vpack.c.bf16 %v1599_v36, %v1596_v9  ;;  %v1651_v49 = vld [vmem:[%s11097_s8 + $0x2e8] sm:$0xff] }
 0x11b   : > { %v650_v57 = vadd.f32 %v649_v53, %v7978_v42  ;;  %5205 = vmatprep.mubr.msk.f32.mxu1 %vm1110_vm3, %v687_v48  ;;  %5220 = vmatprep.mubr.msk.f32.mxu0 %vm1110_vm3, %v687_v48  ;;  %v1648_v48 = vld [vmem:[%s11097_s8 + $0x2d0] sm:$0xff]  ;;  %v1602_v53 = vld [vmem:[%s11097_s8 + $0x160] sm:$0xff] }
 0x11c   : > { %1287 = vmatmul.mubr.f32.gmra.mrb[22].mxu1 %v686_v51  ;;  %1431 = vmatmul.mubr.f32.gmra.mrb[52].mxu0 %v686_v51  ;;  %v688_v0 = vmax.f32 %v648_v52, 0.0  ;;  %v6751_v51 = vpack.c.bf16 %v1653_v47, %v1650_v44  ;;  %v6689_v52 = vpack.c.bf16 %v1651_v49, %v1648_v48  ;;  %v1663_v49 = vld [vmem:[%s11097_s8 + $0x348] sm:$0xff] }
 0x11d   : > { %v689_v61 = vmax.f32 %v650_v57, 0.0  ;;  %v653_v62 = vpop.f32.mrb[26].mxu0  ;;  %6674 = vmatpush1.bf16.msra.mxu0 %v6673_v35  ;;  %6750 = vmatpush3.bf16.msra.mxu1 %v6749_v38 }
 0x11e   : > { %v654_v45 = vadd.f32 %v653_v62, %v7975_v41  ;;  %v655_v2 = vpop.f32.mrb[27].mxu0  ;;  %6676 = vmatprep.subr.bf16.mxu0 %v6675_v54  ;;  %v1605_v54 = vld [vmem:[%s11097_s8 + $0x178] sm:$0xff]  ;;  %6752 = vmatprep.subr.bf16.mxu1 %v6751_v51  ;;  %v1662_v51 = vld [vmem:[%s11097_s8 + $0x340] sm:$0xff] }
 0x11f   : > { %v656_v10 = vadd.f32 %v655_v2, %v7978_v42  ;;  %5206 = vmatprep.mubr.msk.f32.mxu1 %vm1110_vm3, %v689_v61  ;;  %5221 = vmatprep.mubr.msk.f32.mxu0 %vm1110_vm3, %v689_v61  ;;  %v6753_v40 = vpack.c.bf16 %v1605_v54, %v1602_v53  ;;  %v1655_v2 = vld [vmem:[%s11097_s8 + $0x308] sm:$0xff]  ;;  %v1670_v54 = vld [vmem:[%s11097_s8 + $0x380] sm:$0xff] }
 0x120   : > { %1293 = vmatmul.mubr.f32.gmra.mrb[24].mxu1 %v688_v0  ;;  %1436 = vmatmul.mubr.f32.gmra.mrb[54].mxu0 %v688_v0  ;;  %v690_v17 = vmax.f32 %v654_v45, 0.0 }
 0x121   : > { %v691_v15 = vmax.f32 %v656_v10, 0.0  ;;  %v659_v50 = vpop.f32.mrb[28].mxu0  ;;  %6678 = vmatpush1.bf16.msra.mxu0 %v6677_v63  ;;  %6754 = vmatpush3.bf16.msra.mxu1 %v6753_v40 }
 0x122   : > { %v660_v18 = vadd.f32 %v659_v50, %v7975_v41  ;;  %v661_v20 = vpop.f32.mrb[29].mxu0  ;;  %6680 = vmatprep.subr.bf16.mxu0 %v6679_v3  ;;  %6755 = vmatprep.subr.bf16.mxu1 %v11100_v19  ;;  %v1658_v3 = vld [vmem:[%s11097_s8 + $0x320] sm:$0xff] }
 0x123   : > { %v662_v23 = vadd.f32 %v661_v20, %v7978_v42  ;;  %5207 = vmatprep.mubr.msk.f32.mxu1 %vm1110_vm3, %v691_v15  ;;  %5222 = vmatprep.mubr.msk.f32.mxu0 %vm1110_vm3, %v691_v15  ;;  %v6691_v8 = vpack.c.bf16 %v1658_v3, %v1655_v2 }
 0x124   : > { %1299 = vmatmul.mubr.f32.gmra.mrb[26].mxu1 %v690_v17  ;;  %1441 = vmatmul.mubr.f32.gmra.mrb[56].mxu0 %v690_v17  ;;  %v692_v24 = vmax.f32 %v660_v18, 0.0 }
 0x125   : > { %v693_v55 = vmax.f32 %v662_v23, 0.0  ;;  %6682 = vmatpush1.bf16.msra.mxu0 %v6681_v16  ;;  %v8356_v16 = vld [vmem:[%s11096_s7] sm:$0x7] }
 0x126   : > { %6684 = vmatprep.subr.bf16.mxu0 %v6683_v21  ;;  %v8360_v17 = vrot.slane %v8356_v16, %v7966_v26  ;;  %v8364_v18 = vrot.slane %v8356_v16, %v7972_v39  ;;  %v1654_v23 = vld [vmem:[%s11097_s8 + $0x300] sm:$0xff] }
 0x127   : > { %5208 = vmatprep.mubr.msk.f32.mxu1 %vm1110_vm3, %v693_v55  ;;  %5223 = vmatprep.mubr.msk.f32.mxu0 %vm1110_vm3, %v693_v55  ;;  %v8280_v41 = vpop.f32.mrb[30].mxu1 }
 0x128   : > { %1305 = vmatmul.mubr.f32.gmra.mrb[28].mxu1 %v692_v24  ;;  %1446 = vmatmul.mubr.f32.gmra.mrb[58].mxu0 %v692_v24  ;;  %v6040_v25 = vpop.f32.mrb[31].mxu1 }
 0x129   : > { %6686 = vmatpush1.bf16.msra.mxu0 %v6685_v34 }
 0x12a   : > { %6688 = vmatprep.subr.bf16.mxu0 %v6687_v46 }
 0x12b   : > { %v8282_v42 = vpop.f32.mrb[32].mxu1 }
 0x12c   : > { %v6043_v27 = vpop.f32.mrb[33].mxu1 }
 0x12d   : > { %6690 = vmatpush1.bf16.msra.mxu0 %v6689_v52  ;;  %v1665_v52 = vld [vmem:[%s11097_s8 + $0x358] sm:$0xff] }
 0x12e   : > { %6692 = vmatprep.subr.bf16.mxu0 %v6691_v8 }
 0x12f   : > { %v8284_v29 = vpop.f32.mrb[34].mxu1 }
 0x130   : > { %v6046_v30 = vpop.f32.mrb[35].mxu1 }
 0x131   : > { %v1657_v30 = vld [vmem:[%s11097_s8 + $0x318] sm:$0xff] }
 0x132   : > { %v6693_v36 = vpack.c.bf16 %v1657_v30, %v1654_v23 }
 0x133   : > { %v8286_v60 = vpop.f32.mrb[36].mxu1 }
 0x134   : > { %v6049_v31 = vpop.f32.mrb[37].mxu1 }
 0x135   : > { %v1656_v31 = vld [vmem:[%s11097_s8 + $0x310] sm:$0xff] }
 0x137   : > { %v8288_v22 = vpop.f32.mrb[38].mxu1 }
 0x138   : > { %v6052_v32 = vpop.f32.mrb[39].mxu1 }
 0x139   : > { %v1659_v32 = vld [vmem:[%s11097_s8 + $0x328] sm:$0xff] }
 0x13a   : > { %v6756_v38 = vpack.c.bf16 %v1659_v32, %v1656_v31 }
 0x13b   : > { %v8290_v33 = vpop.f32.mrb[40].mxu1 }
 0x13c   : > { %v6055_v1 = vpop.f32.mrb[41].mxu1 }
 0x13f   : > { %v8301_v11 = vpop.f32.mrb[42].mxu1 }
 0x140   : > { %v6058_v12 = vpop.f32.mrb[43].mxu1 }
 0x141   : > { %v1660_v12 = vld [vmem:[%s11097_s8 + $0x330] sm:$0xff] }
 0x143   : > { %v8324_v35 = vpop.f32.mrb[44].mxu1 }
 0x144   : > { %v6061_v56 = vpop.f32.mrb[45].mxu1 }
 0x147   : > { %v8332_v57 = vpop.f32.mrb[46].mxu1 }
 0x148   : > { %v6064_v58 = vpop.f32.mrb[47].mxu1 }
 0x14b   : > { %v8335_v59 = vpop.f32.mrb[48].mxu1 }
 0x14c   : > { %v6067_v61 = vpop.f32.mrb[49].mxu1 }
 0x14d   : > { %v6697_v61 = vpack.c.bf16 %v1663_v49, %v1660_v12  ;;  %v1682_v49 = vld [vmem:[%s11097_s8 + $0x3e0] sm:$0xff] }
 0x14f   : > { %v8337_v62 = vpop.f32.mrb[50].mxu1 }
 0x150   : > { %v6070_v63 = vpop.f32.mrb[51].mxu1 }
 0x151   : > { %v1666_v63 = vld [vmem:[%s11097_s8 + $0x360] sm:$0xff] }
 0x153   : > { %v8339_v0 = vpop.f32.mrb[52].mxu1 }
 0x154   : > { %v6073_v45 = vpop.f32.mrb[53].mxu1 }
 0x155   : > { %v6759_v45 = vpack.c.bf16 %v1665_v52, %v1662_v51 }
 0x157   : > { %v8347_v6 = vpop.f32.mrb[54].mxu1 }
 0x158   : > { %v6076_v10 = vpop.f32.mrb[55].mxu1 }
 0x15b   : > { %v8349_v13 = vpop.f32.mrb[56].mxu1 }
 0x15c   : > { %v6079_v14 = vpop.f32.mrb[57].mxu1 }
 0x15f   : > { %v8351_v15 = vpop.f32.mrb[58].mxu1 }
 0x160   : > { %v6082_v50 = vpop.f32.mrb[59].mxu1 }
 0x1c3   : > { %v1222_v20 = vpop.f32.mrb[0].mxu1  ;;  %v1377_v21 = vpop.f32.mrb[30].mxu0 }
 0x1c4   : > { %v1468_v55 = vadd.f32 %v8360_v17, %v1222_v20  ;;  %v8371_v24 = vadd.f32 %v1377_v21, %v8280_v41  ;;  %v1224_v25 = vpop.f32.mrb[1].mxu1  ;;  %v1379_v27 = vpop.f32.mrb[31].mxu0  ;;  %v1661_v41 = vld [vmem:[%s11097_s8 + $0x338] sm:$0xff]  ;;  %v1668_v21 = vld [vmem:[%s11097_s8 + $0x370] sm:$0xff] }
 0x1c5   : > { %v1469_v1 = vadd.f32 %v8364_v18, %v1224_v25  ;;  %v6695_v48 = vpack.c.bf16 %v1664_v4, %v1661_v41  ;;  %v1669_v20 = vld [vmem:[%s11097_s8 + $0x378] sm:$0xff]  ;;  %v1676_v25 = vld [vmem:[%s11097_s8 + $0x3b0] sm:$0xff] }
 0x1c6   : > { %v8394_v43 = vmax.f32 %v1468_v55, 0.0  ;;  %v1673_v55 = vld [vmem:[%s11097_s8 + $0x398] sm:$0xff]  ;;  %v6701_v32 = vpack.c.bf16 %v1669_v20, %v1666_v63 }
 0x1c7   : > { %v1228_v7 = vpop.f32.mrb[2].mxu1  ;;  %v1382_v9 = vpop.f32.mrb[32].mxu0  ;;  %v8389_v34 = vmax.f32 %v1469_v1, 0.0  ;;  %v1672_v1 = vld [vmem:[%s11097_s8 + $0x390] sm:$0xff] }
 0x1c8   : > { %v1471_v28 = vadd.f32 %v8360_v17, %v1228_v7  ;;  %v8398_v44 = vadd.f32 %v1382_v9, %v8282_v42  ;;  %v1230_v46 = vpop.f32.mrb[3].mxu1  ;;  %v1384_v47 = vpop.f32.mrb[33].mxu0  ;;  %v1667_v42 = vld [vmem:[%s11097_s8 + $0x368] sm:$0xff] }
 0x1c9   : > { %v1472_v53 = vadd.f32 %v8364_v18, %v1230_v46  ;;  %1766 = vmatprep.mubr.f32.mxu0 %v8389_v34  ;;  %2076 = vmatprep.mubr.f32.mxu1 %v8389_v34  ;;  %v6699_v50 = vpack.c.bf16 %v1670_v54, %v1667_v42  ;;  %v1674_v46 = vld [vmem:[%s11097_s8 + $0x3a0] sm:$0xff] }
 0x1ca   : > { %1767 = vmatmul.mubr.f32.vlgmr.msra.gmra.mrb[60].mxu0 %v8394_v43  ;;  %2077 = vmatmul.mubr.f32.vlgmr.msra.gmra.mrb[60].mxu1 %v8394_v43  ;;  %v8429_v14 = vmax.f32 %v1471_v28, 0.0  ;;  %v1675_v28 = vld [vmem:[%s11097_s8 + $0x3a8] sm:$0xff]  ;;  %v1678_v54 = vld [vmem:[%s11097_s8 + $0x3c0] sm:$0xff] }
 0x1cb   : > { %v1234_v56 = vpop.f32.mrb[4].mxu1  ;;  %v1387_v40 = vpop.f32.mrb[34].mxu0  ;;  %v8420_v58 = vmax.f32 %v1472_v53, 0.0  ;;  %6694 = vmatpush1.bf16.msra.mxu0 %v6693_v36  ;;  %6757 = vmatpush3.bf16.msra.mxu1 %v6756_v38  ;;  %v6703_v38 = vpack.c.bf16 %v1676_v25, %v1673_v55  ;;  %v6705_v42 = vpack.c.bf16 %v1675_v28, %v1672_v1  ;;  %v1687_v28 = vld [vmem:[%s11097_s8 + $0x408] sm:$0xff] }
 0x1cc   : > { %v1474_v2 = vadd.f32 %v8360_v17, %v1234_v56  ;;  %v8427_v3 = vadd.f32 %v1387_v40, %v8284_v29  ;;  %v1236_v8 = vpop.f32.mrb[5].mxu1  ;;  %v1389_v10 = vpop.f32.mrb[35].mxu0  ;;  %6696 = vmatprep.subr.bf16.mxu0 %v6695_v48  ;;  %6758 = vmatprep.subr.bf16.mxu1 %v11100_v19  ;;  %v1671_v29 = vld [vmem:[%s11097_s8 + $0x388] sm:$0xff] }
 0x1cd   : > { %v1475_v23 = vadd.f32 %v8364_v18, %v1236_v8  ;;  %1772 = vmatprep.mubr.f32.mxu0 %v8420_v58  ;;  %2081 = vmatprep.mubr.f32.mxu1 %v8420_v58  ;;  %v6762_v41 = vpack.c.bf16 %v1671_v29, %v1668_v21  ;;  %v1679_v48 = vld [vmem:[%s11097_s8 + $0x3c8] sm:$0xff]  ;;  %v1681_v10 = vld [vmem:[%s11097_s8 + $0x3d8] sm:$0xff]  ;;  %v1688_v29 = vld [vmem:[%s11097_s8 + $0x410] sm:$0xff] }
 0x1ce   : > { %1773 = vmatmul.mubr.f32.gmra.mrb[62].mxu0 %v8429_v14  ;;  %2082 = vmatmul.mubr.f32.gmra.mrb[62].mxu1 %v8429_v14  ;;  %v8461_v12 = vmax.f32 %v1474_v2, 0.0  ;;  %v6707_v8 = vpack.c.bf16 %v1682_v49, %v1679_v48  ;;  %v1685_v21 = vld [vmem:[%s11097_s8 + $0x3f8] sm:$0xff]  ;;  %v1694_v48 = vld [vmem:[%s11097_s8 + $0x440] sm:$0xff] }
 0x1cf   : > { %v1240_v27 = vpop.f32.mrb[6].mxu1  ;;  %v1392_v30 = vpop.f32.mrb[36].mxu0  ;;  %v8452_v31 = vmax.f32 %v1475_v23, 0.0  ;;  %6698 = vmatpush1.bf16.msra.mxu0 %v6697_v61  ;;  %6760 = vmatpush3.bf16.msra.mxu1 %v6759_v45 }
 0x1d0   : > { %v1477_v4 = vadd.f32 %v8360_v17, %v1240_v27  ;;  %v8459_v7 = vadd.f32 %v1392_v30, %v8286_v60  ;;  %v1242_v9 = vpop.f32.mrb[7].mxu1  ;;  %v1394_v36 = vpop.f32.mrb[37].mxu0  ;;  %6700 = vmatprep.subr.bf16.mxu0 %v6699_v50  ;;  %6761 = vmatprep.subr.bf16.mxu1 %v11100_v19  ;;  %v1677_v60 = vld [vmem:[%s11097_s8 + $0x3b8] sm:$0xff]  ;;  %v1680_v50 = vld [vmem:[%s11097_s8 + $0x3d0] sm:$0xff]  ;;  %v6709_v27 = vpack.c.bf16 %v1681_v10, %v1678_v54 }
 0x1d1   : > { %v1478_v47 = vadd.f32 %v8364_v18, %v1242_v9  ;;  %1778 = vmatprep.mubr.f32.mxu0 %v8452_v31  ;;  %2086 = vmatprep.mubr.f32.mxu1 %v8452_v31  ;;  %v6765_v56 = vpack.c.bf16 %v1677_v60, %v1674_v46  ;;  %v1686_v46 = vld [vmem:[%s11097_s8 + $0x400] sm:$0xff] }
 0x1d2   : > { %1779 = vmatmul.mubr.f32.gmra.mrb[64].mxu0 %v8461_v12  ;;  %2087 = vmatmul.mubr.f32.gmra.mrb[64].mxu1 %v8461_v12  ;;  %v8493_v2 = vmax.f32 %v1477_v4, 0.0 }
 0x1d3   : > { %v1246_v51 = vpop.f32.mrb[8].mxu1  ;;  %v1397_v52 = vpop.f32.mrb[38].mxu0  ;;  %v8484_v53 = vmax.f32 %v1478_v47, 0.0  ;;  %6702 = vmatpush1.bf16.msra.mxu0 %v6701_v32  ;;  %6763 = vmatpush3.bf16.msra.mxu1 %v6762_v41  ;;  %v1684_v32 = vld [vmem:[%s11097_s8 + $0x3f0] sm:$0xff]  ;;  %v1691_v47 = vld [vmem:[%s11097_s8 + $0x428] sm:$0xff] }
 0x1d4   : > { %v1480_v40 = vadd.f32 %v8360_v17, %v1246_v51  ;;  %v8491_v61 = vadd.f32 %v1397_v52, %v8288_v22  ;;  %v1248_v63 = vpop.f32.mrb[9].mxu1  ;;  %v1399_v45 = vpop.f32.mrb[39].mxu0  ;;  %6704 = vmatprep.subr.bf16.mxu0 %v6703_v38  ;;  %6764 = vmatprep.subr.bf16.mxu1 %v11100_v19  ;;  %v1683_v22 = vld [vmem:[%s11097_s8 + $0x3e8] sm:$0xff]  ;;  %v6711_v38 = vpack.c.bf16 %v1688_v29, %v1685_v21  ;;  %v1697_v29 = vld [vmem:[%s11097_s8 + $0x458] sm:$0xff] }
 0x1d5   : > { %v1481_v20 = vadd.f32 %v8364_v18, %v1248_v63  ;;  %1784 = vmatprep.mubr.f32.mxu0 %v8484_v53  ;;  %2091 = vmatprep.mubr.f32.mxu1 %v8484_v53  ;;  %v6768_v30 = vpack.c.bf16 %v1683_v22, %v1680_v50  ;;  %v6715_v50 = vpack.c.bf16 %v1694_v48, %v1691_v47  ;;  %v1693_v22 = vld [vmem:[%s11097_s8 + $0x438] sm:$0xff]  ;;  %v1699_v47 = vld [vmem:[%s11097_s8 + $0x468] sm:$0xff]  ;;  %v1698_v48 = vld [vmem:[%s11097_s8 + $0x460] sm:$0xff] }
 0x1d6   : > { %1785 = vmatmul.mubr.f32.gmra.mrb[66].mxu0 %v8493_v2  ;;  %2092 = vmatmul.mubr.f32.gmra.mrb[66].mxu1 %v8493_v2  ;;  %v8525_v36 = vmax.f32 %v1480_v40, 0.0 }
 0x1d7   : > { %v1252_v23 = vpop.f32.mrb[10].mxu1  ;;  %v1402_v55 = vpop.f32.mrb[40].mxu0  ;;  %v8516_v25 = vmax.f32 %v1481_v20, 0.0  ;;  %6706 = vmatpush1.bf16.msra.mxu0 %v6705_v42  ;;  %6766 = vmatpush3.bf16.msra.mxu1 %v6765_v56  ;;  %v6713_v42 = vpack.c.bf16 %v1687_v28, %v1684_v32  ;;  %v1690_v56 = vld [vmem:[%s11097_s8 + $0x420] sm:$0xff]  ;;  %v1692_v20 = vld [vmem:[%s11097_s8 + $0x430] sm:$0xff] }
 0x1d8   : > { %v1483_v1 = vadd.f32 %v8360_v17, %v1252_v23  ;;  %v8523_v41 = vadd.f32 %v1402_v55, %v8290_v33  ;;  %v1254_v4 = vpop.f32.mrb[11].mxu1  ;;  %v1404_v9 = vpop.f32.mrb[41].mxu0  ;;  %6708 = vmatprep.subr.bf16.mxu0 %v6707_v8  ;;  %6767 = vmatprep.subr.bf16.mxu1 %v11100_v19  ;;  %v1689_v33 = vld [vmem:[%s11097_s8 + $0x418] sm:$0xff]  ;;  %v1700_v23 = vld [vmem:[%s11097_s8 + $0x470] sm:$0xff]  ;;  %v6717_v32 = vpack.c.bf16 %v1693_v22, %v1690_v56 }
 0x1d9   : > { %v1484_v60 = vadd.f32 %v8364_v18, %v1254_v4  ;;  %1790 = vmatprep.mubr.f32.mxu0 %v8516_v25  ;;  %2096 = vmatprep.mubr.f32.mxu1 %v8516_v25  ;;  %v6771_v54 = vpack.c.bf16 %v1689_v33, %v1686_v46  ;;  %v1696_v4 = vld [vmem:[%s11097_s8 + $0x450] sm:$0xff] }
 0x1da   : > { %1791 = vmatmul.mubr.f32.gmra.mrb[68].mxu0 %v8525_v36  ;;  %2097 = vmatmul.mubr.f32.gmra.mrb[68].mxu1 %v8525_v36  ;;  %v8557_v10 = vmax.f32 %v1483_v1, 0.0  ;;  %v6721_v56 = vpack.c.bf16 %v1699_v47, %v1696_v4 }
 0x1db   : > { %v1258_v49 = vpop.f32.mrb[12].mxu1  ;;  %v1407_v51 = vpop.f32.mrb[42].mxu0  ;;  %v8548_v52 = vmax.f32 %v1484_v60, 0.0  ;;  %6710 = vmatpush1.bf16.msra.mxu0 %v6709_v27  ;;  %6769 = vmatpush3.bf16.msra.mxu1 %v6768_v30  ;;  %v6719_v60 = vpack.c.bf16 %v1700_v23, %v1697_v29 }
 0x1dc   : > { %v1486_v40 = vadd.f32 %v8360_v17, %v1258_v49  ;;  %v8555_v63 = vadd.f32 %v1407_v51, %v8301_v11  ;;  %v1260_v45 = vpop.f32.mrb[13].mxu1  ;;  %v1409_v8 = vpop.f32.mrb[43].mxu0  ;;  %6712 = vmatprep.subr.bf16.mxu0 %v6711_v38  ;;  %6770 = vmatprep.subr.bf16.mxu1 %v11100_v19  ;;  %v1695_v11 = vld [vmem:[%s11097_s8 + $0x448] sm:$0xff] }
 0x1dd   : > { %v1487_v21 = vadd.f32 %v8364_v18, %v1260_v45  ;;  %1796 = vmatprep.mubr.f32.mxu0 %v8548_v52  ;;  %2101 = vmatprep.mubr.f32.mxu1 %v8548_v52  ;;  %v6774_v1 = vpack.c.bf16 %v1695_v11, %v1692_v20 }
 0x1de   : > { %1797 = vmatmul.mubr.f32.gmra.mrb[70].mxu0 %v8557_v10  ;;  %2102 = vmatmul.mubr.f32.gmra.mrb[70].mxu1 %v8557_v10  ;;  %v8589_v33 = vmax.f32 %v1486_v40, 0.0 }
 0x1df   : > { %v1264_v55 = vpop.f32.mrb[14].mxu1  ;;  %v1412_v27 = vpop.f32.mrb[44].mxu0  ;;  %v8580_v30 = vmax.f32 %v1487_v21, 0.0  ;;  %6714 = vmatpush1.bf16.msra.mxu0 %v6713_v42  ;;  %6772 = vmatpush3.bf16.msra.mxu1 %v6771_v54 }
 0x1e0   : > { %v1489_v9 = vadd.f32 %v8360_v17, %v1264_v55  ;;  %v8587_v38 = vadd.f32 %v1412_v27, %v8324_v35  ;;  %v1266_v28 = vpop.f32.mrb[15].mxu1  ;;  %v1414_v46 = vpop.f32.mrb[45].mxu0  ;;  %6716 = vmatprep.subr.bf16.mxu0 %v6715_v50  ;;  %6773 = vmatprep.subr.bf16.mxu1 %v11100_v19  ;;  %v1701_v35 = vld [vmem:[%s11097_s8 + $0x478] sm:$0xff] }
 0x1e1   : > { %v1490_v49 = vadd.f32 %v8364_v18, %v1266_v28  ;;  %1802 = vmatprep.mubr.f32.mxu0 %v8580_v30  ;;  %2106 = vmatprep.mubr.f32.mxu1 %v8580_v30  ;;  %v6777_v40 = vpack.c.bf16 %v1701_v35, %v1698_v48 }
 0x1e2   : > { %1803 = vmatmul.mubr.f32.gmra.mrb[72].mxu0 %v8589_v33  ;;  %2107 = vmatmul.mubr.f32.gmra.mrb[72].mxu1 %v8589_v33  ;;  %v8612_v20 = vmax.f32 %v1489_v9, 0.0 }
 0x1e3   : > { %v1270_v51 = vpop.f32.mrb[16].mxu1  ;;  %v1417_v42 = vpop.f32.mrb[46].mxu0  ;;  %v8606_v54 = vmax.f32 %v1490_v49, 0.0  ;;  %6718 = vmatpush1.bf16.msra.mxu0 %v6717_v32  ;;  %6775 = vmatpush3.bf16.msra.mxu1 %v6774_v1 }
 0x1e4   : > { %v1492_v45 = vadd.f32 %v8360_v17, %v1270_v51  ;;  %v8610_v8 = vadd.f32 %v1417_v42, %v8332_v57  ;;  %v1272_v50 = vpop.f32.mrb[17].mxu1  ;;  %v1419_v22 = vpop.f32.mrb[47].mxu0  ;;  %6720 = vmatprep.subr.bf16.mxu0 %v6719_v60  ;;  %6776 = vmatprep.subr.bf16.mxu1 %v11100_v19 }
 0x1e5   : > { %v1493_v11 = vadd.f32 %v8364_v18, %v1272_v50  ;;  %1808 = vmatprep.mubr.f32.mxu0 %v8606_v54  ;;  %2111 = vmatprep.mubr.f32.mxu1 %v8606_v54 }
 0x1e6   : > { %1809 = vmatmul.mubr.f32.gmra.mrb[74].mxu0 %v8612_v20  ;;  %2112 = vmatmul.mubr.f32.gmra.mrb[74].mxu1 %v8612_v20  ;;  %v8626_v1 = vmax.f32 %v1492_v45, 0.0 }
 0x1e7   : > { %v1276_v21 = vpop.f32.mrb[18].mxu1  ;;  %v1422_v57 = vpop.f32.mrb[48].mxu0  ;;  %v8620_v29 = vmax.f32 %v1493_v11, 0.0  ;;  %6722 = vmatpush1.bf16.msra.mxu0 %v6721_v56  ;;  %6778 = vmatpush3.bf16.msra.mxu1 %v6777_v40 }
 0x1e8   : > { %v1495_v23 = vadd.f32 %v8360_v17, %v1276_v21  ;;  %v8624_v55 = vadd.f32 %v1422_v57, %v8335_v59  ;;  %v1278_v27 = vpop.f32.mrb[19].mxu1  ;;  %v1424_v32 = vpop.f32.mrb[49].mxu0  ;;  %6807 = vmatprep.subr.bf16.mxu1 %v11100_v19 }
 0x1e9   : > { %v1496_v4 = vadd.f32 %v8364_v18, %v1278_v27  ;;  %1814 = vmatprep.mubr.f32.mxu0 %v8620_v29  ;;  %2116 = vmatprep.mubr.f32.mxu1 %v8620_v29 }
 0x1ea   : > { %1815 = vmatmul.mubr.f32.gmra.mrb[76].mxu0 %v8626_v1  ;;  %2117 = vmatmul.mubr.f32.gmra.mrb[76].mxu1 %v8626_v1  ;;  %v8640_v35 = vmax.f32 %v1495_v23, 0.0 }
 0x1eb   : > { %v1282_v9 = vpop.f32.mrb[20].mxu1  ;;  %v1427_v28 = vpop.f32.mrb[50].mxu0  ;;  %v8634_v59 = vmax.f32 %v1496_v4, 0.0 }
 0x1ec   : > { %v1498_v46 = vadd.f32 %v8360_v17, %v1282_v9  ;;  %v8638_v60 = vadd.f32 %v1427_v28, %v8337_v62  ;;  %v1284_v47 = vpop.f32.mrb[21].mxu1  ;;  %v1429_v48 = vpop.f32.mrb[51].mxu0 }
 0x1ed   : > { %v1499_v49 = vadd.f32 %v8364_v18, %v1284_v47  ;;  %1820 = vmatprep.mubr.f32.mxu0 %v8634_v59  ;;  %2121 = vmatprep.mubr.f32.mxu1 %v8634_v59 }
 0x1ee   : > { %1821 = vmatmul.mubr.f32.gmra.mrb[78].mxu0 %v8640_v35  ;;  %2122 = vmatmul.mubr.f32.gmra.mrb[78].mxu1 %v8640_v35  ;;  %v8653_v22 = vmax.f32 %v1498_v46, 0.0 }
 0x1ef   : > { %v1288_v51 = vpop.f32.mrb[22].mxu1  ;;  %v1432_v42 = vpop.f32.mrb[52].mxu0  ;;  %v8647_v56 = vmax.f32 %v1499_v49, 0.0 }
 0x1f0   : > { %v1501_v62 = vadd.f32 %v8360_v17, %v1288_v51  ;;  %v8651_v40 = vadd.f32 %v1432_v42, %v8339_v0  ;;  %v1290_v45 = vpop.f32.mrb[23].mxu1  ;;  %v1434_v50 = vpop.f32.mrb[53].mxu0 }
 0x1f1   : > { %v1502_v11 = vadd.f32 %v8364_v18, %v1290_v45  ;;  %1826 = vmatprep.mubr.f32.mxu0 %v8647_v56  ;;  %2126 = vmatprep.mubr.f32.mxu1 %v8647_v56 }
 0x1f2   : > { %1827 = vmatmul.mubr.f32.gmra.mrb[80].mxu0 %v8653_v22  ;;  %2127 = vmatmul.mubr.f32.gmra.mrb[80].mxu1 %v8653_v22  ;;  %v8666_v9 = vmax.f32 %v1501_v62, 0.0 }
 0x1f3   : > { %v1294_v21 = vpop.f32.mrb[24].mxu1  ;;  %v1437_v57 = vpop.f32.mrb[54].mxu0  ;;  %v8660_v23 = vmax.f32 %v1502_v11, 0.0 }
 0x1f4   : > { %v1504_v0 = vadd.f32 %v8360_v17, %v1294_v21  ;;  %v8664_v27 = vadd.f32 %v1437_v57, %v8347_v6  ;;  %v1296_v32 = vpop.f32.mrb[25].mxu1  ;;  %v1439_v4 = vpop.f32.mrb[55].mxu0  ;;  %v8676_v6 = vsub.s32 2, %v7963_v37 }
 0x1f5   : > { %v1505_v28 = vadd.f32 %v8364_v18, %v1296_v32  ;;  %1832 = vmatprep.mubr.f32.mxu0 %v8660_v23  ;;  %2131 = vmatprep.mubr.f32.mxu1 %v8660_v23 }
 0x1f6   : > { %1833 = vmatmul.mubr.f32.gmra.mrb[82].mxu0 %v8666_v9  ;;  %2132 = vmatmul.mubr.f32.gmra.mrb[82].mxu1 %v8666_v9  ;;  %11163 = vst [vmem:[#allocation2_spill] sm:$0xff] %v8676_v6  ;;  %v8682_v45 = vmax.f32 %v1504_v0, 0.0 }
 0x1f7   : > { %v1300_v46 = vpop.f32.mrb[26].mxu1  ;;  %v1442_v47 = vpop.f32.mrb[56].mxu0  ;;  %v8673_v48 = vmax.f32 %v1505_v28, 0.0 }
 0x1f8   : > { %v1507_v49 = vadd.f32 %v8360_v17, %v1300_v46  ;;  %v8680_v51 = vadd.f32 %v1442_v47, %v8349_v13  ;;  %v1302_v42 = vpop.f32.mrb[27].mxu1  ;;  %v1444_v62 = vpop.f32.mrb[57].mxu0  ;;  %v8693_v13 = vrot.slane %v8356_v16, %v8676_v6 }
 0x1f9   : > { %v1508_v50 = vadd.f32 %v8364_v18, %v1302_v42  ;;  %1838 = vmatprep.mubr.f32.mxu0 %v8673_v48  ;;  %2136 = vmatprep.mubr.f32.mxu1 %v8673_v48 }
 0x1fa   : > { %1839 = vmatmul.mubr.f32.gmra.mrb[84].mxu0 %v8682_v45  ;;  %2137 = vmatmul.mubr.f32.gmra.mrb[84].mxu1 %v8682_v45  ;;  %v8699_v28 = vmax.f32 %v1507_v49, 0.0  ;;  %v1476_v49 = vadd.f32 %v8693_v13, %v8427_v3  ;;  %v1479_v42 = vadd.f32 %v8693_v13, %v8459_v7  ;;  %v1482_v62 = vadd.f32 %v8693_v13, %v8491_v61 }
 0x1fb   : > { %v1306_v37 = vpop.f32.mrb[28].mxu1  ;;  %v1447_v11 = vpop.f32.mrb[58].mxu0  ;;  %v8689_v21 = vmax.f32 %v1508_v50, 0.0  ;;  %v1485_v50 = vadd.f32 %v8693_v13, %v8523_v41 }
 0x1fc   : > { %v1510_v57 = vadd.f32 %v8360_v17, %v1306_v37  ;;  %v8697_v0 = vadd.f32 %v1447_v11, %v8351_v15  ;;  %v1308_v32 = vpop.f32.mrb[29].mxu1  ;;  %v1449_v4 = vpop.f32.mrb[59].mxu0  ;;  %11165 = vst [vmem:[#allocation4_spill] sm:$0xff] %v8699_v28  ;;  %v1470_v15 = vadd.f32 %v8693_v13, %v8371_v24  ;;  %v1473_v24 = vadd.f32 %v8693_v13, %v8398_v44 }
 0x1fd   : > { %11164 = vst [vmem:[#allocation3_spill] sm:$0xff] %v8689_v21  ;;  %v1511_v46 = vadd.f32 %v8364_v18, %v1308_v32  ;;  %1844 = vmatprep.mubr.f32.mxu0 %v8689_v21  ;;  %2141 = vmatprep.mubr.f32.mxu1 %v8689_v21  ;;  %v8737_v44 = vmax.f32 %v1476_v49, 0.0  ;;  %v8746_v3 = vmax.f32 %v1479_v42, 0.0  ;;  %v8755_v7 = vmax.f32 %v1482_v62, 0.0 }
 0x1fe   : > { %1845 = vmatmul.mubr.f32.gmra.mrb[86].mxu0 %v8699_v28  ;;  %2142 = vmatmul.mubr.f32.gmra.mrb[86].mxu1 %v8699_v28  ;;  %v8710_v17 = vmax.f32 %v1510_v57, 0.0  ;;  %v8719_v18 = vmax.f32 %v1470_v15, 0.0  ;;  %v8728_v47 = vmax.f32 %v1473_v24, 0.0  ;;  %v8764_v61 = vmax.f32 %v1485_v50, 0.0 }
 0x1ff   : > { %v8706_v16 = vmax.f32 %v1511_v46, 0.0  ;;  %11170 = vst [vmem:[#allocation9_spill] sm:$0xff] %v8737_v44  ;;  %11171 = vst [vmem:[#allocation10_spill] sm:$0xff] %v8746_v3  ;;  %v1488_v37 = vadd.f32 %v8693_v13, %v8555_v63  ;;  %v1491_v11 = vadd.f32 %v8693_v13, %v8587_v38  ;;  %v1494_v57 = vadd.f32 %v8693_v13, %v8610_v8 }
 0x200   : > { %11167 = vst [vmem:[#allocation6_spill] sm:$0xff] %v8710_v17  ;;  %11168 = vst [vmem:[#allocation7_spill] sm:$0xff] %v8719_v18  ;;  %v1497_v32 = vadd.f32 %v8693_v13, %v8624_v55  ;;  %v1500_v4 = vadd.f32 %v8693_v13, %v8638_v60  ;;  %v1503_v46 = vadd.f32 %v8693_v13, %v8651_v40 }
 0x201   : > { %11166 = vst [vmem:[#allocation5_spill] sm:$0xff] %v8706_v16  ;;  %1850 = vmatprep.mubr.f32.mxu0 %v8706_v16  ;;  %2146 = vmatprep.mubr.f32.mxu1 %v8706_v16  ;;  %11169 = vst [vmem:[#allocation8_spill] sm:$0xff] %v8728_v47  ;;  %v8773_v41 = vmax.f32 %v1488_v37, 0.0  ;;  %v8782_v63 = vmax.f32 %v1491_v11, 0.0  ;;  %v8791_v38 = vmax.f32 %v1494_v57, 0.0  ;;  %v1506_v15 = vadd.f32 %v8693_v13, %v8664_v27 }
 0x202   : > { %1851 = vmatmul.mubr.f32.gmra.mrb[88].mxu0 %v8710_v17  ;;  %2147 = vmatmul.mubr.f32.gmra.mrb[88].mxu1 %v8710_v17  ;;  %11172 = vst [vmem:[#allocation11_spill] sm:$0xff] %v8755_v7  ;;  %11173 = vst [vmem:[#allocation12_spill] sm:$0xff] %v8764_v61  ;;  %v8800_v8 = vmax.f32 %v1497_v32, 0.0  ;;  %v8809_v55 = vmax.f32 %v1500_v4, 0.0  ;;  %v8818_v60 = vmax.f32 %v1503_v46, 0.0  ;;  %v1509_v24 = vadd.f32 %v8693_v13, %v8680_v51 }
 0x203   : > { %1921 = vmatprep.mubr.f32.mxu0 %v11105_v5  ;;  %6115 = vmatprep.mubr.msk.f32.mxu1 %vm7419_vm2, %v11105_v5  ;;  %11174 = vst [vmem:[#allocation13_spill] sm:$0xff] %v8773_v41  ;;  %11175 = vst [vmem:[#allocation14_spill] sm:$0xff] %v8782_v63  ;;  %v8827_v40 = vmax.f32 %v1506_v15, 0.0  ;;  %v1512_v49 = vadd.f32 %v8693_v13, %v8697_v0 }
 0x204   : > { %11176 = vst [vmem:[#allocation15_spill] sm:$0xff] %v8791_v38  ;;  %11177 = vst [vmem:[#allocation16_spill] sm:$0xff] %v8800_v8  ;;  %v8836_v27 = vmax.f32 %v1509_v24, 0.0 }
 0x205   : > { %11178 = vst [vmem:[#allocation17_spill] sm:$0xff] %v8809_v55  ;;  %11179 = vst [vmem:[#allocation18_spill] sm:$0xff] %v8818_v60  ;;  %v8845_v51 = vmax.f32 %v1512_v49, 0.0 }
 0x206   : > { %1922 = vmatmul.mubr.f32.vlgmr.msra.gmra.mrb[60].mxu0 %v8719_v18  ;;  %6116 = vmatmul.mubr.f32.vlgmr.msra.gmra.mrb[90].mxu1 %v8719_v18  ;;  %11180 = vst [vmem:[#allocation19_spill] sm:$0xff] %v8827_v40  ;;  %11181 = vst [vmem:[#allocation20_spill] sm:$0xff] %v8836_v27 }
 0x207   : > { %1927 = vmatprep.mubr.f32.mxu0 %v11105_v5  ;;  %6118 = vmatprep.mubr.msk.f32.mxu1 %vm7419_vm2, %v11105_v5  ;;  %11182 = vst [vmem:[#allocation21_spill] sm:$0xff] %v8845_v51 }
 0x20a   : > { %1928 = vmatmul.mubr.f32.gmra.mrb[62].mxu0 %v8728_v47  ;;  %6119 = vmatmul.mubr.f32.gmra.mrb[92].mxu1 %v8728_v47 }
 0x20b   : > { %1933 = vmatprep.mubr.f32.mxu0 %v11105_v5  ;;  %6121 = vmatprep.mubr.msk.f32.mxu1 %vm7419_vm2, %v11105_v5 }
 0x20e   : > { %1934 = vmatmul.mubr.f32.gmra.mrb[64].mxu0 %v8737_v44  ;;  %6122 = vmatmul.mubr.f32.gmra.mrb[94].mxu1 %v8737_v44 }
 0x20f   : > { %1939 = vmatprep.mubr.f32.mxu0 %v11105_v5  ;;  %6124 = vmatprep.mubr.msk.f32.mxu1 %vm7419_vm2, %v11105_v5 }
 0x212   : > { %1940 = vmatmul.mubr.f32.gmra.mrb[66].mxu0 %v8746_v3  ;;  %6125 = vmatmul.mubr.f32.gmra.mrb[96].mxu1 %v8746_v3 }
 0x213   : > { %1945 = vmatprep.mubr.f32.mxu0 %v11105_v5  ;;  %6127 = vmatprep.mubr.msk.f32.mxu1 %vm7419_vm2, %v11105_v5 }
 0x216   : > { %1946 = vmatmul.mubr.f32.gmra.mrb[68].mxu0 %v8755_v7  ;;  %6128 = vmatmul.mubr.f32.gmra.mrb[98].mxu1 %v8755_v7 }
 0x217   : > { %1951 = vmatprep.mubr.f32.mxu0 %v11105_v5  ;;  %6130 = vmatprep.mubr.msk.f32.mxu1 %vm7419_vm2, %v11105_v5 }
 0x21a   : > { %1952 = vmatmul.mubr.f32.gmra.mrb[70].mxu0 %v8764_v61  ;;  %6131 = vmatmul.mubr.f32.gmra.mrb[100].mxu1 %v8764_v61 }
 0x21b   : > { %1957 = vmatprep.mubr.f32.mxu0 %v11105_v5  ;;  %6133 = vmatprep.mubr.msk.f32.mxu1 %vm7419_vm2, %v11105_v5 }
 0x21e   : > { %1958 = vmatmul.mubr.f32.gmra.mrb[72].mxu0 %v8773_v41  ;;  %6134 = vmatmul.mubr.f32.gmra.mrb[102].mxu1 %v8773_v41 }
 0x21f   : > { %1963 = vmatprep.mubr.f32.mxu0 %v11105_v5  ;;  %6136 = vmatprep.mubr.msk.f32.mxu1 %vm7419_vm2, %v11105_v5 }
 0x222   : > { %1964 = vmatmul.mubr.f32.gmra.mrb[74].mxu0 %v8782_v63  ;;  %6137 = vmatmul.mubr.f32.gmra.mrb[104].mxu1 %v8782_v63 }
 0x223   : > { %1969 = vmatprep.mubr.f32.mxu0 %v11105_v5  ;;  %6139 = vmatprep.mubr.msk.f32.mxu1 %vm7419_vm2, %v11105_v5 }
 0x226   : > { %1970 = vmatmul.mubr.f32.gmra.mrb[76].mxu0 %v8791_v38  ;;  %6140 = vmatmul.mubr.f32.gmra.mrb[106].mxu1 %v8791_v38 }
 0x227   : > { %1975 = vmatprep.mubr.f32.mxu0 %v11105_v5  ;;  %6142 = vmatprep.mubr.msk.f32.mxu1 %vm7419_vm2, %v11105_v5 }
 0x22a   : > { %1976 = vmatmul.mubr.f32.gmra.mrb[78].mxu0 %v8800_v8  ;;  %6143 = vmatmul.mubr.f32.gmra.mrb[108].mxu1 %v8800_v8 }
 0x22b   : > { %1981 = vmatprep.mubr.f32.mxu0 %v11105_v5  ;;  %6145 = vmatprep.mubr.msk.f32.mxu1 %vm7419_vm2, %v11105_v5 }
 0x22e   : > { %1982 = vmatmul.mubr.f32.gmra.mrb[80].mxu0 %v8809_v55  ;;  %6146 = vmatmul.mubr.f32.gmra.mrb[110].mxu1 %v8809_v55 }
 0x22f   : > { %1987 = vmatprep.mubr.f32.mxu0 %v11105_v5  ;;  %6148 = vmatprep.mubr.msk.f32.mxu1 %vm7419_vm2, %v11105_v5 }
 0x232   : > { %1988 = vmatmul.mubr.f32.gmra.mrb[82].mxu0 %v8818_v60  ;;  %6149 = vmatmul.mubr.f32.gmra.mrb[112].mxu1 %v8818_v60 }
 0x233   : > { %1993 = vmatprep.mubr.f32.mxu0 %v11105_v5  ;;  %6151 = vmatprep.mubr.msk.f32.mxu1 %vm7419_vm2, %v11105_v5 }
 0x236   : > { %1994 = vmatmul.mubr.f32.gmra.mrb[84].mxu0 %v8827_v40  ;;  %6152 = vmatmul.mubr.f32.gmra.mrb[114].mxu1 %v8827_v40 }
 0x237   : > { %1999 = vmatprep.mubr.f32.mxu0 %v11105_v5  ;;  %6154 = vmatprep.mubr.msk.f32.mxu1 %vm7419_vm2, %v11105_v5 }
 0x23a   : > { %2000 = vmatmul.mubr.f32.gmra.mrb[86].mxu0 %v8836_v27  ;;  %6155 = vmatmul.mubr.f32.gmra.mrb[116].mxu1 %v8836_v27 }
 0x23b   : > { %2005 = vmatprep.mubr.f32.mxu0 %v11105_v5  ;;  %6157 = vmatprep.mubr.msk.f32.mxu1 %vm7419_vm2, %v11105_v5 }
 0x23e   : > { %2006 = vmatmul.mubr.f32.gmra.mrb[88].mxu0 %v8845_v51  ;;  %6158 = vmatmul.mubr.f32.gmra.mrb[118].mxu1 %v8845_v51 }
 0x23f   : > { %2419 = vmatprep.mubr.f32.mxu0 %v11105_v5  ;;  %6190 = vmatprep.mubr.msk.f32.mxu1 %vm7419_vm2, %v11105_v5 }
 0x29d   : > { %v5654_v13 = vpop.f32.mrb[60].mxu1 }
 0x29e   : > { %v5655_v0 = vpop.f32.mrb[61].mxu1 }
 0x29f   : > { %v5656_v42 = vadd.f32 %v5655_v0, %v5654_v13 }
 0x2a1   : > { %v5657_v62 = vpop.f32.mrb[62].mxu1 }
 0x2a2   : > { %v5658_v50 = vpop.f32.mrb[63].mxu1 }
 0x2a3   : > { %v5659_v37 = vadd.f32 %v5658_v50, %v5657_v62 }
 0x2a5   : > { %v5660_v11 = vpop.f32.mrb[64].mxu1 }
 0x2a6   : > { %v5661_v57 = vpop.f32.mrb[65].mxu1 }
 0x2a7   : > { %v5662_v32 = vadd.f32 %v5661_v57, %v5660_v11 }
 0x2a9   : > { %v5663_v4 = vpop.f32.mrb[66].mxu1 }
 0x2aa   : > { %v5664_v46 = vpop.f32.mrb[67].mxu1 }
 0x2ab   : > { %v5665_v15 = vadd.f32 %v5664_v46, %v5663_v4 }
 0x2ad   : > { %v5666_v24 = vpop.f32.mrb[68].mxu1 }
 0x2ae   : > { %v5667_v49 = vpop.f32.mrb[69].mxu1 }
 0x2af   : > { %v8852_v19 = vadd.f32 %v5667_v49, %v5666_v24 }
 0x2b1   : > { %v5669_v51 = vpop.f32.mrb[70].mxu1 }
 0x2b2   : > { %v5670_v27 = vpop.f32.mrb[71].mxu1 }
 0x2b3   : > { %v8854_v40 = vadd.f32 %v5670_v27, %v5669_v51 }
 0x2b5   : > { %v5672_v5 = vpop.f32.mrb[72].mxu1 }
 0x2b6   : > { %v5673_v60 = vpop.f32.mrb[73].mxu1 }
 0x2b7   : > { %v8856_v13 = vadd.f32 %v5673_v60, %v5672_v5 }
 0x2b9   : > { %v5675_v0 = vpop.f32.mrb[74].mxu1 }
 0x2ba   : > { %v5676_v62 = vpop.f32.mrb[75].mxu1 }
 0x2bb   : > { %v8858_v50 = vadd.f32 %v5676_v62, %v5675_v0 }
 0x2bd   : > { %v5678_v11 = vpop.f32.mrb[76].mxu1 }
 0x2be   : > { %v5679_v57 = vpop.f32.mrb[77].mxu1 }
 0x2bf   : > { %v8860_v55 = vadd.f32 %v5679_v57, %v5678_v11 }
 0x2c1   : > { %v5681_v4 = vpop.f32.mrb[78].mxu1 }
 0x2c2   : > { %v5682_v46 = vpop.f32.mrb[79].mxu1 }
 0x2c3   : > { %v8862_v24 = vadd.f32 %v5682_v46, %v5681_v4 }
 0x2c5   : > { %v5684_v49 = vpop.f32.mrb[80].mxu1 }
 0x2c6   : > { %v5685_v8 = vpop.f32.mrb[81].mxu1 }
 0x2c7   : > { %v8864_v27 = vadd.f32 %v5685_v8, %v5684_v49 }
 0x2c9   : > { %v5687_v51 = vpop.f32.mrb[82].mxu1 }
 0x2ca   : > { %v5688_v38 = vpop.f32.mrb[83].mxu1 }
 0x2cb   : > { %v8866_v5 = vadd.f32 %v5688_v38, %v5687_v51 }
 0x2cd   : > { %v5690_v60 = vpop.f32.mrb[84].mxu1 }
 0x2ce   : > { %v5691_v63 = vpop.f32.mrb[85].mxu1 }
 0x2cf   : > { %v8868_v0 = vadd.f32 %v5691_v63, %v5690_v60 }
 0x2d1   : > { %v5693_v62 = vpop.f32.mrb[86].mxu1 }
 0x2d2   : > { %v5694_v41 = vpop.f32.mrb[87].mxu1 }
 0x2d3   : > { %v8870_v11 = vadd.f32 %v5694_v41, %v5693_v62 }
 0x2d5   : > { %v5696_v57 = vpop.f32.mrb[88].mxu1 }
 0x2d6   : > { %v5697_v61 = vpop.f32.mrb[89].mxu1 }
 0x2d7   : > { %v8872_v4 = vadd.f32 %v5697_v61, %v5696_v57  ;;  %v11183_v57 = vmov 0.0|0.0  }
 0x2d9   : > { %v1923_v46 = vpop.f32.mrb[60].mxu0  ;;  %v2218_v7 = vpop.f32.mrb[90].mxu1 }
 0x2da   : > { %v2219_v8 = vadd.f32 %v5656_v42, %v2218_v7  ;;  %v1925_v49 = vpop.f32.mrb[61].mxu0  ;;  %v6117_v3 = vpop.f32.mrb[91].mxu1 }
 0x2dd   : > { %v1929_v44 = vpop.f32.mrb[62].mxu0  ;;  %v2223_v38 = vpop.f32.mrb[92].mxu1 }
 0x2de   : > { %v6781_v51 = vpack.c.bf16 %v1929_v44, %v1923_v46  ;;  %v2224_v47 = vadd.f32 %v5659_v37, %v2223_v38  ;;  %v1931_v18 = vpop.f32.mrb[63].mxu0  ;;  %v6120_v63 = vpop.f32.mrb[93].mxu1 }
 0x2df   : > { %v6779_v60 = vpack.c.bf16 %v1931_v18, %v1925_v49 }
 0x2e0   : > { %v6808_v16 = vpack.c.bf16 %v2224_v47, %v2219_v8 }
 0x2e1   : > { %v1935_v17 = vpop.f32.mrb[64].mxu0  ;;  %v2228_v41 = vpop.f32.mrb[94].mxu1  ;;  %6780 = vmatprep.subr.bf16.mxu0 %v6779_v60 }
 0x2e2   : > { %v2229_v62 = vadd.f32 %v5662_v32, %v2228_v41  ;;  %v1937_v21 = vpop.f32.mrb[65].mxu0  ;;  %v6123_v61 = vpop.f32.mrb[95].mxu1  ;;  %6782 = vmatpush1.bf16.msra.mxu0 %v6781_v51  ;;  %6809 = vmatpush3.bf16.msra.mxu1 %v6808_v16 }
 0x2e3   : > { %6810 = vmatprep.subr.bf16.mxu1 %v11183_v57 }
 0x2e5   : > { %v1941_v7 = vpop.f32.mrb[66].mxu0  ;;  %v2233_v3 = vpop.f32.mrb[96].mxu1 }
 0x2e6   : > { %v6785_v42 = vpack.c.bf16 %v1941_v7, %v1935_v17  ;;  %v2234_v28 = vadd.f32 %v5665_v15, %v2233_v3  ;;  %v1943_v44 = vpop.f32.mrb[67].mxu0  ;;  %v6126_v37 = vpop.f32.mrb[97].mxu1 }
 0x2e7   : > { %v6783_v46 = vpack.c.bf16 %v1943_v44, %v1937_v21 }
 0x2e8   : > { %v6811_v38 = vpack.c.bf16 %v2234_v28, %v2229_v62 }
 0x2e9   : > { %v1947_v18 = vpop.f32.mrb[68].mxu0  ;;  %v2238_v47 = vpop.f32.mrb[98].mxu1  ;;  %6784 = vmatprep.subr.bf16.mxu0 %v6783_v46 }
 0x2ea   : > { %v2239_v8 = vadd.f32 %v8852_v19, %v2238_v47  ;;  %v1949_v32 = vpop.f32.mrb[69].mxu0  ;;  %v6129_v49 = vpop.f32.mrb[99].mxu1  ;;  %6786 = vmatpush1.bf16.msra.mxu0 %v6785_v42  ;;  %6812 = vmatpush3.bf16.msra.mxu1 %v6811_v38 }
 0x2eb   : > { %6813 = vmatprep.subr.bf16.mxu1 %v11183_v57 }
 0x2ed   : > { %v1953_v16 = vpop.f32.mrb[70].mxu0  ;;  %v2243_v51 = vpop.f32.mrb[100].mxu1 }
 0x2ee   : > { %v6789_v63 = vpack.c.bf16 %v1953_v16, %v1947_v18  ;;  %v2244_v17 = vadd.f32 %v8854_v40, %v2243_v51  ;;  %v1955_v15 = vpop.f32.mrb[71].mxu0  ;;  %v6132_v60 = vpop.f32.mrb[101].mxu1 }
 0x2ef   : > { %v6787_v21 = vpack.c.bf16 %v1955_v15, %v1949_v32 }
 0x2f0   : > { %v6814_v28 = vpack.c.bf16 %v2244_v17, %v2239_v8 }
 0x2f1   : > { %v1959_v41 = vpop.f32.mrb[72].mxu0  ;;  %v2248_v62 = vpop.f32.mrb[102].mxu1  ;;  %6788 = vmatprep.subr.bf16.mxu0 %v6787_v21 }
 0x2f2   : > { %v2249_v19 = vadd.f32 %v8856_v13, %v2248_v62  ;;  %v1961_v61 = vpop.f32.mrb[73].mxu0  ;;  %v6135_v7 = vpop.f32.mrb[103].mxu1  ;;  %6790 = vmatpush1.bf16.msra.mxu0 %v6789_v63  ;;  %6815 = vmatpush3.bf16.msra.mxu1 %v6814_v28 }
 0x2f3   : > { %6816 = vmatprep.subr.bf16.mxu1 %v11183_v57 }
 0x2f5   : > { %v1965_v3 = vpop.f32.mrb[74].mxu0  ;;  %v2253_v42 = vpop.f32.mrb[104].mxu1 }
 0x2f6   : > { %v6793_v44 = vpack.c.bf16 %v1965_v3, %v1959_v41  ;;  %v2254_v40 = vadd.f32 %v8858_v50, %v2253_v42  ;;  %v1967_v37 = vpop.f32.mrb[75].mxu0  ;;  %v6138_v46 = vpop.f32.mrb[105].mxu1 }
 0x2f7   : > { %v6791_v38 = vpack.c.bf16 %v1967_v37, %v1961_v61 }
 0x2f8   : > { %v6817_v18 = vpack.c.bf16 %v2254_v40, %v2249_v19 }
 0x2f9   : > { %v1971_v47 = vpop.f32.mrb[76].mxu0  ;;  %v2258_v8 = vpop.f32.mrb[106].mxu1  ;;  %6792 = vmatprep.subr.bf16.mxu0 %v6791_v38 }
 0x2fa   : > { %v2259_v13 = vadd.f32 %v8860_v55, %v2258_v8  ;;  %v1973_v32 = vpop.f32.mrb[77].mxu0  ;;  %v6141_v49 = vpop.f32.mrb[107].mxu1  ;;  %6794 = vmatpush1.bf16.msra.mxu0 %v6793_v44  ;;  %6818 = vmatpush3.bf16.msra.mxu1 %v6817_v18 }
 0x2fb   : > { %6819 = vmatprep.subr.bf16.mxu1 %v11183_v57 }
 0x2fd   : > { %v1977_v16 = vpop.f32.mrb[78].mxu0  ;;  %v2263_v51 = vpop.f32.mrb[108].mxu1 }
 0x2fe   : > { %v6797_v63 = vpack.c.bf16 %v1977_v16, %v1971_v47  ;;  %v2264_v50 = vadd.f32 %v8862_v24, %v2263_v51  ;;  %v1979_v17 = vpop.f32.mrb[79].mxu0  ;;  %v6144_v15 = vpop.f32.mrb[109].mxu1 }
 0x2ff   : > { %v6795_v60 = vpack.c.bf16 %v1979_v17, %v1973_v32 }
 0x300   : > { %v6820_v21 = vpack.c.bf16 %v2264_v50, %v2259_v13 }
 0x301   : > { %v1983_v28 = vpop.f32.mrb[80].mxu0  ;;  %v2268_v41 = vpop.f32.mrb[110].mxu1  ;;  %6796 = vmatprep.subr.bf16.mxu0 %v6795_v60 }
 0x302   : > { %v2269_v55 = vadd.f32 %v8864_v27, %v2268_v41  ;;  %v1985_v62 = vpop.f32.mrb[81].mxu0  ;;  %v6147_v19 = vpop.f32.mrb[111].mxu1  ;;  %6798 = vmatpush1.bf16.msra.mxu0 %v6797_v63  ;;  %6821 = vmatpush3.bf16.msra.mxu1 %v6820_v21  ;;  %v5304_v41 = vld [vmem:[%s11097_s8 + $0x610] sm:$0xff] }
 0x303   : > { %6822 = vmatprep.subr.bf16.mxu1 %v11183_v57  ;;  %v5256_v19 = vld [vmem:[%s11097_s8 + $0x490] sm:$0xff] }
 0x305   : > { %v1989_v61 = vpop.f32.mrb[82].mxu0  ;;  %v2273_v7 = vpop.f32.mrb[112].mxu1 }
 0x306   : > { %v6801_v3 = vpack.c.bf16 %v1989_v61, %v1983_v28  ;;  %v2274_v24 = vadd.f32 %v8866_v5, %v2273_v7  ;;  %v1991_v42 = vpop.f32.mrb[83].mxu0  ;;  %v6150_v44 = vpop.f32.mrb[113].mxu1  ;;  %v5254_v28 = vld [vmem:[%s11097_s8 + $0x480] sm:$0xff]  ;;  %v5259_v61 = vld [vmem:[%s11097_s8 + $0x4a8] sm:$0xff] }
 0x307   : > { %v6799_v40 = vpack.c.bf16 %v1991_v42, %v1985_v62  ;;  %v11184_v62 = vmov 0.0   ;;  %v400_v7 = vld [vmem:[%s8894_s23] sm:$0xff]  ;;  %v5264_v42 = vld [vmem:[%s11097_s8 + $0x4d0] sm:$0xff] }
 0x308   : > { %v6823_v37 = vpack.c.bf16 %v2274_v24, %v2269_v55  ;;  %v5307_v55 = vld [vmem:[%s11097_s8 + $0x628] sm:$0xff]  ;;  %v5261_v24 = vld [vmem:[%s11097_s8 + $0x4b8] sm:$0xff] }
 0x309   : > { %v1995_v46 = vpop.f32.mrb[84].mxu0  ;;  %v2278_v38 = vpop.f32.mrb[114].mxu1  ;;  %6800 = vmatprep.subr.bf16.mxu0 %v6799_v40  ;;  %v6924_v44 = vpack.c.bf16 %v5307_v55, %v5304_v41  ;;  %v5273_v41 = vld [vmem:[%s11097_s8 + $0x518] sm:$0xff]  ;;  %v5276_v55 = vld [vmem:[%s11097_s8 + $0x530] sm:$0xff] }
 0x30a   : > { %v2279_v27 = vadd.f32 %v8868_v0, %v2278_v38  ;;  %v1997_v18 = vpop.f32.mrb[85].mxu0  ;;  %v6153_v47 = vpop.f32.mrb[115].mxu1  ;;  %6802 = vmatpush1.bf16.msra.mxu0 %v6801_v3  ;;  %6824 = vmatpush3.bf16.msra.mxu1 %v6823_v37  ;;  %v5255_v0 = vld [vmem:[%s11097_s8 + $0x488] sm:$0xff]  ;;  %v5260_v37 = vld [vmem:[%s11097_s8 + $0x4b0] sm:$0xff]  ;;  %v5310_v38 = vld [vmem:[%s11097_s8 + $0x640] sm:$0xff] }
 0x30b   : > { %6825 = vmatprep.subr.bf16.mxu1 %v11183_v57  ;;  %v5262_v47 = vld [vmem:[%s11097_s8 + $0x4c0] sm:$0xff] }
 0x30d   : > { %v2001_v8 = vpop.f32.mrb[86].mxu0  ;;  %v2283_v13 = vpop.f32.mrb[116].mxu1 }
 0x30e   : > { %v6805_v32 = vpack.c.bf16 %v2001_v8, %v1995_v46  ;;  %v2284_v5 = vadd.f32 %v8870_v11, %v2283_v13  ;;  %v2003_v49 = vpop.f32.mrb[87].mxu0  ;;  %v6156_v16 = vpop.f32.mrb[117].mxu1  ;;  %v5258_v11 = vld [vmem:[%s11097_s8 + $0x4a0] sm:$0xff]  ;;  %v6926_v46 = vpack.c.bf16 %v5259_v61, %v5256_v19  ;;  %v5265_v8 = vld [vmem:[%s11097_s8 + $0x4d8] sm:$0xff]  ;;  %v401_v13 = vld [vmem:[%s8894_s23 + $0x8] sm:$0xff] }
 0x30f   : > { %v6803_v51 = vpack.c.bf16 %v2003_v49, %v1997_v18  ;;  %v6828_v3 = vpack.c.bf16 %v5258_v11, %v5255_v0  ;;  %v5263_v18 = vld [vmem:[%s11097_s8 + $0x4c8] sm:$0xff]  ;;  %v5270_v49 = vld [vmem:[%s11097_s8 + $0x500] sm:$0xff]  ;;  %v5269_v11 = vld [vmem:[%s11097_s8 + $0x4f8] sm:$0xff] }
 0x310   : > { %v6826_v63 = vpack.c.bf16 %v2284_v5, %v2279_v27  ;;  %v5313_v27 = vld [vmem:[%s11097_s8 + $0x658] sm:$0xff]  ;;  %v5267_v5 = vld [vmem:[%s11097_s8 + $0x4e8] sm:$0xff]  ;;  %v5272_v61 = vld [vmem:[%s11097_s8 + $0x510] sm:$0xff] }
 0x311   : > { %v2007_v50 = vpop.f32.mrb[88].mxu0  ;;  %v2288_v17 = vpop.f32.mrb[118].mxu1  ;;  %6804 = vmatprep.subr.bf16.mxu0 %v6803_v51  ;;  %v6928_v16 = vpack.c.bf16 %v5313_v27, %v5310_v38  ;;  %v6834_v51 = vpack.c.bf16 %v5263_v18, %v5260_v37  ;;  %v5319_v0 = vld [vmem:[%s11097_s8 + $0x688] sm:$0xff]  ;;  %v403_v37 = vld [vmem:[%s8894_s23 + $0x18] sm:$0xff]  ;;  %v5282_v27 = vld [vmem:[%s11097_s8 + $0x560] sm:$0xff] }
 0x312   : > { %v2289_v15 = vadd.f32 %v8872_v4, %v2288_v17  ;;  %v2009_v60 = vpop.f32.mrb[89].mxu0  ;;  %v6159_v21 = vpop.f32.mrb[119].mxu1  ;;  %6806 = vmatpush1.bf16.msra.mxu0 %v6805_v32  ;;  %6827 = vmatpush3.bf16.msra.mxu1 %v6826_v63  ;;  %v5257_v4 = vld [vmem:[%s11097_s8 + $0x498] sm:$0xff]  ;;  %v6832_v32 = vpack.c.bf16 %v5264_v42, %v5261_v24  ;;  %v5266_v63 = vld [vmem:[%s11097_s8 + $0x4e0] sm:$0xff]  ;;  %v5316_v17 = vld [vmem:[%s11097_s8 + $0x670] sm:$0xff] }
 0x313   : > { %2383 = vmatprep.subr.mxu0 %v2009_v60  ;;  %6188 = vmatprep.subr.mxu1 %v11184_v62  ;;  %v6830_v40 = vpack.c.bf16 %v5257_v4, %v5254_v28  ;;  %v5271_v60 = vld [vmem:[%s11097_s8 + $0x508] sm:$0xff]  ;;  %v402_v21 = vld [vmem:[%s8894_s23 + $0x10] sm:$0xff]  ;;  %v6836_v28 = vpack.c.bf16 %v5270_v49, %v5267_v5  ;;  %v6932_v4 = vpack.c.bf16 %v5319_v0, %v5316_v17  ;;  %v5325_v24 = vld [vmem:[%s11097_s8 + $0x6b8] sm:$0xff] }
 0x314   : > { %v6838_v19 = vpack.c.bf16 %v5269_v11, %v5266_v63  ;;  %v5275_v42 = vld [vmem:[%s11097_s8 + $0x528] sm:$0xff]  ;;  %v5281_v49 = vld [vmem:[%s11097_s8 + $0x558] sm:$0xff]  ;;  %v404_v63 = vld [vmem:[%s8894_s23 + $0x20] sm:$0xff] }
 0x315   : > { %v5279_v38 = vld [vmem:[%s11097_s8 + $0x548] sm:$0xff]  ;;  %v5285_v17 = vld [vmem:[%s11097_s8 + $0x578] sm:$0xff]  ;;  %v5288_v0 = vld [vmem:[%s11097_s8 + $0x590] sm:$0xff] }
 0x316   : > { %2384 = vmatpush1.msra.mxu0 %v2007_v50  ;;  %6189 = vmatpush3.msra.mxu1 %v2289_v15  ;;  %v6930_v50 = vpack.c.bf16 %v5265_v8, %v5262_v47  ;;  %v5268_v15 = vld [vmem:[%s11097_s8 + $0x4f0] sm:$0xff]  ;;  %v6842_v47 = vpack.c.bf16 %v5275_v42, %v5272_v61  ;;  %v5278_v8 = vld [vmem:[%s11097_s8 + $0x540] sm:$0xff]  ;;  %v5331_v5 = vld [vmem:[%s11097_s8 + $0x6e8] sm:$0xff] }
 0x317   : > { %5224 = vmatmul.mubr.msk.f32.vlgmr.msra.gmra.mrb[90].mxu0 %vm2309_vm4, %v400_v7  ;;  %6191 = vmatmul.mubr.msk.f32.vlgmr.msra.gmra.mrb[120].mxu1 %vm2309_vm4, %v400_v7  ;;  %v6934_v7 = vpack.c.bf16 %v5271_v60, %v5268_v15  ;;  %v6846_v15 = vpack.c.bf16 %v5281_v49, %v5278_v8  ;;  %v5284_v60 = vld [vmem:[%s11097_s8 + $0x570] sm:$0xff]  ;;  %v405_v61 = vld [vmem:[%s8894_s23 + $0x28] sm:$0xff] }
 0x318   : > { %2425 = vmatprep.mubr.f32.mxu0 %v11184_v62  ;;  %6193 = vmatprep.mubr.msk.f32.mxu1 %vm7419_vm2, %v11184_v62  ;;  %v5291_v42 = vld [vmem:[%s11097_s8 + $0x5a8] sm:$0xff]  ;;  %v5300_v8 = vld [vmem:[%s11097_s8 + $0x5f0] sm:$0xff] }
 0x319   : > { %6829 = vmatprep.subr.bf16.mxu0 %v6828_v3  ;;  %6925 = vmatprep.subr.bf16.mxu1 %v6924_v44  ;;  %v5322_v3 = vld [vmem:[%s11097_s8 + $0x6a0] sm:$0xff] }
 0x31a   : > { %6831 = vmatpush1.bf16.msra.mxu0 %v6830_v40  ;;  %6927 = vmatpush3.bf16.msra.mxu1 %v6926_v46  ;;  %v5274_v44 = vld [vmem:[%s11097_s8 + $0x520] sm:$0xff]  ;;  %v5277_v40 = vld [vmem:[%s11097_s8 + $0x538] sm:$0xff]  ;;  %v6840_v46 = vpack.c.bf16 %v5276_v55, %v5273_v41  ;;  %v6936_v18 = vpack.c.bf16 %v5325_v24, %v5322_v3  ;;  %v5287_v55 = vld [vmem:[%s11097_s8 + $0x588] sm:$0xff] }
 0x31b   : > { %5225 = vmatmul.mubr.msk.f32.gmra.mrb[92].mxu0 %vm2309_vm4, %v401_v13  ;;  %6194 = vmatmul.mubr.msk.f32.gmra.mrb[122].mxu1 %vm2309_vm4, %v401_v13  ;;  %v6938_v13 = vpack.c.bf16 %v5277_v40, %v5274_v44  ;;  %v5337_v41 = vld [vmem:[%s11097_s8 + $0x718] sm:$0xff]  ;;  %v6850_v24 = vpack.c.bf16 %v5287_v55, %v5284_v60  ;;  %v5294_v44 = vld [vmem:[%s11097_s8 + $0x5c0] sm:$0xff]  ;;  %v409_v55 = vld [vmem:[%s8894_s23 + $0x48] sm:$0xff] }
 0x31c   : > { %2431 = vmatprep.mubr.f32.mxu0 %v11184_v62  ;;  %6196 = vmatprep.mubr.msk.f32.mxu1 %vm7419_vm2, %v11184_v62  ;;  %v5309_v60 = vld [vmem:[%s11097_s8 + $0x638] sm:$0xff] }
 0x31d   : > { %6833 = vmatprep.subr.bf16.mxu0 %v6832_v32  ;;  %6929 = vmatprep.subr.bf16.mxu1 %v6928_v16  ;;  %v5328_v32 = vld [vmem:[%s11097_s8 + $0x6d0] sm:$0xff] }
 0x31e   : > { %6835 = vmatpush1.bf16.msra.mxu0 %v6834_v51  ;;  %6931 = vmatpush3.bf16.msra.mxu1 %v6930_v50  ;;  %v5280_v16 = vld [vmem:[%s11097_s8 + $0x550] sm:$0xff]  ;;  %v5283_v51 = vld [vmem:[%s11097_s8 + $0x568] sm:$0xff]  ;;  %v6844_v50 = vpack.c.bf16 %v5282_v27, %v5279_v38  ;;  %v6940_v11 = vpack.c.bf16 %v5331_v5, %v5328_v32  ;;  %v6852_v27 = vpack.c.bf16 %v5294_v44, %v5291_v42  ;;  %v407_v5 = vld [vmem:[%s8894_s23 + $0x38] sm:$0xff] }
 0x31f   : > { %5226 = vmatmul.mubr.msk.f32.gmra.mrb[94].mxu0 %vm2309_vm4, %v402_v21  ;;  %6197 = vmatmul.mubr.msk.f32.gmra.mrb[124].mxu1 %vm2309_vm4, %v402_v21  ;;  %v6942_v21 = vpack.c.bf16 %v5283_v51, %v5280_v16  ;;  %v406_v38 = vld [vmem:[%s8894_s23 + $0x30] sm:$0xff]  ;;  %v5299_v32 = vld [vmem:[%s11097_s8 + $0x5e8] sm:$0xff] }
 0x320   : > { %2437 = vmatprep.mubr.f32.mxu0 %v11184_v62  ;;  %6199 = vmatprep.mubr.msk.f32.mxu1 %vm7419_vm2, %v11184_v62  ;;  %v5303_v51 = vld [vmem:[%s11097_s8 + $0x608] sm:$0xff]  ;;  %v410_v42 = vld [vmem:[%s8894_s23 + $0x50] sm:$0xff] }
 0x321   : > { %6837 = vmatprep.subr.bf16.mxu0 %v6836_v28  ;;  %6933 = vmatprep.subr.bf16.mxu1 %v6932_v4  ;;  %v5334_v28 = vld [vmem:[%s11097_s8 + $0x700] sm:$0xff] }
 0x322   : > { %6839 = vmatpush1.bf16.msra.mxu0 %v6838_v19  ;;  %6935 = vmatpush3.bf16.msra.mxu1 %v6934_v7  ;;  %v5286_v4 = vld [vmem:[%s11097_s8 + $0x580] sm:$0xff]  ;;  %v5289_v19 = vld [vmem:[%s11097_s8 + $0x598] sm:$0xff]  ;;  %v6848_v7 = vpack.c.bf16 %v5288_v0, %v5285_v17  ;;  %v6944_v3 = vpack.c.bf16 %v5337_v41, %v5334_v28  ;;  %v5308_v28 = vld [vmem:[%s11097_s8 + $0x630] sm:$0xff] }
 0x323   : > { %5227 = vmatmul.mubr.msk.f32.gmra.mrb[96].mxu0 %vm2309_vm4, %v403_v37  ;;  %6200 = vmatmul.mubr.msk.f32.gmra.mrb[126].mxu1 %vm2309_vm4, %v403_v37  ;;  %v6946_v40 = vpack.c.bf16 %v5289_v19, %v5286_v4  ;;  %v5290_v37 = vld [vmem:[%s11097_s8 + $0x5a0] sm:$0xff]  ;;  %v5305_v17 = vld [vmem:[%s11097_s8 + $0x618] sm:$0xff]  ;;  %v5311_v41 = vld [vmem:[%s11097_s8 + $0x648] sm:$0xff] }
 0x324   : > { %2443 = vmatprep.mubr.f32.mxu0 %v11184_v62  ;;  %6202 = vmatprep.mubr.msk.f32.mxu1 %vm7419_vm2, %v11184_v62  ;;  %v408_v0 = vld [vmem:[%s8894_s23 + $0x40] sm:$0xff]  ;;  %v6866_v19 = vpack.c.bf16 %v5311_v41, %v5308_v28  ;;  %v414_v28 = vld [vmem:[%s8894_s23 + $0x70] sm:$0xff]  ;;  %v5339_v41 = vld [vmem:[%s11097_s8 + $0x728] sm:$0xff] }
 0x325   : > { %6841 = vmatprep.subr.bf16.mxu0 %v6840_v46  ;;  %6937 = vmatprep.subr.bf16.mxu1 %v6936_v18  ;;  %v5293_v46 = vld [vmem:[%s11097_s8 + $0x5b8] sm:$0xff] }
 0x326   : > { %6843 = vmatpush1.bf16.msra.mxu0 %v6842_v47  ;;  %6939 = vmatpush3.bf16.msra.mxu1 %v6938_v13  ;;  %v6854_v18 = vpack.c.bf16 %v5293_v46, %v5290_v37  ;;  %v5297_v47 = vld [vmem:[%s11097_s8 + $0x5d8] sm:$0xff]  ;;  %v5296_v13 = vld [vmem:[%s11097_s8 + $0x5d0] sm:$0xff] }
 0x327   : > { %5228 = vmatmul.mubr.msk.f32.gmra.mrb[98].mxu0 %vm2309_vm4, %v404_v63  ;;  %6203 = vmatmul.mubr.msk.f32.gmra.mrb[128].mxu1 %vm2309_vm4, %v404_v63  ;;  %v6856_v49 = vpack.c.bf16 %v5300_v8, %v5297_v47  ;;  %v6858_v16 = vpack.c.bf16 %v5299_v32, %v5296_v13  ;;  %v5306_v63 = vld [vmem:[%s11097_s8 + $0x620] sm:$0xff]  ;;  %v5321_v37 = vld [vmem:[%s11097_s8 + $0x698] sm:$0xff]  ;;  %v5324_v46 = vld [vmem:[%s11097_s8 + $0x6b0] sm:$0xff] }
 0x328   : > { %2449 = vmatprep.mubr.f32.mxu0 %v11184_v62  ;;  %6205 = vmatprep.mubr.msk.f32.mxu1 %vm7419_vm2, %v11184_v62  ;;  %v6872_v47 = vpack.c.bf16 %v5324_v46, %v5321_v37  ;;  %v5327_v13 = vld [vmem:[%s11097_s8 + $0x6c8] sm:$0xff]  ;;  %v5330_v32 = vld [vmem:[%s11097_s8 + $0x6e0] sm:$0xff]  ;;  %v5345_v46 = vld [vmem:[%s11097_s8 + $0x758] sm:$0xff] }
 0x329   : > { %6845 = vmatprep.subr.bf16.mxu0 %v6844_v50  ;;  %6941 = vmatprep.subr.bf16.mxu1 %v6940_v11  ;;  %v5302_v50 = vld [vmem:[%s11097_s8 + $0x600] sm:$0xff]  ;;  %v6860_v11 = vpack.c.bf16 %v5306_v63, %v5303_v51  ;;  %v6876_v51 = vpack.c.bf16 %v5330_v32, %v5327_v13  ;;  %v5347_v13 = vld [vmem:[%s11097_s8 + $0x768] sm:$0xff] }
 0x32a   : > { %6847 = vmatpush1.bf16.msra.mxu0 %v6846_v15  ;;  %6943 = vmatpush3.bf16.msra.mxu1 %v6942_v21  ;;  %v6862_v15 = vpack.c.bf16 %v5305_v17, %v5302_v50  ;;  %v5312_v21 = vld [vmem:[%s11097_s8 + $0x650] sm:$0xff]  ;;  %v5333_v50 = vld [vmem:[%s11097_s8 + $0x6f8] sm:$0xff] }
 0x32b   : > { %5229 = vmatmul.mubr.msk.f32.gmra.mrb[100].mxu0 %vm2309_vm4, %v405_v61  ;;  %6206 = vmatmul.mubr.msk.f32.gmra.mrb[130].mxu1 %vm2309_vm4, %v405_v61  ;;  %v6864_v4 = vpack.c.bf16 %v5312_v21, %v5309_v60  ;;  %v5315_v61 = vld [vmem:[%s11097_s8 + $0x668] sm:$0xff]  ;;  %v5336_v17 = vld [vmem:[%s11097_s8 + $0x710] sm:$0xff] }
 0x32c   : > { %2455 = vmatprep.mubr.f32.mxu0 %v11184_v62  ;;  %6208 = vmatprep.mubr.msk.f32.mxu1 %vm7419_vm2, %v11184_v62  ;;  %v6880_v60 = vpack.c.bf16 %v5336_v17, %v5333_v50  ;;  %v5354_v50 = vld [vmem:[%s11097_s8 + $0x7a0] sm:$0xff] }
 0x32d   : > { %6849 = vmatprep.subr.bf16.mxu0 %v6848_v7  ;;  %6945 = vmatprep.subr.bf16.mxu1 %v6944_v3  ;;  %v5318_v7 = vld [vmem:[%s11097_s8 + $0x680] sm:$0xff] }
 0x32e   : > { %6851 = vmatpush1.bf16.msra.mxu0 %v6850_v24  ;;  %6947 = vmatpush3.bf16.msra.mxu1 %v6946_v40  ;;  %v5314_v3 = vld [vmem:[%s11097_s8 + $0x660] sm:$0xff]  ;;  %v5317_v24 = vld [vmem:[%s11097_s8 + $0x678] sm:$0xff]  ;;  %v6868_v44 = vpack.c.bf16 %v5318_v7, %v5315_v61  ;;  %v5343_v61 = vld [vmem:[%s11097_s8 + $0x748] sm:$0xff] }
 0x32f   : > { %5230 = vmatmul.mubr.msk.f32.gmra.mrb[102].mxu0 %vm2309_vm4, %v406_v38  ;;  %6209 = vmatmul.mubr.msk.f32.gmra.mrb[132].mxu1 %vm2309_vm4, %v406_v38  ;;  %v6870_v40 = vpack.c.bf16 %v5317_v24, %v5314_v3  ;;  %v5320_v38 = vld [vmem:[%s11097_s8 + $0x690] sm:$0xff]  ;;  %v5338_v7 = vld [vmem:[%s11097_s8 + $0x720] sm:$0xff]  ;;  %v5341_v3 = vld [vmem:[%s11097_s8 + $0x738] sm:$0xff] }
 0x330   : > { %2461 = vmatprep.mubr.f32.mxu0 %v11184_v62  ;;  %6211 = vmatprep.mubr.msk.f32.mxu1 %vm7419_vm2, %v11184_v62 }
 0x331   : > { %6853 = vmatprep.subr.bf16.mxu0 %v6852_v27  ;;  %v5323_v27 = vld [vmem:[%s11097_s8 + $0x6a8] sm:$0xff] }
 0x332   : > { %6855 = vmatpush1.bf16.msra.mxu0 %v6854_v18  ;;  %v411_v18 = vld [vmem:[%s8894_s23 + $0x58] sm:$0xff]  ;;  %v6874_v8 = vpack.c.bf16 %v5323_v27, %v5320_v38  ;;  %v5348_v38 = vld [vmem:[%s11097_s8 + $0x770] sm:$0xff]  ;;  %v5346_v27 = vld [vmem:[%s11097_s8 + $0x760] sm:$0xff] }
 0x333   : > { %5231 = vmatmul.mubr.msk.f32.gmra.mrb[104].mxu0 %vm2309_vm4, %v407_v5  ;;  %6212 = vmatmul.mubr.msk.f32.gmra.mrb[134].mxu1 %vm2309_vm4, %v407_v5  ;;  %v5326_v5 = vld [vmem:[%s11097_s8 + $0x6c0] sm:$0xff] }
 0x334   : > { %2467 = vmatprep.mubr.f32.mxu0 %v11184_v62  ;;  %6214 = vmatprep.mubr.msk.f32.mxu1 %vm7419_vm2, %v11184_v62 }
 0x335   : > { %6857 = vmatprep.subr.bf16.mxu0 %v6856_v49  ;;  %v5329_v49 = vld [vmem:[%s11097_s8 + $0x6d8] sm:$0xff] }
 0x336   : > { %6859 = vmatpush1.bf16.msra.mxu0 %v6858_v16  ;;  %v412_v16 = vld [vmem:[%s8894_s23 + $0x60] sm:$0xff]  ;;  %v6878_v63 = vpack.c.bf16 %v5329_v49, %v5326_v5 }
 0x337   : > { %5232 = vmatmul.mubr.msk.f32.gmra.mrb[106].mxu0 %vm2309_vm4, %v408_v0  ;;  %6215 = vmatmul.mubr.msk.f32.gmra.mrb[136].mxu1 %vm2309_vm4, %v408_v0  ;;  %v5332_v0 = vld [vmem:[%s11097_s8 + $0x6f0] sm:$0xff]  ;;  %v5298_v49 = vld [vmem:[%s11097_s8 + $0x5e0] sm:$0xff] }
 0x338   : > { %2473 = vmatprep.mubr.f32.mxu0 %v11184_v62  ;;  %6217 = vmatprep.mubr.msk.f32.mxu1 %vm7419_vm2, %v11184_v62 }
 0x339   : > { %6861 = vmatprep.subr.bf16.mxu0 %v6860_v11  ;;  %v5335_v11 = vld [vmem:[%s11097_s8 + $0x708] sm:$0xff] }
 0x33a   : > { %6863 = vmatpush1.bf16.msra.mxu0 %v6862_v15  ;;  %v413_v15 = vld [vmem:[%s8894_s23 + $0x68] sm:$0xff]  ;;  %v6882_v21 = vpack.c.bf16 %v5335_v11, %v5332_v0  ;;  %v9283_v0 = vld [vmem:[%s11098_s9] sm:$0x7] }
 0x33b   : > { %5233 = vmatmul.mubr.msk.f32.gmra.mrb[108].mxu0 %vm2309_vm4, %v409_v55  ;;  %6218 = vmatmul.mubr.msk.f32.gmra.mrb[138].mxu1 %vm2309_vm4, %v409_v55  ;;  %v5342_v55 = vld [vmem:[%s11097_s8 + $0x740] sm:$0xff]  ;;  %v9287_v11 = vrot.slane %v9283_v0, %v7966_v26 }
 0x33c   : > { %2479 = vmatprep.mubr.f32.mxu0 %v11184_v62  ;;  %6220 = vmatprep.mubr.msk.f32.mxu1 %vm7419_vm2, %v11184_v62 }
 0x33d   : > { %6865 = vmatprep.subr.bf16.mxu0 %v6864_v4  ;;  %v5340_v4 = vld [vmem:[%s11097_s8 + $0x730] sm:$0xff] }
 0x33e   : > { %6867 = vmatpush1.bf16.msra.mxu0 %v6866_v19  ;;  %v6884_v19 = vpack.c.bf16 %v5342_v55, %v5339_v41  ;;  %v6948_v24 = vpack.c.bf16 %v5343_v61, %v5340_v4 }
 0x33f   : > { %5234 = vmatmul.mubr.msk.f32.gmra.mrb[110].mxu0 %vm2309_vm4, %v410_v42  ;;  %6221 = vmatmul.mubr.msk.f32.gmra.mrb[140].mxu1 %vm2309_vm4, %v410_v42  ;;  %v6886_v42 = vpack.c.bf16 %v5341_v3, %v5338_v7  ;;  %v5353_v7 = vld [vmem:[%s11097_s8 + $0x798] sm:$0xff]  ;;  %v5352_v3 = vld [vmem:[%s11097_s8 + $0x790] sm:$0xff] }
 0x340   : > { %2485 = vmatprep.mubr.f32.mxu0 %v11184_v62  ;;  %6223 = vmatprep.mubr.msk.f32.mxu1 %vm7419_vm2, %v11184_v62 }
 0x341   : > { %6869 = vmatprep.subr.bf16.mxu0 %v6868_v44  ;;  %v5292_v44 = vld [vmem:[%s11097_s8 + $0x5b0] sm:$0xff]  ;;  %6949 = vmatprep.subr.bf16.mxu1 %v6948_v24  ;;  %v5355_v24 = vld [vmem:[%s11097_s8 + $0x7a8] sm:$0xff] }
 0x342   : > { %6871 = vmatpush1.bf16.msra.mxu0 %v6870_v40  ;;  %v5295_v40 = vld [vmem:[%s11097_s8 + $0x5c8] sm:$0xff] }
 0x343   : > { %5235 = vmatmul.mubr.msk.f32.gmra.mrb[112].mxu0 %vm2309_vm4, %v411_v18  ;;  %6224 = vmatmul.mubr.msk.f32.gmra.mrb[142].mxu1 %vm2309_vm4, %v411_v18  ;;  %v6950_v37 = vpack.c.bf16 %v5295_v40, %v5292_v44  ;;  %v6888_v18 = vpack.c.bf16 %v5348_v38, %v5345_v46 }
 0x344   : > { %2491 = vmatprep.mubr.f32.mxu0 %v11184_v62  ;;  %6226 = vmatprep.mubr.msk.f32.mxu1 %vm7419_vm2, %v11184_v62 }
 0x345   : > { %6873 = vmatprep.subr.bf16.mxu0 %v6872_v47  ;;  %6951 = vmatpush3.bf16.msra.mxu1 %v6950_v37  ;;  %v5349_v47 = vld [vmem:[%s11097_s8 + $0x778] sm:$0xff]  ;;  %v5360_v37 = vld [vmem:[%s11097_s8 + $0x7d0] sm:$0xff] }
 0x346   : > { %6875 = vmatpush1.bf16.msra.mxu0 %v6874_v8  ;;  %v5344_v8 = vld [vmem:[%s11097_s8 + $0x750] sm:$0xff]  ;;  %v6952_v32 = vpack.c.bf16 %v5349_v47, %v5346_v27 }
 0x347   : > { %5236 = vmatmul.mubr.msk.f32.gmra.mrb[114].mxu0 %vm2309_vm4, %v412_v16  ;;  %6227 = vmatmul.mubr.msk.f32.gmra.mrb[144].mxu1 %vm2309_vm4, %v412_v16  ;;  %v6890_v5 = vpack.c.bf16 %v5347_v13, %v5344_v8  ;;  %v5301_v16 = vld [vmem:[%s11097_s8 + $0x5f8] sm:$0xff]  ;;  %v5356_v8 = vld [vmem:[%s11097_s8 + $0x7b0] sm:$0xff]  ;;  %v6957_v13 = vpack.c.bf16 %v5355_v24, %v5352_v3 }
 0x348   : > { %2497 = vmatprep.mubr.f32.mxu0 %v11184_v62  ;;  %6229 = vmatprep.mubr.msk.f32.mxu1 %vm7419_vm2, %v11184_v62 }
 0x349   : > { %6877 = vmatprep.subr.bf16.mxu0 %v6876_v51  ;;  %v6954_v51 = vpack.c.bf16 %v5301_v16, %v5298_v49  ;;  %6953 = vmatprep.subr.bf16.mxu1 %v6952_v32  ;;  %v5359_v16 = vld [vmem:[%s11097_s8 + $0x7c8] sm:$0xff] }
 0x34a   : > { %6879 = vmatpush1.bf16.msra.mxu0 %v6878_v63  ;;  %v5351_v63 = vld [vmem:[%s11097_s8 + $0x788] sm:$0xff] }
 0x34b   : > { %5237 = vmatmul.mubr.msk.f32.gmra.mrb[116].mxu0 %vm2309_vm4, %v413_v15  ;;  %6230 = vmatmul.mubr.msk.f32.gmra.mrb[146].mxu1 %vm2309_vm4, %v413_v15  ;;  %v6892_v17 = vpack.c.bf16 %v5354_v50, %v5351_v63  ;;  %v9291_v15 = vrot.slane %v9283_v0, %v7972_v39  ;;  %v5361_v63 = vld [vmem:[%s11097_s8 + $0x7d8] sm:$0xff] }
 0x34c   : > { %2503 = vmatprep.mubr.f32.mxu0 %v11184_v62  ;;  %6232 = vmatprep.mubr.msk.f32.mxu1 %vm7419_vm2, %v11184_v62 }
 0x34d   : > { %6881 = vmatprep.subr.bf16.mxu0 %v6880_v60  ;;  %6955 = vmatpush3.bf16.msra.mxu1 %v6954_v51  ;;  %v5358_v51 = vld [vmem:[%s11097_s8 + $0x7c0] sm:$0xff] }
 0x34e   : > { %6883 = vmatpush1.bf16.msra.mxu0 %v6882_v21  ;;  %6956 = vmatprep.subr.bf16.mxu1 %v11183_v57  ;;  %v6960_v3 = vpack.c.bf16 %v5361_v63, %v5358_v51  ;;  %v5368_v51 = vld [vmem:[%s11097_s8 + $0x810] sm:$0xff] }
 0x34f   : > { %5238 = vmatmul.mubr.msk.f32.gmra.mrb[118].mxu0 %vm2309_vm4, %v414_v28  ;;  %6233 = vmatmul.mubr.msk.f32.gmra.mrb[148].mxu1 %vm2309_vm4, %v414_v28 }
 0x350   : > { %6885 = vmatprep.subr.bf16.mxu0 %v6884_v19  ;;  %v5350_v19 = vld [vmem:[%s11097_s8 + $0x780] sm:$0xff] }
 0x352   : > { %6887 = vmatpush1.bf16.msra.mxu0 %v6886_v42 }
 0x353   : > { %6889 = vmatprep.subr.bf16.mxu0 %v6888_v18 }
 0x356   : > { %6891 = vmatpush1.bf16.msra.mxu0 %v6890_v5 }
 0x357   : > { %6893 = vmatprep.subr.bf16.mxu0 %v6892_v17 }
 0x3ea   : > { %v2421_v60 = vpop.f32.mrb[90].mxu0  ;;  %v9293_v21 = vpop.f32.mrb[120].mxu1 }
 0x3eb   : > { %v2422_v28 = vadd.f32 %v2421_v60, %v9287_v11  ;;  %v2423_v41 = vpop.f32.mrb[91].mxu0  ;;  %v6192_v55 = vpop.f32.mrb[121].mxu1 }
 0x3ec   : > { %v2424_v4 = vadd.f32 %v2423_v41, %v9291_v15 }
 0x3ed   : > { %v2650_v61 = vadd.f32 %v2422_v28, %v8394_v43  ;;  %v5357_v43 = vld [vmem:[%s11097_s8 + $0x7b8] sm:$0xff]  ;;  %v5366_v28 = vld [vmem:[%s11097_s8 + $0x800] sm:$0xff] }
 0x3ee   : > { %v2651_v42 = vadd.f32 %v2424_v4, %v8389_v34  ;;  %v2427_v44 = vpop.f32.mrb[92].mxu0  ;;  %v9311_v40 = vpop.f32.mrb[122].mxu1  ;;  %v6894_v34 = vpack.c.bf16 %v5353_v7, %v5350_v19  ;;  %v6896_v49 = vpack.c.bf16 %v5360_v37, %v5357_v43  ;;  %v5362_v7 = vld [vmem:[%s11097_s8 + $0x7e0] sm:$0xff]  ;;  %v5365_v43 = vld [vmem:[%s11097_s8 + $0x7f8] sm:$0xff]  ;;  %v5364_v37 = vld [vmem:[%s11097_s8 + $0x7f0] sm:$0xff] }
 0x3ef   : > { %v2428_v46 = vadd.f32 %v2427_v44, %v9287_v11  ;;  %v2429_v38 = vpop.f32.mrb[93].mxu0  ;;  %v6195_v27 = vpop.f32.mrb[123].mxu1  ;;  %v9326_v32 = vmax.f32 %v2650_v61, 0.0  ;;  %v6898_v61 = vpack.c.bf16 %v5359_v16, %v5356_v8  ;;  %v6902_v16 = vpack.c.bf16 %v5365_v43, %v5362_v7  ;;  %v5378_v7 = vld [vmem:[%s11097_s8 + $0x860] sm:$0xff] }
 0x3f0   : > { %v9320_v18 = vmax.f32 %v2651_v42, 0.0  ;;  %v2430_v47 = vadd.f32 %v2429_v38, %v9291_v15 }
 0x3f1   : > { %v2653_v5 = vadd.f32 %v2428_v46, %v8429_v14  ;;  %v5363_v14 = vld [vmem:[%s11097_s8 + $0x7e8] sm:$0xff] }
 0x3f2   : > { %v2654_v50 = vadd.f32 %v2430_v47, %v8420_v58  ;;  %v2433_v17 = vpop.f32.mrb[94].mxu0  ;;  %v9339_v60 = vpop.f32.mrb[124].mxu1  ;;  %2949 = vmatprep.mubr.f32.mxu0 %v9320_v18  ;;  %3259 = vmatprep.mubr.f32.mxu1 %v9320_v18  ;;  %v6900_v44 = vpack.c.bf16 %v5366_v28, %v5363_v14  ;;  %v5367_v46 = vld [vmem:[%s11097_s8 + $0x808] sm:$0xff]  ;;  %v5369_v47 = vld [vmem:[%s11097_s8 + $0x818] sm:$0xff] }
 0x3f3   : > { %v2434_v41 = vadd.f32 %v2433_v17, %v9287_v11  ;;  %v2435_v55 = vpop.f32.mrb[95].mxu0  ;;  %2950 = vmatmul.mubr.f32.vlgmr.msra.gmra.mrb[120].mxu0 %v9326_v32  ;;  %3260 = vmatmul.mubr.f32.vlgmr.msra.gmra.mrb[150].mxu1 %v9326_v32  ;;  %v6198_v58 = vpop.f32.mrb[125].mxu1  ;;  %v9358_v24 = vmax.f32 %v2653_v5, 0.0  ;;  %v6963_v63 = vpack.c.bf16 %v5367_v46, %v5364_v37  ;;  %v5371_v28 = vld [vmem:[%s11097_s8 + $0x828] sm:$0xff]  ;;  %v5374_v46 = vld [vmem:[%s11097_s8 + $0x840] sm:$0xff] }
 0x3f4   : > { %v9352_v4 = vmax.f32 %v2654_v50, 0.0  ;;  %v2436_v19 = vadd.f32 %v2435_v55, %v9291_v15  ;;  %6895 = vmatpush1.bf16.msra.mxu0 %v6894_v34  ;;  %6958 = vmatpush3.bf16.msra.mxu1 %v6957_v13  ;;  %v5372_v34 = vld [vmem:[%s11097_s8 + $0x830] sm:$0xff]  ;;  %v5373_v55 = vld [vmem:[%s11097_s8 + $0x838] sm:$0xff]  ;;  %v6906_v37 = vpack.c.bf16 %v5371_v28, %v5368_v51 }
 0x3f5   : > { %v2656_v42 = vadd.f32 %v2434_v41, %v8461_v12  ;;  %6897 = vmatprep.subr.bf16.mxu0 %v6896_v49  ;;  %6959 = vmatprep.subr.bf16.mxu1 %v11183_v57  ;;  %v6904_v14 = vpack.c.bf16 %v5372_v34, %v5369_v47  ;;  %v5370_v41 = vld [vmem:[%s11097_s8 + $0x820] sm:$0xff]  ;;  %v5381_v51 = vld [vmem:[%s11097_s8 + $0x878] sm:$0xff] }
 0x3f6   : > { %v2657_v38 = vadd.f32 %v2436_v19, %v8452_v31  ;;  %v2439_v27 = vpop.f32.mrb[96].mxu0  ;;  %v9372_v12 = vpop.f32.mrb[126].mxu1  ;;  %2955 = vmatprep.mubr.f32.mxu0 %v9352_v4  ;;  %3264 = vmatprep.mubr.f32.mxu1 %v9352_v4 }
 0x3f7   : > { %v2440_v8 = vadd.f32 %v2439_v27, %v9287_v11  ;;  %v2441_v13 = vpop.f32.mrb[97].mxu0  ;;  %2956 = vmatmul.mubr.f32.gmra.mrb[122].mxu0 %v9358_v24  ;;  %3265 = vmatmul.mubr.f32.gmra.mrb[152].mxu1 %v9358_v24  ;;  %v6201_v31 = vpop.f32.mrb[127].mxu1  ;;  %v9391_v50 = vmax.f32 %v2656_v42, 0.0 }
 0x3f8   : > { %v9385_v5 = vmax.f32 %v2657_v38, 0.0  ;;  %v2442_v49 = vadd.f32 %v2441_v13, %v9291_v15  ;;  %6899 = vmatpush1.bf16.msra.mxu0 %v6898_v61  ;;  %6961 = vmatpush3.bf16.msra.mxu1 %v6960_v3  ;;  %v5375_v61 = vld [vmem:[%s11097_s8 + $0x848] sm:$0xff]  ;;  %v6966_v38 = vpack.c.bf16 %v5373_v55, %v5370_v41  ;;  %v5376_v13 = vld [vmem:[%s11097_s8 + $0x850] sm:$0xff] }
 0x3f9   : > { %v2659_v17 = vadd.f32 %v2440_v8, %v8493_v2  ;;  %6901 = vmatprep.subr.bf16.mxu0 %v6900_v44  ;;  %6962 = vmatprep.subr.bf16.mxu1 %v11183_v57  ;;  %v6908_v34 = vpack.c.bf16 %v5378_v7, %v5375_v61  ;;  %v5377_v8 = vld [vmem:[%s11097_s8 + $0x858] sm:$0xff]  ;;  %v5379_v31 = vld [vmem:[%s11097_s8 + $0x868] sm:$0xff] }
 0x3fa   : > { %v2660_v58 = vadd.f32 %v2442_v49, %v8484_v53  ;;  %v2445_v19 = vpop.f32.mrb[98].mxu0  ;;  %v9405_v2 = vpop.f32.mrb[128].mxu1  ;;  %2961 = vmatprep.mubr.f32.mxu0 %v9385_v5  ;;  %3269 = vmatprep.mubr.f32.mxu1 %v9385_v5  ;;  %v6910_v55 = vpack.c.bf16 %v5377_v8, %v5374_v46 }
 0x3fb   : > { %v2446_v3 = vadd.f32 %v2445_v19, %v9287_v11  ;;  %v2447_v42 = vpop.f32.mrb[99].mxu0  ;;  %2962 = vmatmul.mubr.f32.gmra.mrb[124].mxu0 %v9391_v50  ;;  %3270 = vmatmul.mubr.f32.gmra.mrb[154].mxu1 %v9391_v50  ;;  %v6204_v53 = vpop.f32.mrb[129].mxu1  ;;  %v9424_v27 = vmax.f32 %v2659_v17, 0.0  ;;  %v5380_v19 = vld [vmem:[%s11097_s8 + $0x870] sm:$0xff] }
 0x3fc   : > { %v9418_v44 = vmax.f32 %v2660_v58, 0.0  ;;  %v2448_v43 = vadd.f32 %v2447_v42, %v9291_v15  ;;  %6903 = vmatpush1.bf16.msra.mxu0 %v6902_v16  ;;  %6964 = vmatpush3.bf16.msra.mxu1 %v6963_v63  ;;  %v5384_v63 = vld [vmem:[%s11097_s8 + $0x890] sm:$0xff]  ;;  %v6969_v58 = vpack.c.bf16 %v5379_v31, %v5376_v13  ;;  %v5383_v42 = vld [vmem:[%s11097_s8 + $0x888] sm:$0xff]  ;;  %v5382_v53 = vld [vmem:[%s11097_s8 + $0x880] sm:$0xff] }
 0x3fd   : > { %v2662_v47 = vadd.f32 %v2446_v3, %v8525_v36  ;;  %6905 = vmatprep.subr.bf16.mxu0 %v6904_v14  ;;  %6965 = vmatprep.subr.bf16.mxu1 %v11183_v57  ;;  %v6912_v3 = vpack.c.bf16 %v5384_v63, %v5381_v51  ;;  %v5386_v51 = vld [vmem:[%s11097_s8 + $0x8a0] sm:$0xff] }
 0x3fe   : > { %v2663_v49 = vadd.f32 %v2448_v43, %v8516_v25  ;;  %v2451_v16 = vpop.f32.mrb[100].mxu0  ;;  %v9438_v36 = vpop.f32.mrb[130].mxu1  ;;  %2967 = vmatprep.mubr.f32.mxu0 %v9418_v44  ;;  %3274 = vmatprep.mubr.f32.mxu1 %v9418_v44  ;;  %v5385_v43 = vld [vmem:[%s11097_s8 + $0x898] sm:$0xff] }
 0x3ff   : > { %v2452_v17 = vadd.f32 %v2451_v16, %v9287_v11  ;;  %v2453_v14 = vpop.f32.mrb[101].mxu0  ;;  %2968 = vmatmul.mubr.f32.gmra.mrb[126].mxu0 %v9424_v27  ;;  %3275 = vmatmul.mubr.f32.gmra.mrb[156].mxu1 %v9424_v27  ;;  %v6207_v25 = vpop.f32.mrb[131].mxu1  ;;  %v9457_v61 = vmax.f32 %v2662_v47, 0.0  ;;  %v5390_v47 = vld [vmem:[%s11097_s8 + $0x8c0] sm:$0xff]  ;;  %v6972_v16 = vpack.c.bf16 %v5385_v43, %v5382_v53 }
 0x400   : > { %v9451_v28 = vmax.f32 %v2663_v49, 0.0  ;;  %v2454_v41 = vadd.f32 %v2453_v14, %v9291_v15  ;;  %6907 = vmatpush1.bf16.msra.mxu0 %v6906_v37  ;;  %6967 = vmatpush3.bf16.msra.mxu1 %v6966_v38  ;;  %v5387_v38 = vld [vmem:[%s11097_s8 + $0x8a8] sm:$0xff]  ;;  %v6914_v49 = vpack.c.bf16 %v5383_v42, %v5380_v19  ;;  %v5389_v25 = vld [vmem:[%s11097_s8 + $0x8b8] sm:$0xff] }
 0x401   : > { %v2665_v7 = vadd.f32 %v2452_v17, %v8557_v10  ;;  %6909 = vmatprep.subr.bf16.mxu0 %v6908_v34  ;;  %6968 = vmatprep.subr.bf16.mxu1 %v11183_v57  ;;  %v6916_v14 = vpack.c.bf16 %v5390_v47, %v5387_v38  ;;  %v5392_v47 = vld [vmem:[%s11097_s8 + $0x8d0] sm:$0xff] }
 0x402   : > { %v2666_v37 = vadd.f32 %v2454_v41, %v8548_v52  ;;  %v2457_v46 = vpop.f32.mrb[102].mxu0  ;;  %v9471_v10 = vpop.f32.mrb[132].mxu1  ;;  %2973 = vmatprep.mubr.f32.mxu0 %v9451_v28  ;;  %3279 = vmatprep.mubr.f32.mxu1 %v9451_v28  ;;  %v5388_v41 = vld [vmem:[%s11097_s8 + $0x8b0] sm:$0xff] }
 0x403   : > { %v2458_v34 = vadd.f32 %v2457_v46, %v9287_v11  ;;  %v2459_v8 = vpop.f32.mrb[103].mxu0  ;;  %2974 = vmatmul.mubr.f32.gmra.mrb[128].mxu0 %v9457_v61  ;;  %3280 = vmatmul.mubr.f32.gmra.mrb[158].mxu1 %v9457_v61  ;;  %v6210_v52 = vpop.f32.mrb[133].mxu1  ;;  %v9490_v63 = vmax.f32 %v2665_v7, 0.0  ;;  %v5393_v7 = vld [vmem:[%s11097_s8 + $0x8d8] sm:$0xff]  ;;  %v6918_v46 = vpack.c.bf16 %v5389_v25, %v5386_v51 }
 0x404   : > { %v9484_v13 = vmax.f32 %v2666_v37, 0.0  ;;  %v2460_v31 = vadd.f32 %v2459_v8, %v9291_v15  ;;  %6911 = vmatpush1.bf16.msra.mxu0 %v6910_v55  ;;  %6970 = vmatpush3.bf16.msra.mxu1 %v6969_v58  ;;  %v5391_v55 = vld [vmem:[%s11097_s8 + $0x8c8] sm:$0xff] }
 0x405   : > { %v2668_v17 = vadd.f32 %v2458_v34, %v8589_v33  ;;  %6913 = vmatprep.subr.bf16.mxu0 %v6912_v3  ;;  %6971 = vmatprep.subr.bf16.mxu1 %v11183_v57  ;;  %v5396_v3 = vld [vmem:[%s11097_s8 + $0x8f0] sm:$0xff]  ;;  %v6975_v38 = vpack.c.bf16 %v5391_v55, %v5388_v41 }
 0x406   : > { %v2669_v58 = vadd.f32 %v2460_v31, %v8580_v30  ;;  %v2463_v19 = vpop.f32.mrb[104].mxu0  ;;  %v9504_v33 = vpop.f32.mrb[134].mxu1  ;;  %2979 = vmatprep.mubr.f32.mxu0 %v9484_v13  ;;  %3284 = vmatprep.mubr.f32.mxu1 %v9484_v13  ;;  %v6920_v52 = vpack.c.bf16 %v5396_v3, %v5393_v7  ;;  %v5395_v31 = vld [vmem:[%s11097_s8 + $0x8e8] sm:$0xff] }
 0x407   : > { %v2464_v42 = vadd.f32 %v2463_v19, %v9287_v11  ;;  %v2465_v53 = vpop.f32.mrb[105].mxu0  ;;  %2980 = vmatmul.mubr.f32.gmra.mrb[130].mxu0 %v9490_v63  ;;  %3285 = vmatmul.mubr.f32.gmra.mrb[160].mxu1 %v9490_v63  ;;  %v6213_v30 = vpop.f32.mrb[135].mxu1  ;;  %v9523_v34 = vmax.f32 %v2668_v17, 0.0 }
 0x408   : > { %v9517_v43 = vmax.f32 %v2669_v58, 0.0  ;;  %v2466_v37 = vadd.f32 %v2465_v53, %v9291_v15  ;;  %6915 = vmatpush1.bf16.msra.mxu0 %v6914_v49  ;;  %6973 = vmatpush3.bf16.msra.mxu1 %v6972_v16  ;;  %v5394_v49 = vld [vmem:[%s11097_s8 + $0x8e0] sm:$0xff]  ;;  %v5397_v16 = vld [vmem:[%s11097_s8 + $0x8f8] sm:$0xff] }
 0x409   : > { %v2671_v8 = vadd.f32 %v2464_v42, %v8612_v20  ;;  %6917 = vmatprep.subr.bf16.mxu0 %v6916_v14  ;;  %6974 = vmatprep.subr.bf16.mxu1 %v11183_v57  ;;  %v6978_v19 = vpack.c.bf16 %v5397_v16, %v5394_v49 }
 0x40a   : > { %v2672_v51 = vadd.f32 %v2466_v37, %v8606_v54  ;;  %v2469_v17 = vpop.f32.mrb[106].mxu0  ;;  %v9537_v20 = vpop.f32.mrb[136].mxu1  ;;  %2985 = vmatprep.mubr.f32.mxu0 %v9517_v43  ;;  %3289 = vmatprep.mubr.f32.mxu1 %v9517_v43  ;;  %v6922_v54 = vpack.c.bf16 %v5395_v31, %v5392_v47 }
 0x40b   : > { %v2470_v14 = vadd.f32 %v2469_v17, %v9287_v11  ;;  %v2471_v25 = vpop.f32.mrb[107].mxu0  ;;  %2986 = vmatmul.mubr.f32.gmra.mrb[132].mxu0 %v9523_v34  ;;  %3290 = vmatmul.mubr.f32.gmra.mrb[162].mxu1 %v9523_v34  ;;  %v6216_v41 = vpop.f32.mrb[137].mxu1  ;;  %v9547_v7 = vmax.f32 %v2671_v8, 0.0 }
 0x40c   : > { %v9544_v55 = vmax.f32 %v2672_v51, 0.0  ;;  %v2472_v58 = vadd.f32 %v2471_v25, %v9291_v15  ;;  %6919 = vmatpush1.bf16.msra.mxu0 %v6918_v46  ;;  %6976 = vmatpush3.bf16.msra.mxu1 %v6975_v38 }
 0x40d   : > { %v2674_v3 = vadd.f32 %v2470_v14, %v8626_v1  ;;  %6921 = vmatprep.subr.bf16.mxu0 %v6920_v52  ;;  %6977 = vmatprep.subr.bf16.mxu1 %v11183_v57 }
 0x40e   : > { %v2675_v42 = vadd.f32 %v2472_v58, %v8620_v29  ;;  %v2475_v53 = vpop.f32.mrb[108].mxu0  ;;  %v9552_v30 = vpop.f32.mrb[138].mxu1  ;;  %2991 = vmatprep.mubr.f32.mxu0 %v9544_v55  ;;  %3294 = vmatprep.mubr.f32.mxu1 %v9544_v55 }
 0x40f   : > { %v2476_v37 = vadd.f32 %v2475_v53, %v9287_v11  ;;  %v2477_v46 = vpop.f32.mrb[109].mxu0  ;;  %2992 = vmatmul.mubr.f32.gmra.mrb[134].mxu0 %v9547_v7  ;;  %3295 = vmatmul.mubr.f32.gmra.mrb[164].mxu1 %v9547_v7  ;;  %v6219_v1 = vpop.f32.mrb[139].mxu1  ;;  %v9562_v29 = vmax.f32 %v2674_v3, 0.0 }
 0x410   : > { %v9559_v38 = vmax.f32 %v2675_v42, 0.0  ;;  %v2478_v47 = vadd.f32 %v2477_v46, %v9291_v15  ;;  %6923 = vmatpush1.bf16.msra.mxu0 %v6922_v54  ;;  %6979 = vmatpush3.bf16.msra.mxu1 %v6978_v19 }
 0x411   : > { %v2677_v8 = vadd.f32 %v2476_v37, %v8640_v35  ;;  %7008 = vmatprep.subr.bf16.mxu1 %v11183_v57 }
 0x412   : > { %v2678_v52 = vadd.f32 %v2478_v47, %v8634_v59  ;;  %v2481_v31 = vpop.f32.mrb[110].mxu0  ;;  %v9567_v49 = vpop.f32.mrb[140].mxu1  ;;  %2997 = vmatprep.mubr.f32.mxu0 %v9559_v38  ;;  %3299 = vmatprep.mubr.f32.mxu1 %v9559_v38 }
 0x413   : > { %v2482_v16 = vadd.f32 %v2481_v31, %v9287_v11  ;;  %v2483_v51 = vpop.f32.mrb[111].mxu0  ;;  %2998 = vmatmul.mubr.f32.gmra.mrb[136].mxu0 %v9562_v29  ;;  %3300 = vmatmul.mubr.f32.gmra.mrb[166].mxu1 %v9562_v29  ;;  %v6222_v17 = vpop.f32.mrb[141].mxu1  ;;  %v9577_v59 = vmax.f32 %v2677_v8, 0.0 }
 0x414   : > { %v9574_v35 = vmax.f32 %v2678_v52, 0.0  ;;  %v2484_v14 = vadd.f32 %v2483_v51, %v9291_v15 }
 0x415   : > { %v2680_v25 = vadd.f32 %v2482_v16, %v8653_v22 }
 0x416   : > { %v2681_v41 = vadd.f32 %v2484_v14, %v8647_v56  ;;  %v2487_v58 = vpop.f32.mrb[112].mxu0  ;;  %v9581_v54 = vpop.f32.mrb[142].mxu1  ;;  %3003 = vmatprep.mubr.f32.mxu0 %v9574_v35  ;;  %3304 = vmatprep.mubr.f32.mxu1 %v9574_v35 }
 0x417   : > { %v2488_v19 = vadd.f32 %v2487_v58, %v9287_v11  ;;  %v2489_v3 = vpop.f32.mrb[113].mxu0  ;;  %3004 = vmatmul.mubr.f32.gmra.mrb[138].mxu0 %v9577_v59  ;;  %3305 = vmatmul.mubr.f32.gmra.mrb[168].mxu1 %v9577_v59  ;;  %v6225_v42 = vpop.f32.mrb[143].mxu1  ;;  %v9591_v56 = vmax.f32 %v2680_v25, 0.0 }
 0x418   : > { %v9588_v53 = vmax.f32 %v2681_v41, 0.0  ;;  %v2490_v22 = vadd.f32 %v2489_v3, %v9291_v15 }
 0x419   : > { %v2683_v37 = vadd.f32 %v2488_v19, %v8666_v9 }
 0x41a   : > { %v2684_v46 = vadd.f32 %v2490_v22, %v8660_v23  ;;  %v2493_v1 = vpop.f32.mrb[114].mxu0  ;;  %v9595_v47 = vpop.f32.mrb[144].mxu1  ;;  %3009 = vmatprep.mubr.f32.mxu0 %v9588_v53  ;;  %3309 = vmatprep.mubr.f32.mxu1 %v9588_v53  ;;  %v11185_v22 = vld [vmem:[#allocation4_spill] sm:$0xff] }
 0x41b   : > { %v2494_v8 = vadd.f32 %v2493_v1, %v9287_v11  ;;  %v2495_v52 = vpop.f32.mrb[115].mxu0  ;;  %3010 = vmatmul.mubr.f32.gmra.mrb[140].mxu0 %v9591_v56  ;;  %3310 = vmatmul.mubr.f32.gmra.mrb[170].mxu1 %v9591_v56  ;;  %v6228_v31 = vpop.f32.mrb[145].mxu1  ;;  %v9605_v23 = vmax.f32 %v2683_v37, 0.0 }
 0x41c   : > { %v9602_v16 = vmax.f32 %v2684_v46, 0.0  ;;  %v2496_v9 = vadd.f32 %v2495_v52, %v9291_v15  ;;  %v11186_v46 = vld [vmem:[#allocation3_spill] sm:$0xff] }
 0x41d   : > { %v2686_v51 = vadd.f32 %v2494_v8, %v8682_v45 }
 0x41e   : > { %v2687_v17 = vadd.f32 %v2496_v9, %v8673_v48  ;;  %v2499_v14 = vpop.f32.mrb[116].mxu0  ;;  %v9609_v25 = vpop.f32.mrb[146].mxu1  ;;  %3015 = vmatprep.mubr.f32.mxu0 %v9602_v16  ;;  %3314 = vmatprep.mubr.f32.mxu1 %v9602_v16  ;;  %v9621_v48 = vrot.slane %v9283_v0, %v8676_v6 }
 0x41f   : > { %v2500_v41 = vadd.f32 %v2499_v14, %v9287_v11  ;;  %v2501_v58 = vpop.f32.mrb[117].mxu0  ;;  %3016 = vmatmul.mubr.f32.gmra.mrb[142].mxu0 %v9605_v23  ;;  %3315 = vmatmul.mubr.f32.gmra.mrb[172].mxu1 %v9605_v23  ;;  %v6231_v19 = vpop.f32.mrb[147].mxu1  ;;  %v9623_v42 = vmax.f32 %v2686_v51, 0.0 }
 0x420   : > { %v9616_v3 = vmax.f32 %v2687_v17, 0.0  ;;  %v2502_v45 = vadd.f32 %v2501_v58, %v9291_v15  ;;  %v2577_v14 = vadd.f32 %v9293_v21, %v9621_v48  ;;  %v11189_v58 = vld [vmem:[#allocation6_spill] sm:$0xff]  ;;  %v2582_v21 = vadd.f32 %v9311_v40, %v9621_v48 }
 0x421   : > { %v2689_v37 = vadd.f32 %v2500_v41, %v11185_v22  ;;  %v2587_v40 = vadd.f32 %v9339_v60, %v9621_v48 }
 0x422   : > { %v2690_v1 = vadd.f32 %v2502_v45, %v11186_v46  ;;  %v2505_v8 = vpop.f32.mrb[118].mxu0  ;;  %v9627_v52 = vpop.f32.mrb[148].mxu1  ;;  %3021 = vmatprep.mubr.f32.mxu0 %v9616_v3  ;;  %3319 = vmatprep.mubr.f32.mxu1 %v9616_v3  ;;  %v11190_v45 = vld [vmem:[#allocation5_spill] sm:$0xff] }
 0x423   : > { %v2506_v31 = vadd.f32 %v2505_v8, %v9287_v11  ;;  %v2507_v9 = vpop.f32.mrb[119].mxu0  ;;  %3022 = vmatmul.mubr.f32.gmra.mrb[144].mxu0 %v9623_v42  ;;  %3320 = vmatmul.mubr.f32.gmra.mrb[174].mxu1 %v9623_v42  ;;  %v6234_v0 = vpop.f32.mrb[149].mxu1  ;;  %v9639_v41 = vmax.f32 %v2689_v37, 0.0  ;;  %v11195_v8 = vld [vmem:[#allocation8_spill] sm:$0xff] }
 0x424   : > { %v9634_v51 = vmax.f32 %v2690_v1, 0.0  ;;  %v2508_v17 = vadd.f32 %v2507_v9, %v9291_v15  ;;  %v11192_v15 = vld [vmem:[#allocation7_spill] sm:$0xff]  ;;  %v11197_v0 = vld [vmem:[#allocation9_spill] sm:$0xff] }
 0x425   : > { %11188 = vst [vmem:[#allocation3_spill] sm:$0xff] %v9639_v41  ;;  %v2692_v19 = vadd.f32 %v2506_v31, %v11189_v58  ;;  %v2652_v46 = vadd.f32 %v2577_v14, %v11192_v15  ;;  %v2655_v31 = vadd.f32 %v2582_v21, %v11195_v8  ;;  %v2592_v14 = vadd.f32 %v9372_v12, %v9621_v48  ;;  %v11199_v58 = vld [vmem:[#allocation10_spill] sm:$0xff]  ;;  %v11203_v21 = vld [vmem:[#allocation12_spill] sm:$0xff] }
 0x426   : > { %11187 = vst [vmem:[#allocation4_spill] sm:$0xff] %v9634_v51  ;;  %v2693_v22 = vadd.f32 %v2508_v17, %v11190_v45  ;;  %3027 = vmatprep.mubr.f32.mxu0 %v9634_v51  ;;  %3324 = vmatprep.mubr.f32.mxu1 %v9634_v51  ;;  %v2658_v17 = vadd.f32 %v2587_v40, %v11197_v0  ;;  %v11205_v40 = vld [vmem:[#allocation13_spill] sm:$0xff] }
 0x427   : > { %3028 = vmatmul.mubr.f32.gmra.mrb[146].mxu0 %v9639_v41  ;;  %3325 = vmatmul.mubr.f32.gmra.mrb[176].mxu1 %v9639_v41  ;;  %v9652_v37 = vmax.f32 %v2692_v19, 0.0  ;;  %v9661_v1 = vmax.f32 %v2652_v46, 0.0  ;;  %v9671_v9 = vmax.f32 %v2655_v31, 0.0  ;;  %v2661_v19 = vadd.f32 %v2592_v14, %v11199_v58  ;;  %v11207_v14 = vld [vmem:[#allocation14_spill] sm:$0xff] }
 0x428   : > { %v9647_v11 = vmax.f32 %v2693_v22, 0.0  ;;  %v9681_v60 = vmax.f32 %v2658_v17, 0.0  ;;  %v2597_v45 = vadd.f32 %v9405_v2, %v9621_v48  ;;  %v11201_v22 = vld [vmem:[#allocation11_spill] sm:$0xff]  ;;  %v2602_v46 = vadd.f32 %v9438_v36, %v9621_v48 }
 0x429   : > { %11193 = vst [vmem:[#allocation5_spill] sm:$0xff] %v9652_v37  ;;  %11194 = vst [vmem:[#allocation7_spill] sm:$0xff] %v9661_v1  ;;  %v9691_v12 = vmax.f32 %v2661_v19, 0.0  ;;  %v2607_v31 = vadd.f32 %v9471_v10, %v9621_v48  ;;  %v2612_v17 = vadd.f32 %v9504_v33, %v9621_v48  ;;  %v2617_v19 = vadd.f32 %v9537_v20, %v9621_v48 }
 0x42a   : > { %11191 = vst [vmem:[#allocation6_spill] sm:$0xff] %v9647_v11  ;;  %3033 = vmatprep.mubr.f32.mxu0 %v9647_v11  ;;  %3329 = vmatprep.mubr.f32.mxu1 %v9647_v11  ;;  %11196 = vst [vmem:[#allocation8_spill] sm:$0xff] %v9671_v9  ;;  %v2664_v15 = vadd.f32 %v2597_v45, %v11201_v22  ;;  %v2667_v8 = vadd.f32 %v2602_v46, %v11203_v21  ;;  %v11209_v45 = vld [vmem:[#allocation15_spill] sm:$0xff]  ;;  %v11211_v46 = vld [vmem:[#allocation16_spill] sm:$0xff] }
 0x42b   : > { %3034 = vmatmul.mubr.f32.gmra.mrb[148].mxu0 %v9652_v37  ;;  %3330 = vmatmul.mubr.f32.gmra.mrb[178].mxu1 %v9652_v37  ;;  %11198 = vst [vmem:[#allocation9_spill] sm:$0xff] %v9681_v60  ;;  %11200 = vst [vmem:[#allocation10_spill] sm:$0xff] %v9691_v12  ;;  %v2670_v0 = vadd.f32 %v2607_v31, %v11205_v40  ;;  %v2673_v58 = vadd.f32 %v2612_v17, %v11207_v14  ;;  %v11213_v31 = vld [vmem:[#allocation17_spill] sm:$0xff]  ;;  %v11215_v17 = vld [vmem:[#allocation18_spill] sm:$0xff] }
 0x42c   : > { %3104 = vmatprep.mubr.f32.mxu0 %v11184_v62  ;;  %6267 = vmatprep.mubr.msk.f32.mxu1 %vm7419_vm2, %v11184_v62  ;;  %v9701_v2 = vmax.f32 %v2664_v15, 0.0  ;;  %v9711_v36 = vmax.f32 %v2667_v8, 0.0  ;;  %v2676_v22 = vadd.f32 %v2617_v19, %v11209_v45  ;;  %v2622_v15 = vadd.f32 %v9552_v30, %v9621_v48  ;;  %v11217_v19 = vld [vmem:[#allocation19_spill] sm:$0xff] }
 0x42d   : > { %v9721_v10 = vmax.f32 %v2670_v0, 0.0  ;;  %v9731_v33 = vmax.f32 %v2673_v58, 0.0  ;;  %v2627_v8 = vadd.f32 %v9567_v49, %v9621_v48  ;;  %v2632_v0 = vadd.f32 %v9581_v54, %v9621_v48 }
 0x42e   : > { %11202 = vst [vmem:[#allocation11_spill] sm:$0xff] %v9701_v2  ;;  %11204 = vst [vmem:[#allocation12_spill] sm:$0xff] %v9711_v36  ;;  %v9741_v20 = vmax.f32 %v2676_v22, 0.0  ;;  %v2679_v21 = vadd.f32 %v2622_v15, %v11211_v46  ;;  %v2637_v58 = vadd.f32 %v9595_v47, %v9621_v48  ;;  %v2642_v22 = vadd.f32 %v9609_v25, %v9621_v48  ;;  %v11219_v15 = vld [vmem:[#allocation20_spill] sm:$0xff] }
 0x42f   : > { %3105 = vmatmul.mubr.f32.vlgmr.msra.gmra.mrb[120].mxu0 %v9661_v1  ;;  %6268 = vmatmul.mubr.f32.vlgmr.msra.gmra.mrb[180].mxu1 %v9661_v1  ;;  %11206 = vst [vmem:[#allocation13_spill] sm:$0xff] %v9721_v10  ;;  %11208 = vst [vmem:[#allocation14_spill] sm:$0xff] %v9731_v33  ;;  %v2682_v40 = vadd.f32 %v2627_v8, %v11213_v31  ;;  %v2685_v14 = vadd.f32 %v2632_v0, %v11215_v17  ;;  %v11221_v8 = vld [vmem:[#allocation21_spill] sm:$0xff] }
 0x430   : > { %3110 = vmatprep.mubr.f32.mxu0 %v11184_v62  ;;  %6270 = vmatprep.mubr.msk.f32.mxu1 %vm7419_vm2, %v11184_v62  ;;  %11210 = vst [vmem:[#allocation15_spill] sm:$0xff] %v9741_v20  ;;  %v9751_v30 = vmax.f32 %v2679_v21, 0.0  ;;  %v2688_v45 = vadd.f32 %v2637_v58, %v11217_v19  ;;  %v2691_v46 = vadd.f32 %v2642_v22, %v11219_v15 }
 0x431   : > { %v9761_v49 = vmax.f32 %v2682_v40, 0.0  ;;  %v9771_v54 = vmax.f32 %v2685_v14, 0.0  ;;  %v2647_v21 = vadd.f32 %v9627_v52, %v9621_v48 }
 0x432   : > { %11212 = vst [vmem:[#allocation16_spill] sm:$0xff] %v9751_v30  ;;  %v9781_v47 = vmax.f32 %v2688_v45, 0.0  ;;  %v9791_v25 = vmax.f32 %v2691_v46, 0.0 }
 0x433   : > { %3111 = vmatmul.mubr.f32.gmra.mrb[122].mxu0 %v9671_v9  ;;  %6271 = vmatmul.mubr.f32.gmra.mrb[182].mxu1 %v9671_v9  ;;  %11214 = vst [vmem:[#allocation17_spill] sm:$0xff] %v9761_v49  ;;  %11216 = vst [vmem:[#allocation18_spill] sm:$0xff] %v9771_v54  ;;  %v2694_v31 = vadd.f32 %v2647_v21, %v11221_v8 }
 0x434   : > { %3116 = vmatprep.mubr.f32.mxu0 %v11184_v62  ;;  %6273 = vmatprep.mubr.msk.f32.mxu1 %vm7419_vm2, %v11184_v62  ;;  %11218 = vst [vmem:[#allocation19_spill] sm:$0xff] %v9781_v47  ;;  %11220 = vst [vmem:[#allocation20_spill] sm:$0xff] %v9791_v25 }
 0x435   : > { %v9799_v48 = vmax.f32 %v2694_v31, 0.0 }
 0x437   : > { %3117 = vmatmul.mubr.f32.gmra.mrb[124].mxu0 %v9681_v60  ;;  %6274 = vmatmul.mubr.f32.gmra.mrb[184].mxu1 %v9681_v60  ;;  %11222 = vst [vmem:[#allocation21_spill] sm:$0xff] %v9799_v48 }
 0x438   : > { %3122 = vmatprep.mubr.f32.mxu0 %v11184_v62  ;;  %6276 = vmatprep.mubr.msk.f32.mxu1 %vm7419_vm2, %v11184_v62 }
 0x43b   : > { %3123 = vmatmul.mubr.f32.gmra.mrb[126].mxu0 %v9691_v12  ;;  %6277 = vmatmul.mubr.f32.gmra.mrb[186].mxu1 %v9691_v12 }
 0x43c   : > { %3128 = vmatprep.mubr.f32.mxu0 %v11184_v62  ;;  %6279 = vmatprep.mubr.msk.f32.mxu1 %vm7419_vm2, %v11184_v62 }
 0x43f   : > { %3129 = vmatmul.mubr.f32.gmra.mrb[128].mxu0 %v9701_v2  ;;  %6280 = vmatmul.mubr.f32.gmra.mrb[188].mxu1 %v9701_v2 }
 0x440   : > { %3134 = vmatprep.mubr.f32.mxu0 %v11184_v62  ;;  %6282 = vmatprep.mubr.msk.f32.mxu1 %vm7419_vm2, %v11184_v62 }
 0x443   : > { %3135 = vmatmul.mubr.f32.gmra.mrb[130].mxu0 %v9711_v36  ;;  %6283 = vmatmul.mubr.f32.gmra.mrb[190].mxu1 %v9711_v36 }
 0x444   : > { %3140 = vmatprep.mubr.f32.mxu0 %v11184_v62  ;;  %6285 = vmatprep.mubr.msk.f32.mxu1 %vm7419_vm2, %v11184_v62 }
 0x447   : > { %3141 = vmatmul.mubr.f32.gmra.mrb[132].mxu0 %v9721_v10  ;;  %6286 = vmatmul.mubr.f32.gmra.mrb[192].mxu1 %v9721_v10 }
 0x448   : > { %3146 = vmatprep.mubr.f32.mxu0 %v11184_v62  ;;  %6288 = vmatprep.mubr.msk.f32.mxu1 %vm7419_vm2, %v11184_v62 }
 0x44b   : > { %3147 = vmatmul.mubr.f32.gmra.mrb[134].mxu0 %v9731_v33  ;;  %6289 = vmatmul.mubr.f32.gmra.mrb[194].mxu1 %v9731_v33 }
 0x44c   : > { %3152 = vmatprep.mubr.f32.mxu0 %v11184_v62  ;;  %6291 = vmatprep.mubr.msk.f32.mxu1 %vm7419_vm2, %v11184_v62 }
 0x44f   : > { %3153 = vmatmul.mubr.f32.gmra.mrb[136].mxu0 %v9741_v20  ;;  %6292 = vmatmul.mubr.f32.gmra.mrb[196].mxu1 %v9741_v20 }
 0x450   : > { %3158 = vmatprep.mubr.f32.mxu0 %v11184_v62  ;;  %6294 = vmatprep.mubr.msk.f32.mxu1 %vm7419_vm2, %v11184_v62 }
 0x453   : > { %3159 = vmatmul.mubr.f32.gmra.mrb[138].mxu0 %v9751_v30  ;;  %6295 = vmatmul.mubr.f32.gmra.mrb[198].mxu1 %v9751_v30 }
 0x454   : > { %3164 = vmatprep.mubr.f32.mxu0 %v11184_v62  ;;  %6297 = vmatprep.mubr.msk.f32.mxu1 %vm7419_vm2, %v11184_v62 }
 0x457   : > { %3165 = vmatmul.mubr.f32.gmra.mrb[140].mxu0 %v9761_v49  ;;  %6298 = vmatmul.mubr.f32.gmra.mrb[200].mxu1 %v9761_v49 }
 0x458   : > { %3170 = vmatprep.mubr.f32.mxu0 %v11184_v62  ;;  %6300 = vmatprep.mubr.msk.f32.mxu1 %vm7419_vm2, %v11184_v62 }
 0x45b   : > { %3171 = vmatmul.mubr.f32.gmra.mrb[142].mxu0 %v9771_v54  ;;  %6301 = vmatmul.mubr.f32.gmra.mrb[202].mxu1 %v9771_v54 }
 0x45c   : > { %3176 = vmatprep.mubr.f32.mxu0 %v11184_v62  ;;  %6303 = vmatprep.mubr.msk.f32.mxu1 %vm7419_vm2, %v11184_v62 }
 0x45f   : > { %3177 = vmatmul.mubr.f32.gmra.mrb[144].mxu0 %v9781_v47  ;;  %6304 = vmatmul.mubr.f32.gmra.mrb[204].mxu1 %v9781_v47 }
 0x460   : > { %3182 = vmatprep.mubr.f32.mxu0 %v11184_v62  ;;  %6306 = vmatprep.mubr.msk.f32.mxu1 %vm7419_vm2, %v11184_v62 }
 0x463   : > { %3183 = vmatmul.mubr.f32.gmra.mrb[146].mxu0 %v9791_v25  ;;  %6307 = vmatmul.mubr.f32.gmra.mrb[206].mxu1 %v9791_v25 }
 0x464   : > { %3188 = vmatprep.mubr.f32.mxu0 %v11184_v62  ;;  %6309 = vmatprep.mubr.msk.f32.mxu1 %vm7419_vm2, %v11184_v62 }
 0x467   : > { %3189 = vmatmul.mubr.f32.gmra.mrb[148].mxu0 %v9799_v48  ;;  %6310 = vmatmul.mubr.f32.gmra.mrb[208].mxu1 %v9799_v48 }
 0x468   : > { %3557 = vmatprep.mubr.f32.mxu0 %v11184_v62  ;;  %6342 = vmatprep.mubr.msk.f32.mxu1 %vm7419_vm2, %v11184_v62 }
 0x4c6   : > { %v5792_v52 = vpop.f32.mrb[150].mxu1 }
 0x4c7   : > { %v5793_v40 = vpop.f32.mrb[151].mxu1 }
 0x4c8   : > { %v5794_v0 = vadd.f32 %v5793_v40, %v5792_v52 }
 0x4ca   : > { %v5795_v17 = vpop.f32.mrb[152].mxu1 }
 0x4cb   : > { %v5796_v14 = vpop.f32.mrb[153].mxu1 }
 0x4cc   : > { %v5797_v58 = vadd.f32 %v5796_v14, %v5795_v17 }
 0x4ce   : > { %v5798_v19 = vpop.f32.mrb[154].mxu1 }
 0x4cf   : > { %v5799_v45 = vpop.f32.mrb[155].mxu1 }
 0x4d0   : > { %v5800_v22 = vadd.f32 %v5799_v45, %v5798_v19 }
 0x4d2   : > { %v5801_v15 = vpop.f32.mrb[156].mxu1 }
 0x4d3   : > { %v5802_v46 = vpop.f32.mrb[157].mxu1 }
 0x4d4   : > { %v5803_v21 = vadd.f32 %v5802_v46, %v5801_v15 }
 0x4d6   : > { %v5804_v8 = vpop.f32.mrb[158].mxu1 }
 0x4d7   : > { %v5805_v31 = vpop.f32.mrb[159].mxu1 }
 0x4d8   : > { %v9806_v48 = vadd.f32 %v5805_v31, %v5804_v8 }
 0x4da   : > { %v5807_v25 = vpop.f32.mrb[160].mxu1 }
 0x4db   : > { %v5808_v47 = vpop.f32.mrb[161].mxu1 }
 0x4dc   : > { %v9808_v54 = vadd.f32 %v5808_v47, %v5807_v25 }
 0x4de   : > { %v5810_v49 = vpop.f32.mrb[162].mxu1 }
 0x4df   : > { %v5811_v30 = vpop.f32.mrb[163].mxu1 }
 0x4e0   : > { %v9810_v52 = vadd.f32 %v5811_v30, %v5810_v49 }
 0x4e2   : > { %v5813_v40 = vpop.f32.mrb[164].mxu1 }
 0x4e3   : > { %v5814_v17 = vpop.f32.mrb[165].mxu1 }
 0x4e4   : > { %v9812_v14 = vadd.f32 %v5814_v17, %v5813_v40 }
 0x4e6   : > { %v5816_v19 = vpop.f32.mrb[166].mxu1 }
 0x4e7   : > { %v5817_v45 = vpop.f32.mrb[167].mxu1 }
 0x4e8   : > { %v9814_v20 = vadd.f32 %v5817_v45, %v5816_v19 }
 0x4ea   : > { %v5819_v15 = vpop.f32.mrb[168].mxu1 }
 0x4eb   : > { %v5820_v46 = vpop.f32.mrb[169].mxu1 }
 0x4ec   : > { %v9816_v8 = vadd.f32 %v5820_v46, %v5819_v15 }
 0x4ee   : > { %v5822_v31 = vpop.f32.mrb[170].mxu1 }
 0x4ef   : > { %v5823_v33 = vpop.f32.mrb[171].mxu1 }
 0x4f0   : > { %v9818_v47 = vadd.f32 %v5823_v33, %v5822_v31 }
 0x4f2   : > { %v5825_v25 = vpop.f32.mrb[172].mxu1 }
 0x4f3   : > { %v5826_v10 = vpop.f32.mrb[173].mxu1 }
 0x4f4   : > { %v9820_v30 = vadd.f32 %v5826_v10, %v5825_v25 }
 0x4f6   : > { %v5828_v49 = vpop.f32.mrb[174].mxu1 }
 0x4f7   : > { %v5829_v36 = vpop.f32.mrb[175].mxu1 }
 0x4f8   : > { %v9822_v40 = vadd.f32 %v5829_v36, %v5828_v49 }
 0x4fa   : > { %v5831_v17 = vpop.f32.mrb[176].mxu1 }
 0x4fb   : > { %v5832_v2 = vpop.f32.mrb[177].mxu1 }
 0x4fc   : > { %v9824_v19 = vadd.f32 %v5832_v2, %v5831_v17 }
 0x4fe   : > { %v5834_v45 = vpop.f32.mrb[178].mxu1 }
 0x4ff   : > { %v5835_v12 = vpop.f32.mrb[179].mxu1 }
 0x500   : > { %v9826_v15 = vadd.f32 %v5835_v12, %v5834_v45 }
 0x502   : > { %v3106_v46 = vpop.f32.mrb[120].mxu0  ;;  %v3401_v60 = vpop.f32.mrb[180].mxu1 }
 0x503   : > { %v3402_v33 = vadd.f32 %v5794_v0, %v3401_v60  ;;  %v3108_v31 = vpop.f32.mrb[121].mxu0  ;;  %v6269_v9 = vpop.f32.mrb[181].mxu1 }
 0x506   : > { %v3112_v1 = vpop.f32.mrb[122].mxu0  ;;  %v3406_v10 = vpop.f32.mrb[182].mxu1 }
 0x507   : > { %v6982_v25 = vpack.c.bf16 %v3112_v1, %v3106_v46  ;;  %v3407_v11 = vadd.f32 %v5797_v58, %v3406_v10  ;;  %v3114_v37 = vpop.f32.mrb[123].mxu0  ;;  %v6272_v36 = vpop.f32.mrb[183].mxu1 }
 0x508   : > { %v6980_v49 = vpack.c.bf16 %v3114_v37, %v3108_v31 }
 0x509   : > { %v7009_v51 = vpack.c.bf16 %v3407_v11, %v3402_v33 }
 0x50a   : > { %v3118_v41 = vpop.f32.mrb[124].mxu0  ;;  %v3411_v2 = vpop.f32.mrb[184].mxu1  ;;  %6981 = vmatprep.subr.bf16.mxu0 %v6980_v49 }
 0x50b   : > { %v3412_v17 = vadd.f32 %v5800_v22, %v3411_v2  ;;  %v3120_v6 = vpop.f32.mrb[125].mxu0  ;;  %v6275_v12 = vpop.f32.mrb[185].mxu1  ;;  %6983 = vmatpush1.bf16.msra.mxu0 %v6982_v25  ;;  %7010 = vmatpush3.bf16.msra.mxu1 %v7009_v51 }
 0x50c   : > { %7011 = vmatprep.subr.bf16.mxu1 %v11183_v57 }
 0x50e   : > { %v3124_v60 = vpop.f32.mrb[126].mxu0  ;;  %v3416_v9 = vpop.f32.mrb[186].mxu1 }
 0x50f   : > { %v6986_v0 = vpack.c.bf16 %v3124_v60, %v3118_v41  ;;  %v3417_v45 = vadd.f32 %v5803_v21, %v3416_v9  ;;  %v3126_v1 = vpop.f32.mrb[127].mxu0  ;;  %v6278_v58 = vpop.f32.mrb[187].mxu1 }
 0x510   : > { %v6984_v46 = vpack.c.bf16 %v3126_v1, %v3120_v6 }
 0x511   : > { %v7012_v10 = vpack.c.bf16 %v3417_v45, %v3412_v17 }
 0x512   : > { %v3130_v37 = vpop.f32.mrb[128].mxu0  ;;  %v3421_v11 = vpop.f32.mrb[188].mxu1  ;;  %6985 = vmatprep.subr.bf16.mxu0 %v6984_v46 }
 0x513   : > { %v3422_v33 = vadd.f32 %v9806_v48, %v3421_v11  ;;  %v3132_v22 = vpop.f32.mrb[129].mxu0  ;;  %v6281_v31 = vpop.f32.mrb[189].mxu1  ;;  %6987 = vmatpush1.bf16.msra.mxu0 %v6986_v0  ;;  %7013 = vmatpush3.bf16.msra.mxu1 %v7012_v10 }
 0x514   : > { %7014 = vmatprep.subr.bf16.mxu1 %v11183_v57 }
 0x516   : > { %v3136_v51 = vpop.f32.mrb[130].mxu0  ;;  %v3426_v25 = vpop.f32.mrb[190].mxu1 }
 0x517   : > { %v6990_v36 = vpack.c.bf16 %v3136_v51, %v3130_v37  ;;  %v3427_v41 = vadd.f32 %v9808_v54, %v3426_v25  ;;  %v3138_v21 = vpop.f32.mrb[131].mxu0  ;;  %v6284_v49 = vpop.f32.mrb[191].mxu1 }
 0x518   : > { %v6988_v6 = vpack.c.bf16 %v3138_v21, %v3132_v22 }
 0x519   : > { %v7015_v2 = vpack.c.bf16 %v3427_v41, %v3422_v33 }
 0x51a   : > { %v3142_v17 = vpop.f32.mrb[132].mxu0  ;;  %v3431_v12 = vpop.f32.mrb[192].mxu1  ;;  %6989 = vmatprep.subr.bf16.mxu0 %v6988_v6 }
 0x51b   : > { %v3432_v48 = vadd.f32 %v9810_v52, %v3431_v12  ;;  %v3144_v60 = vpop.f32.mrb[133].mxu0  ;;  %v6287_v9 = vpop.f32.mrb[193].mxu1  ;;  %6991 = vmatpush1.bf16.msra.mxu0 %v6990_v36  ;;  %7016 = vmatpush3.bf16.msra.mxu1 %v7015_v2 }
 0x51c   : > { %7017 = vmatprep.subr.bf16.mxu1 %v11183_v57 }
 0x51e   : > { %v3148_v0 = vpop.f32.mrb[134].mxu0  ;;  %v3436_v45 = vpop.f32.mrb[194].mxu1 }
 0x51f   : > { %v6994_v1 = vpack.c.bf16 %v3148_v0, %v3142_v17  ;;  %v3437_v54 = vadd.f32 %v9812_v14, %v3436_v45  ;;  %v3150_v58 = vpop.f32.mrb[135].mxu0  ;;  %v6290_v46 = vpop.f32.mrb[195].mxu1 }
 0x520   : > { %v6992_v10 = vpack.c.bf16 %v3150_v58, %v3144_v60 }
 0x521   : > { %v7018_v37 = vpack.c.bf16 %v3437_v54, %v3432_v48 }
 0x522   : > { %v3154_v11 = vpop.f32.mrb[136].mxu0  ;;  %v3441_v33 = vpop.f32.mrb[196].mxu1  ;;  %6993 = vmatprep.subr.bf16.mxu0 %v6992_v10 }
 0x523   : > { %v3442_v52 = vadd.f32 %v9814_v20, %v3441_v33  ;;  %v3156_v22 = vpop.f32.mrb[137].mxu0  ;;  %v6293_v31 = vpop.f32.mrb[197].mxu1  ;;  %6995 = vmatpush1.bf16.msra.mxu0 %v6994_v1  ;;  %7019 = vmatpush3.bf16.msra.mxu1 %v7018_v37 }
 0x524   : > { %7020 = vmatprep.subr.bf16.mxu1 %v11183_v57 }
 0x526   : > { %v3160_v51 = vpop.f32.mrb[138].mxu0  ;;  %v3446_v25 = vpop.f32.mrb[198].mxu1 }
 0x527   : > { %v6998_v36 = vpack.c.bf16 %v3160_v51, %v3154_v11  ;;  %v3447_v14 = vadd.f32 %v9816_v8, %v3446_v25  ;;  %v3162_v41 = vpop.f32.mrb[139].mxu0  ;;  %v6296_v21 = vpop.f32.mrb[199].mxu1 }
 0x528   : > { %v6996_v49 = vpack.c.bf16 %v3162_v41, %v3156_v22  ;;  %v5433_v21 = vld [vmem:[%s11097_s8 + $0x920] sm:$0xff] }
 0x529   : > { %v7021_v6 = vpack.c.bf16 %v3447_v14, %v3442_v52 }
 0x52a   : > { %v3166_v2 = vpop.f32.mrb[140].mxu0  ;;  %v3451_v17 = vpop.f32.mrb[200].mxu1  ;;  %6997 = vmatprep.subr.bf16.mxu0 %v6996_v49 }
 0x52b   : > { %v3452_v20 = vadd.f32 %v9818_v47, %v3451_v17  ;;  %v3168_v12 = vpop.f32.mrb[141].mxu0  ;;  %v6299_v48 = vpop.f32.mrb[201].mxu1  ;;  %6999 = vmatpush1.bf16.msra.mxu0 %v6998_v36  ;;  %7022 = vmatpush3.bf16.msra.mxu1 %v7021_v6  ;;  %v5479_v17 = vld [vmem:[%s11097_s8 + $0xa90] sm:$0xff] }
 0x52c   : > { %7023 = vmatprep.subr.bf16.mxu1 %v11183_v57  ;;  %v5434_v48 = vld [vmem:[%s11097_s8 + $0x928] sm:$0xff] }
 0x52e   : > { %v3172_v60 = vpop.f32.mrb[142].mxu0  ;;  %v3456_v9 = vpop.f32.mrb[202].mxu1 }
 0x52f   : > { %v7002_v0 = vpack.c.bf16 %v3172_v60, %v3166_v2  ;;  %v3457_v8 = vadd.f32 %v9820_v30, %v3456_v9  ;;  %v3174_v45 = vpop.f32.mrb[143].mxu0  ;;  %v6302_v1 = vpop.f32.mrb[203].mxu1  ;;  %v5436_v9 = vld [vmem:[%s11097_s8 + $0x938] sm:$0xff] }
 0x530   : > { %v7000_v54 = vpack.c.bf16 %v3174_v45, %v3168_v12  ;;  %v5431_v12 = vld [vmem:[%s11097_s8 + $0x910] sm:$0xff] }
 0x531   : > { %v7024_v58 = vpack.c.bf16 %v3457_v8, %v3452_v20  ;;  %v5482_v20 = vld [vmem:[%s11097_s8 + $0xaa8] sm:$0xff]  ;;  %v5435_v1 = vld [vmem:[%s11097_s8 + $0x930] sm:$0xff] }
 0x532   : > { %v3178_v46 = vpop.f32.mrb[144].mxu0  ;;  %v3461_v10 = vpop.f32.mrb[204].mxu1  ;;  %7001 = vmatprep.subr.bf16.mxu0 %v7000_v54  ;;  %v7125_v8 = vpack.c.bf16 %v5482_v20, %v5479_v17  ;;  %v7127_v54 = vpack.c.bf16 %v5434_v48, %v5431_v12  ;;  %v5497_v48 = vld [vmem:[%s11097_s8 + $0xb20] sm:$0xff] }
 0x533   : > { %v3462_v47 = vadd.f32 %v9822_v40, %v3461_v10  ;;  %v3180_v37 = vpop.f32.mrb[145].mxu0  ;;  %v6305_v11 = vpop.f32.mrb[205].mxu1  ;;  %7003 = vmatpush1.bf16.msra.mxu0 %v7002_v0  ;;  %7025 = vmatpush3.bf16.msra.mxu1 %v7024_v58  ;;  %v5430_v40 = vld [vmem:[%s11097_s8 + $0x908] sm:$0xff]  ;;  %v5439_v0 = vld [vmem:[%s11097_s8 + $0x950] sm:$0xff]  ;;  %v5485_v58 = vld [vmem:[%s11097_s8 + $0xac0] sm:$0xff] }
 0x534   : > { %7026 = vmatprep.subr.bf16.mxu1 %v11183_v57  ;;  %v7029_v60 = vpack.c.bf16 %v5433_v21, %v5430_v40  ;;  %v7379_v10 = vld [vmem:[%s8894_s23] sm:$0xff]  ;;  %v5440_v11 = vld [vmem:[%s11097_s8 + $0x958] sm:$0xff]  ;;  %v5443_v21 = vld [vmem:[%s11097_s8 + $0x970] sm:$0xff] }
 0x535   : > { %v5444_v40 = vld [vmem:[%s11097_s8 + $0x978] sm:$0xff] }
 0x536   : > { %v3184_v33 = vpop.f32.mrb[146].mxu0  ;;  %v3466_v52 = vpop.f32.mrb[206].mxu1 }
 0x537   : > { %v7006_v22 = vpack.c.bf16 %v3184_v33, %v3178_v46  ;;  %v3467_v30 = vadd.f32 %v9824_v19, %v3466_v52  ;;  %v3186_v31 = vpop.f32.mrb[147].mxu0  ;;  %v6308_v51 = vpop.f32.mrb[207].mxu1  ;;  %v5429_v19 = vld [vmem:[%s11097_s8 + $0x900] sm:$0xff]  ;;  %v5488_v46 = vld [vmem:[%s11097_s8 + $0xad8] sm:$0xff]  ;;  %v7033_v33 = vpack.c.bf16 %v5439_v0, %v5436_v9  ;;  %v5442_v52 = vld [vmem:[%s11097_s8 + $0x968] sm:$0xff] }
 0x538   : > { %v7004_v25 = vpack.c.bf16 %v3186_v31, %v3180_v37  ;;  %v5437_v37 = vld [vmem:[%s11097_s8 + $0x940] sm:$0xff]  ;;  %v7381_v9 = vld [vmem:[%s8894_s23 + $0x10] sm:$0xff]  ;;  %v5450_v0 = vld [vmem:[%s11097_s8 + $0x9a8] sm:$0xff] }
 0x539   : > { %v7027_v36 = vpack.c.bf16 %v3467_v30, %v3462_v47  ;;  %v5438_v47 = vld [vmem:[%s11097_s8 + $0x948] sm:$0xff]  ;;  %v7129_v30 = vpack.c.bf16 %v5488_v46, %v5485_v58  ;;  %v5441_v51 = vld [vmem:[%s11097_s8 + $0x960] sm:$0xff] }
 0x53a   : > { %v3190_v14 = vpop.f32.mrb[148].mxu0  ;;  %v3471_v41 = vpop.f32.mrb[208].mxu1  ;;  %7005 = vmatprep.subr.bf16.mxu0 %v7004_v25  ;;  %v7035_v31 = vpack.c.bf16 %v5438_v47, %v5435_v1  ;;  %v7131_v25 = vpack.c.bf16 %v5440_v11, %v5437_v37  ;;  %v7039_v20 = vpack.c.bf16 %v5444_v40, %v5441_v51  ;;  %v5457_v58 = vld [vmem:[%s11097_s8 + $0x9e0] sm:$0xff]  ;;  %v5503_v11 = vld [vmem:[%s11097_s8 + $0xb50] sm:$0xff] }
 0x53b   : > { %v3472_v49 = vadd.f32 %v9826_v15, %v3471_v41  ;;  %v3192_v6 = vpop.f32.mrb[149].mxu0  ;;  %v6311_v2 = vpop.f32.mrb[209].mxu1  ;;  %7007 = vmatpush1.bf16.msra.mxu0 %v7006_v22  ;;  %7028 = vmatpush3.bf16.msra.mxu1 %v7027_v36  ;;  %v5432_v15 = vld [vmem:[%s11097_s8 + $0x918] sm:$0xff]  ;;  %v5445_v22 = vld [vmem:[%s11097_s8 + $0x980] sm:$0xff]  ;;  %v5491_v36 = vld [vmem:[%s11097_s8 + $0xaf0] sm:$0xff] }
 0x53c   : > { %3521 = vmatprep.subr.mxu0 %v3192_v6  ;;  %6340 = vmatprep.subr.mxu1 %v11184_v62  ;;  %v7031_v45 = vpack.c.bf16 %v5432_v15, %v5429_v19  ;;  %v7380_v41 = vld [vmem:[%s8894_s23 + $0x8] sm:$0xff]  ;;  %v7037_v6 = vpack.c.bf16 %v5445_v22, %v5442_v52  ;;  %v5448_v2 = vld [vmem:[%s11097_s8 + $0x998] sm:$0xff]  ;;  %v5451_v19 = vld [vmem:[%s11097_s8 + $0x9b0] sm:$0xff] }
 0x53d   : > { %v5447_v15 = vld [vmem:[%s11097_s8 + $0x990] sm:$0xff]  ;;  %v7041_v1 = vpack.c.bf16 %v5451_v19, %v5448_v2  ;;  %v5453_v47 = vld [vmem:[%s11097_s8 + $0x9c0] sm:$0xff]  ;;  %v7382_v52 = vld [vmem:[%s8894_s23 + $0x18] sm:$0xff] }
 0x53e   : > { %v5456_v22 = vld [vmem:[%s11097_s8 + $0x9d8] sm:$0xff]  ;;  %v5459_v40 = vld [vmem:[%s11097_s8 + $0x9f0] sm:$0xff]  ;;  %v7383_v2 = vld [vmem:[%s8894_s23 + $0x20] sm:$0xff] }
 0x53f   : > { %3522 = vmatpush1.msra.mxu0 %v3190_v14  ;;  %6341 = vmatpush3.msra.mxu1 %v3472_v49  ;;  %v5494_v14 = vld [vmem:[%s11097_s8 + $0xb08] sm:$0xff] }
 0x540   : > { %5399 = vmatmul.mubr.msk.f32.vlgmr.msra.gmra.mrb[150].mxu0 %vm2309_vm4, %v7379_v10  ;;  %6343 = vmatmul.mubr.msk.f32.vlgmr.msra.gmra.mrb[210].mxu1 %vm2309_vm4, %v7379_v10  ;;  %v5446_v49 = vld [vmem:[%s11097_s8 + $0x988] sm:$0xff]  ;;  %v7133_v17 = vpack.c.bf16 %v5494_v14, %v5491_v36  ;;  %v7043_v10 = vpack.c.bf16 %v5450_v0, %v5447_v15  ;;  %v5463_v36 = vld [vmem:[%s11097_s8 + $0xa10] sm:$0xff] }
 0x541   : > { %3563 = vmatprep.mubr.f32.mxu0 %v11184_v62  ;;  %6345 = vmatprep.mubr.msk.f32.mxu1 %vm7419_vm2, %v11184_v62  ;;  %v7135_v12 = vpack.c.bf16 %v5446_v49, %v5443_v21  ;;  %v5509_v49 = vld [vmem:[%s11097_s8 + $0xb80] sm:$0xff]  ;;  %v5462_v19 = vld [vmem:[%s11097_s8 + $0xa08] sm:$0xff] }
 0x542   : > { %7030 = vmatprep.subr.bf16.mxu0 %v7029_v60  ;;  %7126 = vmatprep.subr.bf16.mxu1 %v7125_v8  ;;  %v5500_v60 = vld [vmem:[%s11097_s8 + $0xb38] sm:$0xff]  ;;  %v5449_v8 = vld [vmem:[%s11097_s8 + $0x9a0] sm:$0xff] }
 0x543   : > { %7032 = vmatpush1.bf16.msra.mxu0 %v7031_v45  ;;  %7128 = vmatpush3.bf16.msra.mxu1 %v7127_v54  ;;  %v5452_v45 = vld [vmem:[%s11097_s8 + $0x9b8] sm:$0xff]  ;;  %v5454_v54 = vld [vmem:[%s11097_s8 + $0x9c8] sm:$0xff]  ;;  %v7137_v46 = vpack.c.bf16 %v5500_v60, %v5497_v48  ;;  %v7051_v48 = vpack.c.bf16 %v5462_v19, %v5459_v40  ;;  %v5487_v40 = vld [vmem:[%s11097_s8 + $0xad0] sm:$0xff] }
 0x544   : > { %5400 = vmatmul.mubr.msk.f32.gmra.mrb[152].mxu0 %vm2309_vm4, %v7380_v41  ;;  %6346 = vmatmul.mubr.msk.f32.gmra.mrb[212].mxu1 %vm2309_vm4, %v7380_v41  ;;  %v7139_v37 = vpack.c.bf16 %v5452_v45, %v5449_v8  ;;  %v7045_v51 = vpack.c.bf16 %v5457_v58, %v5454_v54  ;;  %v7047_v41 = vpack.c.bf16 %v5456_v22, %v5453_v47  ;;  %v5466_v60 = vld [vmem:[%s11097_s8 + $0xa28] sm:$0xff]  ;;  %v5465_v45 = vld [vmem:[%s11097_s8 + $0xa20] sm:$0xff]  ;;  %v7385_v47 = vld [vmem:[%s8894_s23 + $0x30] sm:$0xff] }
 0x545   : > { %3569 = vmatprep.mubr.f32.mxu0 %v11184_v62  ;;  %6348 = vmatprep.mubr.msk.f32.mxu1 %vm7419_vm2, %v11184_v62  ;;  %v7384_v8 = vld [vmem:[%s8894_s23 + $0x28] sm:$0xff] }
 0x546   : > { %7034 = vmatprep.subr.bf16.mxu0 %v7033_v33  ;;  %7130 = vmatprep.subr.bf16.mxu1 %v7129_v30  ;;  %v5506_v33 = vld [vmem:[%s11097_s8 + $0xb68] sm:$0xff]  ;;  %v5455_v30 = vld [vmem:[%s11097_s8 + $0x9d0] sm:$0xff] }
 0x547   : > { %7036 = vmatpush1.bf16.msra.mxu0 %v7035_v31  ;;  %7132 = vmatpush3.bf16.msra.mxu1 %v7131_v25  ;;  %v5458_v31 = vld [vmem:[%s11097_s8 + $0x9e8] sm:$0xff]  ;;  %v5460_v25 = vld [vmem:[%s11097_s8 + $0x9f8] sm:$0xff]  ;;  %v7141_v14 = vpack.c.bf16 %v5506_v33, %v5503_v11 }
 0x548   : > { %5401 = vmatmul.mubr.msk.f32.gmra.mrb[154].mxu0 %vm2309_vm4, %v7381_v9  ;;  %6349 = vmatmul.mubr.msk.f32.gmra.mrb[214].mxu1 %vm2309_vm4, %v7381_v9  ;;  %v7143_v21 = vpack.c.bf16 %v5458_v31, %v5455_v30  ;;  %v7049_v15 = vpack.c.bf16 %v5463_v36, %v5460_v25  ;;  %v5469_v9 = vld [vmem:[%s11097_s8 + $0xa40] sm:$0xff]  ;;  %v5474_v11 = vld [vmem:[%s11097_s8 + $0xa68] sm:$0xff]  ;;  %v7386_v31 = vld [vmem:[%s8894_s23 + $0x38] sm:$0xff] }
 0x549   : > { %3575 = vmatprep.mubr.f32.mxu0 %v11184_v62  ;;  %6351 = vmatprep.mubr.msk.f32.mxu1 %vm7419_vm2, %v11184_v62  ;;  %v7053_v54 = vpack.c.bf16 %v5469_v9, %v5466_v60  ;;  %v5478_v22 = vld [vmem:[%s11097_s8 + $0xa88] sm:$0xff]  ;;  %v5481_v30 = vld [vmem:[%s11097_s8 + $0xaa0] sm:$0xff]  ;;  %v5480_v25 = vld [vmem:[%s11097_s8 + $0xa98] sm:$0xff] }
 0x54a   : > { %7038 = vmatprep.subr.bf16.mxu0 %v7037_v6  ;;  %7134 = vmatprep.subr.bf16.mxu1 %v7133_v17  ;;  %v5512_v6 = vld [vmem:[%s11097_s8 + $0xb98] sm:$0xff]  ;;  %v5461_v17 = vld [vmem:[%s11097_s8 + $0xa00] sm:$0xff]  ;;  %v7061_v36 = vpack.c.bf16 %v5481_v30, %v5478_v22 }
 0x54b   : > { %7040 = vmatpush1.bf16.msra.mxu0 %v7039_v20  ;;  %7136 = vmatpush3.bf16.msra.mxu1 %v7135_v12  ;;  %v5464_v20 = vld [vmem:[%s11097_s8 + $0xa18] sm:$0xff]  ;;  %v7145_v12 = vpack.c.bf16 %v5512_v6, %v5509_v49  ;;  %v5483_v49 = vld [vmem:[%s11097_s8 + $0xab0] sm:$0xff]  ;;  %v5486_v6 = vld [vmem:[%s11097_s8 + $0xac8] sm:$0xff] }
 0x54c   : > { %5402 = vmatmul.mubr.msk.f32.gmra.mrb[156].mxu0 %vm2309_vm4, %v7382_v52  ;;  %6352 = vmatmul.mubr.msk.f32.gmra.mrb[216].mxu1 %vm2309_vm4, %v7382_v52  ;;  %v7147_v0 = vpack.c.bf16 %v5464_v20, %v5461_v17  ;;  %v7067_v19 = vpack.c.bf16 %v5486_v6, %v5483_v49  ;;  %v5490_v17 = vld [vmem:[%s11097_s8 + $0xae8] sm:$0xff]  ;;  %v5493_v20 = vld [vmem:[%s11097_s8 + $0xb00] sm:$0xff]  ;;  %v5508_v30 = vld [vmem:[%s11097_s8 + $0xb78] sm:$0xff] }
 0x54d   : > { %3581 = vmatprep.mubr.f32.mxu0 %v11184_v62  ;;  %6354 = vmatprep.mubr.msk.f32.mxu1 %vm7419_vm2, %v11184_v62  ;;  %v7069_v60 = vpack.c.bf16 %v5493_v20, %v5490_v17  ;;  %v5514_v49 = vld [vmem:[%s11097_s8 + $0xba8] sm:$0xff]  ;;  %v5517_v6 = vld [vmem:[%s11097_s8 + $0xbc0] sm:$0xff] }
 0x54e   : > { %7042 = vmatprep.subr.bf16.mxu0 %v7041_v1  ;;  %7138 = vmatprep.subr.bf16.mxu1 %v7137_v46  ;;  %v5468_v1 = vld [vmem:[%s11097_s8 + $0xa38] sm:$0xff]  ;;  %v5518_v17 = vld [vmem:[%s11097_s8 + $0xbc8] sm:$0xff]  ;;  %v5513_v20 = vld [vmem:[%s11097_s8 + $0xba0] sm:$0xff] }
 0x54f   : > { %7044 = vmatpush1.bf16.msra.mxu0 %v7043_v10  ;;  %7140 = vmatpush3.bf16.msra.mxu1 %v7139_v37  ;;  %v7055_v58 = vpack.c.bf16 %v5468_v1, %v5465_v45  ;;  %v5472_v46 = vld [vmem:[%s11097_s8 + $0xa58] sm:$0xff]  ;;  %v5475_v10 = vld [vmem:[%s11097_s8 + $0xa70] sm:$0xff] }
 0x550   : > { %5403 = vmatmul.mubr.msk.f32.gmra.mrb[158].mxu0 %vm2309_vm4, %v7383_v2  ;;  %6355 = vmatmul.mubr.msk.f32.gmra.mrb[218].mxu1 %vm2309_vm4, %v7383_v2  ;;  %v5471_v37 = vld [vmem:[%s11097_s8 + $0xa50] sm:$0xff]  ;;  %v7057_v33 = vpack.c.bf16 %v5475_v10, %v5472_v46  ;;  %v5502_v10 = vld [vmem:[%s11097_s8 + $0xb48] sm:$0xff] }
 0x551   : > { %3587 = vmatprep.mubr.f32.mxu0 %v11184_v62  ;;  %6357 = vmatprep.mubr.msk.f32.mxu1 %vm7419_vm2, %v11184_v62  ;;  %v7059_v52 = vpack.c.bf16 %v5474_v11, %v5471_v37  ;;  %v7389_v45 = vld [vmem:[%s8894_s23 + $0x50] sm:$0xff]  ;;  %v7390_v37 = vld [vmem:[%s8894_s23 + $0x58] sm:$0xff]  ;;  %v5501_v11 = vld [vmem:[%s11097_s8 + $0xb40] sm:$0xff] }
 0x552   : > { %7046 = vmatprep.subr.bf16.mxu0 %v7045_v51  ;;  %7142 = vmatprep.subr.bf16.mxu1 %v7141_v14  ;;  %v5477_v51 = vld [vmem:[%s11097_s8 + $0xa80] sm:$0xff]  ;;  %v5495_v1 = vld [vmem:[%s11097_s8 + $0xb10] sm:$0xff] }
 0x553   : > { %7048 = vmatpush1.bf16.msra.mxu0 %v7047_v41  ;;  %7144 = vmatpush3.bf16.msra.mxu1 %v7143_v21  ;;  %v7063_v14 = vpack.c.bf16 %v5480_v25, %v5477_v51  ;;  %v5484_v41 = vld [vmem:[%s11097_s8 + $0xab8] sm:$0xff]  ;;  %v7387_v21 = vld [vmem:[%s8894_s23 + $0x40] sm:$0xff]  ;;  %v5507_v25 = vld [vmem:[%s11097_s8 + $0xb70] sm:$0xff] }
 0x554   : > { %5404 = vmatmul.mubr.msk.f32.gmra.mrb[160].mxu0 %vm2309_vm4, %v7384_v8  ;;  %6358 = vmatmul.mubr.msk.f32.gmra.mrb[220].mxu1 %vm2309_vm4, %v7384_v8  ;;  %v7065_v2 = vpack.c.bf16 %v5487_v40, %v5484_v41  ;;  %v5499_v8 = vld [vmem:[%s11097_s8 + $0xb30] sm:$0xff]  ;;  %v7391_v51 = vld [vmem:[%s8894_s23 + $0x60] sm:$0xff]  ;;  %v7392_v40 = vld [vmem:[%s8894_s23 + $0x68] sm:$0xff] }
 0x555   : > { %3593 = vmatprep.mubr.f32.mxu0 %v11184_v62  ;;  %6360 = vmatprep.mubr.msk.f32.mxu1 %vm7419_vm2, %v11184_v62 }
 0x556   : > { %7050 = vmatprep.subr.bf16.mxu0 %v7049_v15  ;;  %7146 = vmatprep.subr.bf16.mxu1 %v7145_v12  ;;  %v7388_v15 = vld [vmem:[%s8894_s23 + $0x48] sm:$0xff]  ;;  %v5489_v12 = vld [vmem:[%s11097_s8 + $0xae0] sm:$0xff] }
 0x557   : > { %7052 = vmatpush1.bf16.msra.mxu0 %v7051_v48  ;;  %7148 = vmatpush3.bf16.msra.mxu1 %v7147_v0  ;;  %v5492_v48 = vld [vmem:[%s11097_s8 + $0xaf8] sm:$0xff] }
 0x558   : > { %5405 = vmatmul.mubr.msk.f32.gmra.mrb[162].mxu0 %vm2309_vm4, %v7385_v47  ;;  %6361 = vmatmul.mubr.msk.f32.gmra.mrb[222].mxu1 %vm2309_vm4, %v7385_v47  ;;  %v7071_v9 = vpack.c.bf16 %v5492_v48, %v5489_v12  ;;  %v5496_v0 = vld [vmem:[%s11097_s8 + $0xb18] sm:$0xff]  ;;  %v5505_v47 = vld [vmem:[%s11097_s8 + $0xb60] sm:$0xff] }
 0x559   : > { %3599 = vmatprep.mubr.f32.mxu0 %v11184_v62  ;;  %6363 = vmatprep.mubr.msk.f32.mxu1 %vm7419_vm2, %v11184_v62 }
 0x55a   : > { %7054 = vmatprep.subr.bf16.mxu0 %v7053_v54  ;;  %v5498_v54 = vld [vmem:[%s11097_s8 + $0xb28] sm:$0xff] }
 0x55b   : > { %7056 = vmatpush1.bf16.msra.mxu0 %v7055_v58  ;;  %v7073_v58 = vpack.c.bf16 %v5499_v8, %v5496_v0  ;;  %v7075_v46 = vpack.c.bf16 %v5498_v54, %v5495_v1  ;;  %v5520_v8 = vld [vmem:[%s11097_s8 + $0xbd8] sm:$0xff]  ;;  %v5521_v1 = vld [vmem:[%s11097_s8 + $0xbe0] sm:$0xff] }
 0x55c   : > { %5406 = vmatmul.mubr.msk.f32.gmra.mrb[164].mxu0 %vm2309_vm4, %v7386_v31  ;;  %6364 = vmatmul.mubr.msk.f32.gmra.mrb[224].mxu1 %vm2309_vm4, %v7386_v31  ;;  %v5511_v31 = vld [vmem:[%s11097_s8 + $0xb90] sm:$0xff] }
 0x55d   : > { %3605 = vmatprep.mubr.f32.mxu0 %v11184_v62  ;;  %6366 = vmatprep.mubr.msk.f32.mxu1 %vm7419_vm2, %v11184_v62 }
 0x55e   : > { %7058 = vmatprep.subr.bf16.mxu0 %v7057_v33  ;;  %v5504_v33 = vld [vmem:[%s11097_s8 + $0xb58] sm:$0xff] }
 0x55f   : > { %7060 = vmatpush1.bf16.msra.mxu0 %v7059_v52  ;;  %v7077_v52 = vpack.c.bf16 %v5505_v47, %v5502_v10  ;;  %v7079_v22 = vpack.c.bf16 %v5504_v33, %v5501_v11  ;;  %v5522_v10 = vld [vmem:[%s11097_s8 + $0xbe8] sm:$0xff]  ;;  %v5473_v11 = vld [vmem:[%s11097_s8 + $0xa60] sm:$0xff]  ;;  %v5476_v33 = vld [vmem:[%s11097_s8 + $0xa78] sm:$0xff] }
 0x560   : > { %5407 = vmatmul.mubr.msk.f32.gmra.mrb[166].mxu0 %vm2309_vm4, %v7387_v21  ;;  %6367 = vmatmul.mubr.msk.f32.gmra.mrb[226].mxu1 %vm2309_vm4, %v7387_v21  ;;  %v7393_v21 = vld [vmem:[%s8894_s23 + $0x70] sm:$0xff] }
 0x561   : > { %3611 = vmatprep.mubr.f32.mxu0 %v11184_v62  ;;  %6369 = vmatprep.mubr.msk.f32.mxu1 %vm7419_vm2, %v11184_v62 }
 0x562   : > { %7062 = vmatprep.subr.bf16.mxu0 %v7061_v36  ;;  %v5510_v36 = vld [vmem:[%s11097_s8 + $0xb88] sm:$0xff] }
 0x563   : > { %7064 = vmatpush1.bf16.msra.mxu0 %v7063_v14  ;;  %v7081_v14 = vpack.c.bf16 %v5511_v31, %v5508_v30  ;;  %v7083_v41 = vpack.c.bf16 %v5510_v36, %v5507_v25  ;;  %v5529_v30 = vld [vmem:[%s11097_s8 + $0xc20] sm:$0xff] }
 0x564   : > { %5408 = vmatmul.mubr.msk.f32.gmra.mrb[168].mxu0 %vm2309_vm4, %v7388_v15  ;;  %6370 = vmatmul.mubr.msk.f32.gmra.mrb[228].mxu1 %vm2309_vm4, %v7388_v15  ;;  %v5516_v15 = vld [vmem:[%s11097_s8 + $0xbb8] sm:$0xff] }
 0x565   : > { %3617 = vmatprep.mubr.f32.mxu0 %v11184_v62  ;;  %6372 = vmatprep.mubr.msk.f32.mxu1 %vm7419_vm2, %v11184_v62  ;;  %v7087_v48 = vpack.c.bf16 %v5516_v15, %v5513_v20  ;;  %v5527_v20 = vld [vmem:[%s11097_s8 + $0xc10] sm:$0xff]  ;;  %v5530_v15 = vld [vmem:[%s11097_s8 + $0xc28] sm:$0xff] }
 0x566   : > { %7066 = vmatprep.subr.bf16.mxu0 %v7065_v2  ;;  %v5515_v2 = vld [vmem:[%s11097_s8 + $0xbb0] sm:$0xff] }
 0x567   : > { %7068 = vmatpush1.bf16.msra.mxu0 %v7067_v19  ;;  %v7085_v19 = vpack.c.bf16 %v5517_v6, %v5514_v49  ;;  %v7149_v12 = vpack.c.bf16 %v5518_v17, %v5515_v2  ;;  %v5525_v2 = vld [vmem:[%s11097_s8 + $0xc00] sm:$0xff]  ;;  %v5528_v17 = vld [vmem:[%s11097_s8 + $0xc18] sm:$0xff] }
 0x568   : > { %5409 = vmatmul.mubr.msk.f32.gmra.mrb[170].mxu0 %vm2309_vm4, %v7389_v45  ;;  %6373 = vmatmul.mubr.msk.f32.gmra.mrb[230].mxu1 %vm2309_vm4, %v7389_v45  ;;  %v5523_v45 = vld [vmem:[%s11097_s8 + $0xbf0] sm:$0xff] }
 0x569   : > { %3623 = vmatprep.mubr.f32.mxu0 %v11184_v62  ;;  %6375 = vmatprep.mubr.msk.f32.mxu1 %vm7419_vm2, %v11184_v62  ;;  %v7089_v54 = vpack.c.bf16 %v5523_v45, %v5520_v8 }
 0x56a   : > { %7070 = vmatprep.subr.bf16.mxu0 %v7069_v60  ;;  %v5467_v60 = vld [vmem:[%s11097_s8 + $0xa30] sm:$0xff]  ;;  %7150 = vmatprep.subr.bf16.mxu1 %v7149_v12 }
 0x56b   : > { %7072 = vmatpush1.bf16.msra.mxu0 %v7071_v9  ;;  %v5470_v9 = vld [vmem:[%s11097_s8 + $0xa48] sm:$0xff] }
 0x56c   : > { %5410 = vmatmul.mubr.msk.f32.gmra.mrb[172].mxu0 %vm2309_vm4, %v7390_v37  ;;  %6376 = vmatmul.mubr.msk.f32.gmra.mrb[232].mxu1 %vm2309_vm4, %v7390_v37  ;;  %v7151_v0 = vpack.c.bf16 %v5470_v9, %v5467_v60  ;;  %v5535_v9 = vld [vmem:[%s11097_s8 + $0xc50] sm:$0xff] }
 0x56d   : > { %3629 = vmatprep.mubr.f32.mxu0 %v11184_v62  ;;  %6378 = vmatprep.mubr.msk.f32.mxu1 %vm7419_vm2, %v11184_v62 }
 0x56e   : > { %7074 = vmatprep.subr.bf16.mxu0 %v7073_v58  ;;  %7152 = vmatpush3.bf16.msra.mxu1 %v7151_v0  ;;  %v5524_v58 = vld [vmem:[%s11097_s8 + $0xbf8] sm:$0xff] }
 0x56f   : > { %7076 = vmatpush1.bf16.msra.mxu0 %v7075_v46  ;;  %v5519_v46 = vld [vmem:[%s11097_s8 + $0xbd0] sm:$0xff]  ;;  %v7153_v47 = vpack.c.bf16 %v5524_v58, %v5521_v1 }
 0x570   : > { %5411 = vmatmul.mubr.msk.f32.gmra.mrb[174].mxu0 %vm2309_vm4, %v7391_v51  ;;  %6379 = vmatmul.mubr.msk.f32.gmra.mrb[234].mxu1 %vm2309_vm4, %v7391_v51  ;;  %v7091_v37 = vpack.c.bf16 %v5522_v10, %v5519_v46  ;;  %v10231_v51 = vld [vmem:[%s11098_s9 + $0x3] sm:$0x7]  ;;  %v5531_v58 = vld [vmem:[%s11097_s8 + $0xc30] sm:$0xff]  ;;  %v7158_v46 = vpack.c.bf16 %v5530_v15, %v5527_v20 }
 0x571   : > { %3635 = vmatprep.mubr.f32.mxu0 %v11184_v62  ;;  %6381 = vmatprep.mubr.msk.f32.mxu1 %vm7419_vm2, %v11184_v62  ;;  %v10235_v25 = vrot.slane %v10231_v51, %v7966_v26  ;;  %v10239_v36 = vrot.slane %v10231_v51, %v7972_v39 }
 0x572   : > { %7078 = vmatprep.subr.bf16.mxu0 %v7077_v52  ;;  %v7155_v52 = vpack.c.bf16 %v5476_v33, %v5473_v11  ;;  %7154 = vmatprep.subr.bf16.mxu1 %v7153_v47  ;;  %v5534_v11 = vld [vmem:[%s11097_s8 + $0xc48] sm:$0xff]  ;;  %v5533_v33 = vld [vmem:[%s11097_s8 + $0xc40] sm:$0xff] }
 0x573   : > { %7080 = vmatpush1.bf16.msra.mxu0 %v7079_v22  ;;  %v5526_v22 = vld [vmem:[%s11097_s8 + $0xc08] sm:$0xff] }
 0x574   : > { %5412 = vmatmul.mubr.msk.f32.gmra.mrb[176].mxu0 %vm2309_vm4, %v7392_v40  ;;  %6382 = vmatmul.mubr.msk.f32.gmra.mrb[236].mxu1 %vm2309_vm4, %v7392_v40  ;;  %v7093_v31 = vpack.c.bf16 %v5529_v30, %v5526_v22 }
 0x575   : > { %3641 = vmatprep.mubr.f32.mxu0 %v11184_v62  ;;  %6384 = vmatprep.mubr.msk.f32.mxu1 %vm7419_vm2, %v11184_v62 }
 0x576   : > { %7082 = vmatprep.subr.bf16.mxu0 %v7081_v14  ;;  %7156 = vmatpush3.bf16.msra.mxu1 %v7155_v52  ;;  %v5536_v52 = vld [vmem:[%s11097_s8 + $0xc58] sm:$0xff] }
 0x577   : > { %7084 = vmatpush1.bf16.msra.mxu0 %v7083_v41  ;;  %7157 = vmatprep.subr.bf16.mxu1 %v11183_v57 }
 0x578   : > { %5413 = vmatmul.mubr.msk.f32.gmra.mrb[178].mxu0 %vm2309_vm4, %v7393_v21  ;;  %6385 = vmatmul.mubr.msk.f32.gmra.mrb[238].mxu1 %vm2309_vm4, %v7393_v21 }
 0x579   : > { %7086 = vmatprep.subr.bf16.mxu0 %v7085_v19 }
 0x57b   : > { %7088 = vmatpush1.bf16.msra.mxu0 %v7087_v48 }
 0x57c   : > { %7090 = vmatprep.subr.bf16.mxu0 %v7089_v54 }
 0x57f   : > { %7092 = vmatpush1.bf16.msra.mxu0 %v7091_v37 }
 0x580   : > { %7094 = vmatprep.subr.bf16.mxu0 %v7093_v31 }
 0x613   : > { %v3559_v14 = vpop.f32.mrb[150].mxu0  ;;  %v10241_v41 = vpop.f32.mrb[210].mxu1 }
 0x614   : > { %v3560_v40 = vadd.f32 %v3559_v14, %v10235_v25  ;;  %v3561_v21 = vpop.f32.mrb[151].mxu0  ;;  %v6344_v49 = vpop.f32.mrb[211].mxu1  ;;  %v5541_v14 = vld [vmem:[%s11097_s8 + $0xc80] sm:$0xff] }
 0x615   : > { %v3562_v6 = vadd.f32 %v3561_v21, %v10239_v36 }
 0x616   : > { %v3788_v19 = vadd.f32 %v3560_v40, %v9326_v32  ;;  %v5532_v32 = vld [vmem:[%s11097_s8 + $0xc38] sm:$0xff] }
 0x617   : > { %v3789_v12 = vadd.f32 %v3562_v6, %v9320_v18  ;;  %v3565_v48 = vpop.f32.mrb[152].mxu0  ;;  %v10259_v60 = vpop.f32.mrb[212].mxu1  ;;  %v7095_v18 = vpack.c.bf16 %v5528_v17, %v5525_v2  ;;  %v7097_v37 = vpack.c.bf16 %v5535_v9, %v5532_v32  ;;  %v7099_v2 = vpack.c.bf16 %v5534_v11, %v5531_v58  ;;  %v5539_v32 = vld [vmem:[%s11097_s8 + $0xc70] sm:$0xff]  ;;  %v5542_v9 = vld [vmem:[%s11097_s8 + $0xc88] sm:$0xff] }
 0x618   : > { %v3566_v0 = vadd.f32 %v3565_v48, %v10235_v25  ;;  %v3567_v8 = vpop.f32.mrb[153].mxu0  ;;  %v6347_v45 = vpop.f32.mrb[213].mxu1  ;;  %v10274_v10 = vmax.f32 %v3788_v19, 0.0  ;;  %v5537_v19 = vld [vmem:[%s11097_s8 + $0xc60] sm:$0xff]  ;;  %v7161_v17 = vpack.c.bf16 %v5536_v52, %v5533_v33  ;;  %v5540_v48 = vld [vmem:[%s11097_s8 + $0xc78] sm:$0xff]  ;;  %v5543_v11 = vld [vmem:[%s11097_s8 + $0xc90] sm:$0xff]  ;;  %v7164_v33 = vpack.c.bf16 %v5542_v9, %v5539_v32 }
 0x619   : > { %v10268_v1 = vmax.f32 %v3789_v12, 0.0  ;;  %v3568_v54 = vadd.f32 %v3567_v8, %v10239_v36  ;;  %v5544_v45 = vld [vmem:[%s11097_s8 + $0xc98] sm:$0xff]  ;;  %v5549_v32 = vld [vmem:[%s11097_s8 + $0xcc0] sm:$0xff] }
 0x61a   : > { %v3791_v47 = vadd.f32 %v3566_v0, %v9358_v24  ;;  %v5538_v24 = vld [vmem:[%s11097_s8 + $0xc68] sm:$0xff] }
 0x61b   : > { %v3792_v22 = vadd.f32 %v3568_v54, %v9352_v4  ;;  %v3571_v30 = vpop.f32.mrb[154].mxu0  ;;  %v10287_v31 = vpop.f32.mrb[214].mxu1  ;;  %4087 = vmatprep.mubr.f32.mxu0 %v10268_v1  ;;  %4397 = vmatprep.mubr.f32.mxu1 %v10268_v1  ;;  %v7101_v12 = vpack.c.bf16 %v5541_v14, %v5538_v24  ;;  %v5547_v54 = vld [vmem:[%s11097_s8 + $0xcb0] sm:$0xff]  ;;  %v5546_v24 = vld [vmem:[%s11097_s8 + $0xca8] sm:$0xff]  ;;  %v5545_v14 = vld [vmem:[%s11097_s8 + $0xca0] sm:$0xff] }
 0x61c   : > { %v3572_v40 = vadd.f32 %v3571_v30, %v10235_v25  ;;  %v3573_v21 = vpop.f32.mrb[155].mxu0  ;;  %4088 = vmatmul.mubr.f32.vlgmr.msra.gmra.mrb[180].mxu0 %v10274_v10  ;;  %4398 = vmatmul.mubr.f32.vlgmr.msra.gmra.mrb[240].mxu1 %v10274_v10  ;;  %v6350_v4 = vpop.f32.mrb[215].mxu1  ;;  %v10306_v20 = vmax.f32 %v3791_v47, 0.0  ;;  %v7105_v30 = vpack.c.bf16 %v5547_v54, %v5544_v45  ;;  %v5552_v54 = vld [vmem:[%s11097_s8 + $0xcd8] sm:$0xff] }
 0x61d   : > { %v10300_v49 = vmax.f32 %v3792_v22, 0.0  ;;  %v3574_v6 = vadd.f32 %v3573_v21, %v10239_v36  ;;  %7096 = vmatpush1.bf16.msra.mxu0 %v7095_v18  ;;  %7159 = vmatpush3.bf16.msra.mxu1 %v7158_v46 }
 0x61e   : > { %v3794_v15 = vadd.f32 %v3572_v40, %v9391_v50  ;;  %7098 = vmatprep.subr.bf16.mxu0 %v7097_v37  ;;  %7160 = vmatprep.subr.bf16.mxu1 %v11183_v57  ;;  %v7103_v37 = vpack.c.bf16 %v5540_v48, %v5537_v19  ;;  %v5548_v40 = vld [vmem:[%s11097_s8 + $0xcb8] sm:$0xff]  ;;  %v7107_v48 = vpack.c.bf16 %v5546_v24, %v5543_v11  ;;  %v5559_v11 = vld [vmem:[%s11097_s8 + $0xd10] sm:$0xff] }
 0x61f   : > { %v3795_v0 = vadd.f32 %v3574_v6, %v9385_v5  ;;  %v3577_v8 = vpop.f32.mrb[156].mxu0  ;;  %v10320_v50 = vpop.f32.mrb[216].mxu1  ;;  %4093 = vmatprep.mubr.f32.mxu0 %v10300_v49  ;;  %4402 = vmatprep.mubr.f32.mxu1 %v10300_v49  ;;  %v5550_v6 = vld [vmem:[%s11097_s8 + $0xcc8] sm:$0xff]  ;;  %v7167_v9 = vpack.c.bf16 %v5548_v40, %v5545_v14  ;;  %v7111_v14 = vpack.c.bf16 %v5552_v54, %v5549_v32 }
 0x620   : > { %v3578_v18 = vadd.f32 %v3577_v8, %v10235_v25  ;;  %v3579_v58 = vpop.f32.mrb[157].mxu0  ;;  %4094 = vmatmul.mubr.f32.gmra.mrb[182].mxu0 %v10306_v20  ;;  %4403 = vmatmul.mubr.f32.gmra.mrb[242].mxu1 %v10306_v20  ;;  %v6353_v5 = vpop.f32.mrb[217].mxu1  ;;  %v10339_v52 = vmax.f32 %v3794_v15, 0.0  ;;  %v5562_v32 = vld [vmem:[%s11097_s8 + $0xd28] sm:$0xff] }
 0x621   : > { %v10333_v46 = vmax.f32 %v3795_v0, 0.0  ;;  %v3580_v47 = vadd.f32 %v3579_v58, %v10239_v36  ;;  %7100 = vmatpush1.bf16.msra.mxu0 %v7099_v2  ;;  %7162 = vmatpush3.bf16.msra.mxu1 %v7161_v17  ;;  %v5553_v2 = vld [vmem:[%s11097_s8 + $0xce0] sm:$0xff]  ;;  %v5554_v58 = vld [vmem:[%s11097_s8 + $0xce8] sm:$0xff] }
 0x622   : > { %v3797_v22 = vadd.f32 %v3578_v18, %v9424_v27  ;;  %7102 = vmatprep.subr.bf16.mxu0 %v7101_v12  ;;  %7163 = vmatprep.subr.bf16.mxu1 %v11183_v57  ;;  %v7109_v45 = vpack.c.bf16 %v5553_v2, %v5550_v6  ;;  %v5551_v18 = vld [vmem:[%s11097_s8 + $0xcd0] sm:$0xff] }
 0x623   : > { %v3798_v21 = vadd.f32 %v3580_v47, %v9418_v44  ;;  %v3583_v4 = vpop.f32.mrb[158].mxu0  ;;  %v10353_v27 = vpop.f32.mrb[218].mxu1  ;;  %4099 = vmatprep.mubr.f32.mxu0 %v10333_v46  ;;  %4407 = vmatprep.mubr.f32.mxu1 %v10333_v46  ;;  %v7170_v40 = vpack.c.bf16 %v5554_v58, %v5551_v18 }
 0x624   : > { %v3584_v19 = vadd.f32 %v3583_v4, %v10235_v25  ;;  %v3585_v17 = vpop.f32.mrb[159].mxu0  ;;  %4100 = vmatmul.mubr.f32.gmra.mrb[184].mxu0 %v10339_v52  ;;  %4408 = vmatmul.mubr.f32.gmra.mrb[244].mxu1 %v10339_v52  ;;  %v6356_v44 = vpop.f32.mrb[219].mxu1  ;;  %v10372_v0 = vmax.f32 %v3797_v22, 0.0 }
 0x625   : > { %v10366_v15 = vmax.f32 %v3798_v21, 0.0  ;;  %v3586_v12 = vadd.f32 %v3585_v17, %v10239_v36  ;;  %7104 = vmatpush1.bf16.msra.mxu0 %v7103_v37  ;;  %7165 = vmatpush3.bf16.msra.mxu1 %v7164_v33  ;;  %v5556_v37 = vld [vmem:[%s11097_s8 + $0xcf8] sm:$0xff]  ;;  %v5555_v21 = vld [vmem:[%s11097_s8 + $0xcf0] sm:$0xff]  ;;  %v5557_v17 = vld [vmem:[%s11097_s8 + $0xd00] sm:$0xff] }
 0x626   : > { %v3800_v8 = vadd.f32 %v3584_v19, %v9457_v61  ;;  %7106 = vmatprep.subr.bf16.mxu0 %v7105_v30  ;;  %7166 = vmatprep.subr.bf16.mxu1 %v11183_v57  ;;  %v7113_v2 = vpack.c.bf16 %v5559_v11, %v5556_v37  ;;  %v5558_v19 = vld [vmem:[%s11097_s8 + $0xd08] sm:$0xff]  ;;  %v5560_v44 = vld [vmem:[%s11097_s8 + $0xd18] sm:$0xff] }
 0x627   : > { %v3801_v5 = vadd.f32 %v3586_v12, %v9451_v28  ;;  %v3589_v47 = vpop.f32.mrb[160].mxu0  ;;  %v10386_v61 = vpop.f32.mrb[220].mxu1  ;;  %4105 = vmatprep.mubr.f32.mxu0 %v10366_v15  ;;  %4412 = vmatprep.mubr.f32.mxu1 %v10366_v15  ;;  %v7115_v58 = vpack.c.bf16 %v5558_v19, %v5555_v21  ;;  %v5568_v21 = vld [vmem:[%s11097_s8 + $0xd58] sm:$0xff] }
 0x628   : > { %v3590_v33 = vadd.f32 %v3589_v47, %v10235_v25  ;;  %v3591_v22 = vpop.f32.mrb[161].mxu0  ;;  %4106 = vmatmul.mubr.f32.gmra.mrb[186].mxu0 %v10372_v0  ;;  %4413 = vmatmul.mubr.f32.gmra.mrb[246].mxu1 %v10372_v0  ;;  %v6359_v28 = vpop.f32.mrb[221].mxu1  ;;  %v10405_v4 = vmax.f32 %v3800_v8, 0.0  ;;  %v5561_v47 = vld [vmem:[%s11097_s8 + $0xd20] sm:$0xff] }
 0x629   : > { %v10399_v30 = vmax.f32 %v3801_v5, 0.0  ;;  %v3592_v24 = vadd.f32 %v3591_v22, %v10239_v36  ;;  %7108 = vmatpush1.bf16.msra.mxu0 %v7107_v48  ;;  %7168 = vmatpush3.bf16.msra.mxu1 %v7167_v9  ;;  %v5565_v9 = vld [vmem:[%s11097_s8 + $0xd40] sm:$0xff]  ;;  %v7173_v5 = vpack.c.bf16 %v5560_v44, %v5557_v17  ;;  %v5564_v22 = vld [vmem:[%s11097_s8 + $0xd38] sm:$0xff]  ;;  %v5563_v28 = vld [vmem:[%s11097_s8 + $0xd30] sm:$0xff] }
 0x62a   : > { %v3803_v6 = vadd.f32 %v3590_v33, %v9490_v63  ;;  %7110 = vmatprep.subr.bf16.mxu0 %v7109_v45  ;;  %7169 = vmatprep.subr.bf16.mxu1 %v11183_v57  ;;  %v7117_v33 = vpack.c.bf16 %v5565_v9, %v5562_v32  ;;  %v5567_v32 = vld [vmem:[%s11097_s8 + $0xd50] sm:$0xff] }
 0x62b   : > { %v3804_v12 = vadd.f32 %v3592_v24, %v9484_v13  ;;  %v3595_v48 = vpop.f32.mrb[162].mxu0  ;;  %v10419_v63 = vpop.f32.mrb[222].mxu1  ;;  %4111 = vmatprep.mubr.f32.mxu0 %v10399_v30  ;;  %4417 = vmatprep.mubr.f32.mxu1 %v10399_v30  ;;  %v5566_v24 = vld [vmem:[%s11097_s8 + $0xd48] sm:$0xff] }
 0x62c   : > { %v3596_v8 = vadd.f32 %v3595_v48, %v10235_v25  ;;  %v3597_v45 = vpop.f32.mrb[163].mxu0  ;;  %4112 = vmatmul.mubr.f32.gmra.mrb[188].mxu0 %v10405_v4  ;;  %4418 = vmatmul.mubr.f32.gmra.mrb[248].mxu1 %v10405_v4  ;;  %v6362_v13 = vpop.f32.mrb[223].mxu1  ;;  %v10438_v37 = vmax.f32 %v3803_v6, 0.0  ;;  %v5571_v6 = vld [vmem:[%s11097_s8 + $0xd70] sm:$0xff]  ;;  %v7176_v48 = vpack.c.bf16 %v5566_v24, %v5563_v28 }
 0x62d   : > { %v10432_v54 = vmax.f32 %v3804_v12, 0.0  ;;  %v3598_v18 = vadd.f32 %v3597_v45, %v10239_v36  ;;  %7112 = vmatpush1.bf16.msra.mxu0 %v7111_v14  ;;  %7171 = vmatpush3.bf16.msra.mxu1 %v7170_v40  ;;  %v7119_v12 = vpack.c.bf16 %v5564_v22, %v5561_v47  ;;  %v7121_v45 = vpack.c.bf16 %v5571_v6, %v5568_v21  ;;  %v5570_v13 = vld [vmem:[%s11097_s8 + $0xd68] sm:$0xff] }
 0x62e   : > { %v3806_v11 = vadd.f32 %v3596_v8, %v9523_v34  ;;  %7114 = vmatprep.subr.bf16.mxu0 %v7113_v2  ;;  %7172 = vmatprep.subr.bf16.mxu1 %v11183_v57 }
 0x62f   : > { %v3807_v14 = vadd.f32 %v3598_v18, %v9517_v43  ;;  %v3601_v40 = vpop.f32.mrb[164].mxu0  ;;  %v10452_v34 = vpop.f32.mrb[224].mxu1  ;;  %4117 = vmatprep.mubr.f32.mxu0 %v10432_v54  ;;  %4422 = vmatprep.mubr.f32.mxu1 %v10432_v54  ;;  %v5569_v18 = vld [vmem:[%s11097_s8 + $0xd60] sm:$0xff] }
 0x630   : > { %v3602_v2 = vadd.f32 %v3601_v40, %v10235_v25  ;;  %v3603_v19 = vpop.f32.mrb[165].mxu0  ;;  %4118 = vmatmul.mubr.f32.gmra.mrb[190].mxu0 %v10438_v37  ;;  %4423 = vmatmul.mubr.f32.gmra.mrb[250].mxu1 %v10438_v37  ;;  %v6365_v43 = vpop.f32.mrb[225].mxu1  ;;  %v10471_v9 = vmax.f32 %v3806_v11, 0.0 }
 0x631   : > { %v10465_v17 = vmax.f32 %v3807_v14, 0.0  ;;  %v3604_v44 = vadd.f32 %v3603_v19, %v10239_v36  ;;  %7116 = vmatpush1.bf16.msra.mxu0 %v7115_v58  ;;  %7174 = vmatpush3.bf16.msra.mxu1 %v7173_v5  ;;  %v5572_v58 = vld [vmem:[%s11097_s8 + $0xd78] sm:$0xff] }
 0x632   : > { %v3809_v8 = vadd.f32 %v3602_v2, %v9547_v7  ;;  %7118 = vmatprep.subr.bf16.mxu0 %v7117_v33  ;;  %7175 = vmatprep.subr.bf16.mxu1 %v11183_v57  ;;  %v7179_v14 = vpack.c.bf16 %v5572_v58, %v5569_v18 }
 0x633   : > { %v3810_v5 = vadd.f32 %v3604_v44, %v9544_v55  ;;  %v3607_v47 = vpop.f32.mrb[166].mxu0  ;;  %v10485_v7 = vpop.f32.mrb[226].mxu1  ;;  %4123 = vmatprep.mubr.f32.mxu0 %v10465_v17  ;;  %4427 = vmatprep.mubr.f32.mxu1 %v10465_v17  ;;  %v7123_v55 = vpack.c.bf16 %v5570_v13, %v5567_v32 }
 0x634   : > { %v3608_v11 = vadd.f32 %v3607_v47, %v10235_v25  ;;  %v3609_v33 = vpop.f32.mrb[167].mxu0  ;;  %4124 = vmatmul.mubr.f32.gmra.mrb[192].mxu0 %v10471_v9  ;;  %4428 = vmatmul.mubr.f32.gmra.mrb[252].mxu1 %v10471_v9  ;;  %v6368_v22 = vpop.f32.mrb[227].mxu1  ;;  %v10495_v40 = vmax.f32 %v3809_v8, 0.0 }
 0x635   : > { %v10492_v28 = vmax.f32 %v3810_v5, 0.0  ;;  %v3610_v24 = vadd.f32 %v3609_v33, %v10239_v36  ;;  %7120 = vmatpush1.bf16.msra.mxu0 %v7119_v12  ;;  %7177 = vmatpush3.bf16.msra.mxu1 %v7176_v48 }
 0x636   : > { %v3812_v21 = vadd.f32 %v3608_v11, %v9562_v29  ;;  %7122 = vmatprep.subr.bf16.mxu0 %v7121_v45  ;;  %7178 = vmatprep.subr.bf16.mxu1 %v11183_v57 }
 0x637   : > { %v3813_v6 = vadd.f32 %v3610_v24, %v9559_v38  ;;  %v3613_v2 = vpop.f32.mrb[168].mxu0  ;;  %v10500_v19 = vpop.f32.mrb[228].mxu1  ;;  %4129 = vmatprep.mubr.f32.mxu0 %v10492_v28  ;;  %4432 = vmatprep.mubr.f32.mxu1 %v10492_v28 }
 0x638   : > { %v3614_v43 = vadd.f32 %v3613_v2, %v10235_v25  ;;  %v3615_v44 = vpop.f32.mrb[169].mxu0  ;;  %4130 = vmatmul.mubr.f32.gmra.mrb[194].mxu0 %v10495_v40  ;;  %4433 = vmatmul.mubr.f32.gmra.mrb[254].mxu1 %v10495_v40  ;;  %v6371_v29 = vpop.f32.mrb[229].mxu1  ;;  %v10510_v38 = vmax.f32 %v3812_v21, 0.0 }
 0x639   : > { %v10507_v12 = vmax.f32 %v3813_v6, 0.0  ;;  %v3616_v48 = vadd.f32 %v3615_v44, %v10239_v36  ;;  %7124 = vmatpush1.bf16.msra.mxu0 %v7123_v55  ;;  %7180 = vmatpush3.bf16.msra.mxu1 %v7179_v14 }
 0x63a   : > { %v3815_v32 = vadd.f32 %v3614_v43, %v9577_v59  ;;  %7230 = vmatprep.subr.bf16.mxu1 %v11183_v57 }
 0x63b   : > { %11223 = vst [vmem:[#allocation22_spill] sm:$0xff] %v10507_v12  ;;  %v3816_v8 = vadd.f32 %v3616_v48, %v9574_v35  ;;  %v3619_v45 = vpop.f32.mrb[170].mxu0  ;;  %v10515_v13 = vpop.f32.mrb[230].mxu1  ;;  %4135 = vmatprep.mubr.f32.mxu0 %v10507_v12  ;;  %4437 = vmatprep.mubr.f32.mxu1 %v10507_v12 }
 0x63c   : > { %v3620_v18 = vadd.f32 %v3619_v45, %v10235_v25  ;;  %v3621_v58 = vpop.f32.mrb[171].mxu0  ;;  %4136 = vmatmul.mubr.f32.gmra.mrb[196].mxu0 %v10510_v38  ;;  %4438 = vmatmul.mubr.f32.gmra.mrb[30].mxu1 %v10510_v38  ;;  %v6374_v5 = vpop.f32.mrb[231].mxu1  ;;  %v10525_v35 = vmax.f32 %v3815_v32, 0.0 }
 0x63d   : > { %v10522_v59 = vmax.f32 %v3816_v8, 0.0  ;;  %v3622_v47 = vadd.f32 %v3621_v58, %v10239_v36 }
 0x63e   : > { %11225 = vst [vmem:[#allocation24_spill] sm:$0xff] %v10525_v35  ;;  %v3818_v11 = vadd.f32 %v3620_v18, %v9591_v56 }
 0x63f   : > { %11224 = vst [vmem:[#allocation23_spill] sm:$0xff] %v10522_v59  ;;  %v3819_v33 = vadd.f32 %v3622_v47, %v9588_v53  ;;  %v3625_v22 = vpop.f32.mrb[172].mxu0  ;;  %v10529_v24 = vpop.f32.mrb[232].mxu1  ;;  %4141 = vmatprep.mubr.f32.mxu0 %v10522_v59  ;;  %4442 = vmatprep.mubr.f32.mxu1 %v10522_v59 }
 0x640   : > { %v3626_v55 = vadd.f32 %v3625_v22, %v10235_v25  ;;  %v3627_v14 = vpop.f32.mrb[173].mxu0  ;;  %4142 = vmatmul.mubr.f32.gmra.mrb[198].mxu0 %v10525_v35  ;;  %4443 = vmatmul.mubr.f32.gmra.mrb[32].mxu1 %v10525_v35  ;;  %v6377_v21 = vpop.f32.mrb[233].mxu1  ;;  %v10539_v53 = vmax.f32 %v3818_v11, 0.0 }
 0x641   : > { %v10536_v6 = vmax.f32 %v3819_v33, 0.0  ;;  %v3628_v56 = vadd.f32 %v3627_v14, %v10239_v36 }
 0x642   : > { %11227 = vst [vmem:[#allocation26_spill] sm:$0xff] %v10539_v53  ;;  %v3821_v2 = vadd.f32 %v3626_v55, %v9605_v23 }
 0x643   : > { %11226 = vst [vmem:[#allocation25_spill] sm:$0xff] %v10536_v6  ;;  %v3822_v43 = vadd.f32 %v3628_v56, %v9602_v16  ;;  %v3631_v44 = vpop.f32.mrb[174].mxu0  ;;  %v10543_v29 = vpop.f32.mrb[234].mxu1  ;;  %4147 = vmatprep.mubr.f32.mxu0 %v10536_v6  ;;  %4447 = vmatprep.mubr.f32.mxu1 %v10536_v6  ;;  %v11233_v56 = vld [vmem:[#allocation3_spill] sm:$0xff] }
 0x644   : > { %v3632_v48 = vadd.f32 %v3631_v44, %v10235_v25  ;;  %v3633_v32 = vpop.f32.mrb[175].mxu0  ;;  %4148 = vmatmul.mubr.f32.gmra.mrb[200].mxu0 %v10539_v53  ;;  %4448 = vmatmul.mubr.f32.gmra.mrb[34].mxu1 %v10539_v53  ;;  %v6380_v8 = vpop.f32.mrb[235].mxu1  ;;  %v10553_v16 = vmax.f32 %v3821_v2, 0.0 }
 0x645   : > { %v10550_v45 = vmax.f32 %v3822_v43, 0.0  ;;  %v3634_v23 = vadd.f32 %v3633_v32, %v10239_v36  ;;  %v11234_v43 = vld [vmem:[#allocation4_spill] sm:$0xff] }
 0x646   : > { %11229 = vst [vmem:[#allocation28_spill] sm:$0xff] %v10553_v16  ;;  %v3824_v18 = vadd.f32 %v3632_v48, %v9623_v42 }
 0x647   : > { %11228 = vst [vmem:[#allocation27_spill] sm:$0xff] %v10550_v45  ;;  %v3825_v58 = vadd.f32 %v3634_v23, %v9616_v3  ;;  %v3637_v5 = vpop.f32.mrb[176].mxu0  ;;  %v10557_v47 = vpop.f32.mrb[236].mxu1  ;;  %4153 = vmatprep.mubr.f32.mxu0 %v10550_v45  ;;  %4452 = vmatprep.mubr.f32.mxu1 %v10550_v45  ;;  %v11231_v3 = vld [vmem:[#allocation2_spill] sm:$0xff] }
 0x648   : > { %v3638_v11 = vadd.f32 %v3637_v5, %v10235_v25  ;;  %v3639_v33 = vpop.f32.mrb[177].mxu0  ;;  %4154 = vmatmul.mubr.f32.gmra.mrb[202].mxu0 %v10553_v16  ;;  %4453 = vmatmul.mubr.f32.gmra.mrb[36].mxu1 %v10553_v16  ;;  %v6383_v22 = vpop.f32.mrb[237].mxu1  ;;  %v10569_v14 = vrot.slane %v10231_v51, %v11231_v3  ;;  %v10571_v21 = vmax.f32 %v3824_v18, 0.0 }
 0x649   : > { %v10564_v55 = vmax.f32 %v3825_v58, 0.0  ;;  %v3640_v42 = vadd.f32 %v3639_v33, %v10239_v36  ;;  %v11237_v33 = vld [vmem:[#allocation5_spill] sm:$0xff] }
 0x64a   : > { %11232 = vst [vmem:[#allocation2_spill] sm:$0xff] %v10571_v21  ;;  %v3827_v2 = vadd.f32 %v3638_v11, %v11233_v56  ;;  %v3715_v5 = vadd.f32 %v10241_v41, %v10569_v14  ;;  %v3720_v41 = vadd.f32 %v10259_v60, %v10569_v14  ;;  %v3725_v60 = vadd.f32 %v10287_v31, %v10569_v14 }
 0x64b   : > { %11230 = vst [vmem:[#allocation29_spill] sm:$0xff] %v10564_v55  ;;  %v3828_v44 = vadd.f32 %v3640_v42, %v11234_v43  ;;  %v3643_v48 = vpop.f32.mrb[178].mxu0  ;;  %v10575_v32 = vpop.f32.mrb[238].mxu1  ;;  %4159 = vmatprep.mubr.f32.mxu0 %v10564_v55  ;;  %4457 = vmatprep.mubr.f32.mxu1 %v10564_v55  ;;  %v11238_v42 = vld [vmem:[#allocation6_spill] sm:$0xff] }
 0x64c   : > { %v3644_v8 = vadd.f32 %v3643_v48, %v10235_v25  ;;  %v3645_v23 = vpop.f32.mrb[179].mxu0  ;;  %4160 = vmatmul.mubr.f32.gmra.mrb[204].mxu0 %v10571_v21  ;;  %4458 = vmatmul.mubr.f32.gmra.mrb[38].mxu1 %v10571_v21  ;;  %v6386_v51 = vpop.f32.mrb[239].mxu1  ;;  %v10587_v11 = vmax.f32 %v3827_v2, 0.0  ;;  %v11243_v48 = vld [vmem:[#allocation8_spill] sm:$0xff] }
 0x64d   : > { %v10582_v18 = vmax.f32 %v3828_v44, 0.0  ;;  %v3646_v58 = vadd.f32 %v3645_v23, %v10239_v36  ;;  %v11240_v36 = vld [vmem:[#allocation7_spill] sm:$0xff]  ;;  %v11245_v51 = vld [vmem:[#allocation9_spill] sm:$0xff] }
 0x64e   : > { %11236 = vst [vmem:[#allocation4_spill] sm:$0xff] %v10587_v11  ;;  %v3830_v22 = vadd.f32 %v3644_v8, %v11237_v33  ;;  %v3790_v43 = vadd.f32 %v3715_v5, %v11240_v36  ;;  %v3793_v8 = vadd.f32 %v3720_v41, %v11243_v48  ;;  %v3730_v5 = vadd.f32 %v10320_v50, %v10569_v14  ;;  %v11247_v33 = vld [vmem:[#allocation10_spill] sm:$0xff]  ;;  %v11251_v41 = vld [vmem:[#allocation12_spill] sm:$0xff] }
 0x64f   : > { %11235 = vst [vmem:[#allocation3_spill] sm:$0xff] %v10582_v18  ;;  %v3831_v56 = vadd.f32 %v3646_v58, %v11238_v42  ;;  %4165 = vmatprep.mubr.f32.mxu0 %v10582_v18  ;;  %4462 = vmatprep.mubr.f32.mxu1 %v10582_v18  ;;  %v3796_v58 = vadd.f32 %v3725_v60, %v11245_v51  ;;  %v11252_v60 = vld [vmem:[#allocation13_spill] sm:$0xff] }
 0x650   : > { %4166 = vmatmul.mubr.f32.gmra.mrb[206].mxu0 %v10587_v11  ;;  %4463 = vmatmul.mubr.f32.gmra.mrb[40].mxu1 %v10587_v11  ;;  %v10600_v2 = vmax.f32 %v3830_v22, 0.0  ;;  %v10609_v44 = vmax.f32 %v3790_v43, 0.0  ;;  %v10619_v23 = vmax.f32 %v3793_v8, 0.0  ;;  %v3799_v22 = vadd.f32 %v3730_v5, %v11247_v33  ;;  %v11253_v5 = vld [vmem:[#allocation14_spill] sm:$0xff] }
 0x651   : > { %v10595_v25 = vmax.f32 %v3831_v56, 0.0  ;;  %v10629_v31 = vmax.f32 %v3796_v58, 0.0  ;;  %v3735_v42 = vadd.f32 %v10353_v27, %v10569_v14  ;;  %v11249_v56 = vld [vmem:[#allocation11_spill] sm:$0xff]  ;;  %v3740_v43 = vadd.f32 %v10386_v61, %v10569_v14 }
 0x652   : > { %11241 = vst [vmem:[#allocation6_spill] sm:$0xff] %v10600_v2  ;;  %11242 = vst [vmem:[#allocation7_spill] sm:$0xff] %v10609_v44  ;;  %v10639_v50 = vmax.f32 %v3799_v22, 0.0  ;;  %v3745_v8 = vadd.f32 %v10419_v63, %v10569_v14  ;;  %v3750_v58 = vadd.f32 %v10452_v34, %v10569_v14  ;;  %v3755_v22 = vadd.f32 %v10485_v7, %v10569_v14 }
 0x653   : > { %11239 = vst [vmem:[#allocation5_spill] sm:$0xff] %v10595_v25  ;;  %4171 = vmatprep.mubr.f32.mxu0 %v10595_v25  ;;  %4467 = vmatprep.mubr.f32.mxu1 %v10595_v25  ;;  %11244 = vst [vmem:[#allocation8_spill] sm:$0xff] %v10619_v23  ;;  %v3802_v36 = vadd.f32 %v3735_v42, %v11249_v56  ;;  %v3805_v48 = vadd.f32 %v3740_v43, %v11251_v41  ;;  %v11254_v42 = vld [vmem:[#allocation15_spill] sm:$0xff]  ;;  %v11255_v43 = vld [vmem:[#allocation16_spill] sm:$0xff] }
 0x654   : > { %4172 = vmatmul.mubr.f32.gmra.mrb[208].mxu0 %v10600_v2  ;;  %4468 = vmatmul.mubr.f32.gmra.mrb[42].mxu1 %v10600_v2  ;;  %11246 = vst [vmem:[#allocation9_spill] sm:$0xff] %v10629_v31  ;;  %11248 = vst [vmem:[#allocation10_spill] sm:$0xff] %v10639_v50  ;;  %v3808_v51 = vadd.f32 %v3745_v8, %v11252_v60  ;;  %v3811_v33 = vadd.f32 %v3750_v58, %v11253_v5  ;;  %v11256_v8 = vld [vmem:[#allocation17_spill] sm:$0xff]  ;;  %v11257_v58 = vld [vmem:[#allocation18_spill] sm:$0xff] }
 0x655   : > { %4242 = vmatprep.mubr.f32.mxu0 %v11184_v62  ;;  %6419 = vmatprep.mubr.msk.f32.mxu1 %vm7419_vm2, %v11184_v62  ;;  %v10649_v27 = vmax.f32 %v3802_v36, 0.0  ;;  %v10659_v61 = vmax.f32 %v3805_v48, 0.0  ;;  %v3814_v56 = vadd.f32 %v3755_v22, %v11254_v42  ;;  %v3760_v36 = vadd.f32 %v10500_v19, %v10569_v14  ;;  %v11258_v22 = vld [vmem:[#allocation19_spill] sm:$0xff] }
 0x656   : > { %v10669_v63 = vmax.f32 %v3808_v51, 0.0  ;;  %v10679_v34 = vmax.f32 %v3811_v33, 0.0  ;;  %v3765_v48 = vadd.f32 %v10515_v13, %v10569_v14  ;;  %v3770_v51 = vadd.f32 %v10529_v24, %v10569_v14 }
 0x657   : > { %11250 = vst [vmem:[#allocation11_spill] sm:$0xff] %v10649_v27  ;;  %v10689_v7 = vmax.f32 %v3814_v56, 0.0  ;;  %v3817_v41 = vadd.f32 %v3760_v36, %v11255_v43  ;;  %v3775_v33 = vadd.f32 %v10543_v29, %v10569_v14  ;;  %v3780_v56 = vadd.f32 %v10557_v47, %v10569_v14  ;;  %v11259_v36 = vld [vmem:[#allocation20_spill] sm:$0xff] }
 0x658   : > { %4243 = vmatmul.mubr.f32.vlgmr.msra.gmra.mrb[180].mxu0 %v10609_v44  ;;  %6420 = vmatmul.mubr.f32.vlgmr.msra.gmra.mrb[44].mxu1 %v10609_v44  ;;  %v3820_v60 = vadd.f32 %v3765_v48, %v11256_v8  ;;  %v3823_v5 = vadd.f32 %v3770_v51, %v11257_v58  ;;  %v11260_v48 = vld [vmem:[#allocation21_spill] sm:$0xff] }
 0x659   : > { %4248 = vmatprep.mubr.f32.mxu0 %v11184_v62  ;;  %6422 = vmatprep.mubr.msk.f32.mxu1 %vm7419_vm2, %v11184_v62  ;;  %v10699_v19 = vmax.f32 %v3817_v41, 0.0  ;;  %v3826_v42 = vadd.f32 %v3775_v33, %v11258_v22  ;;  %v3829_v43 = vadd.f32 %v3780_v56, %v11259_v36  ;;  %v3785_v41 = vadd.f32 %v10575_v32, %v10569_v14 }
 0x65a   : > { %v10709_v13 = vmax.f32 %v3820_v60, 0.0  ;;  %v10719_v24 = vmax.f32 %v3823_v5, 0.0 }
 0x65b   : > { %v10729_v29 = vmax.f32 %v3826_v42, 0.0  ;;  %v10739_v47 = vmax.f32 %v3829_v43, 0.0  ;;  %v3832_v8 = vadd.f32 %v3785_v41, %v11260_v48 }
 0x65c   : > { %4249 = vmatmul.mubr.f32.gmra.mrb[182].mxu0 %v10619_v23  ;;  %6423 = vmatmul.mubr.f32.gmra.mrb[46].mxu1 %v10619_v23 }
 0x65d   : > { %4254 = vmatprep.mubr.f32.mxu0 %v11184_v62  ;;  %6425 = vmatprep.mubr.msk.f32.mxu1 %vm7419_vm2, %v11184_v62  ;;  %v10747_v14 = vmax.f32 %v3832_v8, 0.0 }
 0x65f   : > { %11261 = vst [vmem:[#allocation12_spill] sm:$0xff] %v10747_v14 }
 0x660   : > { %4255 = vmatmul.mubr.f32.gmra.mrb[184].mxu0 %v10629_v31  ;;  %6426 = vmatmul.mubr.f32.gmra.mrb[48].mxu1 %v10629_v31 }
 0x661   : > { %4260 = vmatprep.mubr.f32.mxu0 %v11184_v62  ;;  %6428 = vmatprep.mubr.msk.f32.mxu1 %vm7419_vm2, %v11184_v62 }
 0x664   : > { %4261 = vmatmul.mubr.f32.gmra.mrb[186].mxu0 %v10639_v50  ;;  %6429 = vmatmul.mubr.f32.gmra.mrb[50].mxu1 %v10639_v50 }
 0x665   : > { %4266 = vmatprep.mubr.f32.mxu0 %v11184_v62  ;;  %6431 = vmatprep.mubr.msk.f32.mxu1 %vm7419_vm2, %v11184_v62 }
 0x668   : > { %4267 = vmatmul.mubr.f32.gmra.mrb[188].mxu0 %v10649_v27  ;;  %6432 = vmatmul.mubr.f32.gmra.mrb[52].mxu1 %v10649_v27 }
 0x669   : > { %4272 = vmatprep.mubr.f32.mxu0 %v11184_v62  ;;  %6434 = vmatprep.mubr.msk.f32.mxu1 %vm7419_vm2, %v11184_v62 }
 0x66c   : > { %4273 = vmatmul.mubr.f32.gmra.mrb[190].mxu0 %v10659_v61  ;;  %6435 = vmatmul.mubr.f32.gmra.mrb[54].mxu1 %v10659_v61 }
 0x66d   : > { %4278 = vmatprep.mubr.f32.mxu0 %v11184_v62  ;;  %6437 = vmatprep.mubr.msk.f32.mxu1 %vm7419_vm2, %v11184_v62 }
 0x670   : > { %4279 = vmatmul.mubr.f32.gmra.mrb[192].mxu0 %v10669_v63  ;;  %6438 = vmatmul.mubr.f32.gmra.mrb[56].mxu1 %v10669_v63 }
 0x671   : > { %4284 = vmatprep.mubr.f32.mxu0 %v11184_v62  ;;  %6440 = vmatprep.mubr.msk.f32.mxu1 %vm7419_vm2, %v11184_v62 }
 0x674   : > { %4285 = vmatmul.mubr.f32.gmra.mrb[194].mxu0 %v10679_v34  ;;  %6441 = vmatmul.mubr.f32.gmra.mrb[58].mxu1 %v10679_v34 }
 0x675   : > { %4290 = vmatprep.mubr.f32.mxu0 %v11184_v62  ;;  %6443 = vmatprep.mubr.msk.f32.mxu1 %vm7419_vm2, %v11184_v62 }
 0x678   : > { %4291 = vmatmul.mubr.f32.gmra.mrb[196].mxu0 %v10689_v7  ;;  %6444 = vmatmul.mubr.f32.gmra.mrb[0].mxu1 %v10689_v7 }
 0x679   : > { %4296 = vmatprep.mubr.f32.mxu0 %v11184_v62  ;;  %6446 = vmatprep.mubr.msk.f32.mxu1 %vm7419_vm2, %v11184_v62 }
 0x67c   : > { %4297 = vmatmul.mubr.f32.gmra.mrb[198].mxu0 %v10699_v19  ;;  %6447 = vmatmul.mubr.f32.gmra.mrb[2].mxu1 %v10699_v19 }
 0x67d   : > { %4302 = vmatprep.mubr.f32.mxu0 %v11184_v62  ;;  %6449 = vmatprep.mubr.msk.f32.mxu1 %vm7419_vm2, %v11184_v62 }
 0x680   : > { %4303 = vmatmul.mubr.f32.gmra.mrb[200].mxu0 %v10709_v13  ;;  %6450 = vmatmul.mubr.f32.gmra.mrb[4].mxu1 %v10709_v13 }
 0x681   : > { %4308 = vmatprep.mubr.f32.mxu0 %v11184_v62  ;;  %6452 = vmatprep.mubr.msk.f32.mxu1 %vm7419_vm2, %v11184_v62 }
 0x684   : > { %4309 = vmatmul.mubr.f32.gmra.mrb[202].mxu0 %v10719_v24  ;;  %6453 = vmatmul.mubr.f32.gmra.mrb[6].mxu1 %v10719_v24 }
 0x685   : > { %4314 = vmatprep.mubr.f32.mxu0 %v11184_v62  ;;  %6455 = vmatprep.mubr.msk.f32.mxu1 %vm7419_vm2, %v11184_v62 }
 0x688   : > { %4315 = vmatmul.mubr.f32.gmra.mrb[204].mxu0 %v10729_v29  ;;  %6456 = vmatmul.mubr.f32.gmra.mrb[8].mxu1 %v10729_v29 }
 0x689   : > { %4320 = vmatprep.mubr.f32.mxu0 %v11184_v62  ;;  %6458 = vmatprep.mubr.msk.f32.mxu1 %vm7419_vm2, %v11184_v62 }
 0x68c   : > { %4321 = vmatmul.mubr.f32.gmra.mrb[206].mxu0 %v10739_v47  ;;  %6459 = vmatmul.mubr.f32.gmra.mrb[10].mxu1 %v10739_v47 }
 0x68d   : > { %4326 = vmatprep.mubr.f32.mxu0 %v11184_v62  ;;  %6461 = vmatprep.mubr.msk.f32.mxu1 %vm7419_vm2, %v11184_v62 }
 0x690   : > { %4327 = vmatmul.mubr.f32.gmra.mrb[208].mxu0 %v10747_v14  ;;  %6462 = vmatmul.mubr.f32.gmra.mrb[12].mxu1 %v10747_v14 }
 0x691   : > { %4695 = vmatprep.mubr.f32.mxu0 %v11184_v62  ;;  %6509 = vmatprep.mubr.msk.f32.mxu1 %vm7419_vm2, %v11184_v62 }
 0x6ef   : > { %v5930_v32 = vpop.f32.mrb[240].mxu1 }
 0x6f0   : > { %v5931_v60 = vpop.f32.mrb[241].mxu1 }
 0x6f1   : > { %v5932_v51 = vadd.f32 %v5931_v60, %v5930_v32 }
 0x6f3   : > { %v5933_v58 = vpop.f32.mrb[242].mxu1 }
 0x6f4   : > { %v5934_v5 = vpop.f32.mrb[243].mxu1 }
 0x6f5   : > { %v5935_v33 = vadd.f32 %v5934_v5, %v5933_v58 }
 0x6f7   : > { %v5936_v22 = vpop.f32.mrb[244].mxu1 }
 0x6f8   : > { %v5937_v42 = vpop.f32.mrb[245].mxu1 }
 0x6f9   : > { %v5938_v56 = vadd.f32 %v5937_v42, %v5936_v22 }
 0x6fb   : > { %v5939_v36 = vpop.f32.mrb[246].mxu1 }
 0x6fc   : > { %v5940_v43 = vpop.f32.mrb[247].mxu1 }
 0x6fd   : > { %v5941_v41 = vadd.f32 %v5940_v43, %v5939_v36 }
 0x6ff   : > { %v5942_v48 = vpop.f32.mrb[248].mxu1 }
 0x700   : > { %v5943_v8 = vpop.f32.mrb[249].mxu1 }
 0x701   : > { %v10754_v27 = vadd.f32 %v5943_v8, %v5942_v48 }
 0x703   : > { %v5945_v50 = vpop.f32.mrb[250].mxu1 }
 0x704   : > { %v5946_v31 = vpop.f32.mrb[251].mxu1 }
 0x705   : > { %v10756_v23 = vadd.f32 %v5946_v31, %v5945_v50 }
 0x707   : > { %v5948_v44 = vpop.f32.mrb[252].mxu1 }
 0x708   : > { %v5949_v25 = vpop.f32.mrb[253].mxu1 }
 0x709   : > { %v10758_v32 = vadd.f32 %v5949_v25, %v5948_v44 }
 0x70b   : > { %v5951_v60 = vpop.f32.mrb[254].mxu1 }
 0x70c   : > { %v5952_v58 = vpop.f32.mrb[255].mxu1 }
 0x70d   : > { %v10760_v5 = vadd.f32 %v5952_v58, %v5951_v60 }
 0x70f   : > { %v5954_v22 = vpop.f32.mrb[30].mxu1 }
 0x710   : > { %v5955_v42 = vpop.f32.mrb[31].mxu1 }
 0x711   : > { %v10762_v2 = vadd.f32 %v5955_v42, %v5954_v22 }
 0x713   : > { %v5957_v36 = vpop.f32.mrb[32].mxu1 }
 0x714   : > { %v5958_v43 = vpop.f32.mrb[33].mxu1 }
 0x715   : > { %v10764_v48 = vadd.f32 %v5958_v43, %v5957_v36 }
 0x717   : > { %v5960_v8 = vpop.f32.mrb[34].mxu1 }
 0x718   : > { %v5961_v18 = vpop.f32.mrb[35].mxu1 }
 0x719   : > { %v10766_v31 = vadd.f32 %v5961_v18, %v5960_v8 }
 0x71b   : > { %v5963_v50 = vpop.f32.mrb[36].mxu1 }
 0x71c   : > { %v5964_v11 = vpop.f32.mrb[37].mxu1 }
 0x71d   : > { %v10768_v25 = vadd.f32 %v5964_v11, %v5963_v50 }
 0x71f   : > { %v5966_v44 = vpop.f32.mrb[38].mxu1 }
 0x720   : > { %v5967_v55 = vpop.f32.mrb[39].mxu1 }
 0x721   : > { %v10770_v60 = vadd.f32 %v5967_v55, %v5966_v44 }
 0x723   : > { %v5969_v58 = vpop.f32.mrb[40].mxu1 }
 0x724   : > { %v5970_v21 = vpop.f32.mrb[41].mxu1 }
 0x725   : > { %v10772_v22 = vadd.f32 %v5970_v21, %v5969_v58 }
 0x727   : > { %v5972_v42 = vpop.f32.mrb[42].mxu1 }
 0x728   : > { %v5973_v45 = vpop.f32.mrb[43].mxu1 }
 0x729   : > { %v10774_v36 = vadd.f32 %v5973_v45, %v5972_v42 }
 0x72b   : > { %v4244_v43 = vpop.f32.mrb[180].mxu0  ;;  %v4539_v16 = vpop.f32.mrb[44].mxu1 }
 0x72c   : > { %v4540_v18 = vadd.f32 %v5932_v51, %v4539_v16  ;;  %v4246_v8 = vpop.f32.mrb[181].mxu0  ;;  %v6421_v6 = vpop.f32.mrb[45].mxu1 }
 0x72f   : > { %v4250_v53 = vpop.f32.mrb[182].mxu0  ;;  %v4544_v11 = vpop.f32.mrb[46].mxu1 }
 0x730   : > { %v7183_v50 = vpack.c.bf16 %v4250_v53, %v4244_v43  ;;  %v4545_v59 = vadd.f32 %v5935_v33, %v4544_v11  ;;  %v4252_v14 = vpop.f32.mrb[183].mxu0  ;;  %v6424_v55 = vpop.f32.mrb[47].mxu1 }
 0x731   : > { %v7181_v44 = vpack.c.bf16 %v4252_v14, %v4246_v8 }
 0x732   : > { %v10776_v35 = vpack.c.bf16 %v4545_v59, %v4540_v18 }
 0x733   : > { %v4256_v21 = vpop.f32.mrb[184].mxu0  ;;  %v4549_v58 = vpop.f32.mrb[48].mxu1  ;;  %7182 = vmatprep.subr.bf16.mxu0 %v7181_v44 }
 0x734   : > { %v4550_v12 = vadd.f32 %v5938_v56, %v4549_v58  ;;  %v4258_v45 = vpop.f32.mrb[185].mxu0  ;;  %v6427_v42 = vpop.f32.mrb[49].mxu1  ;;  %7184 = vmatpush1.bf16.msra.mxu0 %v7183_v50  ;;  %7238 = vmatpush3.bf16.msra.mxu1 %v10776_v35 }
 0x735   : > { %7231 = vmatprep.subr.bf16.mxu1 %v11183_v57 }
 0x737   : > { %v4262_v6 = vpop.f32.mrb[186].mxu0  ;;  %v4554_v16 = vpop.f32.mrb[50].mxu1 }
 0x738   : > { %v7187_v53 = vpack.c.bf16 %v4262_v6, %v4256_v21  ;;  %v4555_v51 = vadd.f32 %v5941_v41, %v4554_v16  ;;  %v4264_v33 = vpop.f32.mrb[187].mxu0  ;;  %v6430_v43 = vpop.f32.mrb[51].mxu1 }
 0x739   : > { %v7185_v14 = vpack.c.bf16 %v4264_v33, %v4258_v45 }
 0x73a   : > { %v10780_v59 = vpack.c.bf16 %v4555_v51, %v4550_v12 }
 0x73b   : > { %v4268_v18 = vpop.f32.mrb[188].mxu0  ;;  %v4559_v8 = vpop.f32.mrb[52].mxu1  ;;  %7186 = vmatprep.subr.bf16.mxu0 %v7185_v14 }
 0x73c   : > { %v4560_v56 = vadd.f32 %v10754_v27, %v4559_v8  ;;  %v4270_v11 = vpop.f32.mrb[189].mxu0  ;;  %v6433_v50 = vpop.f32.mrb[53].mxu1  ;;  %7188 = vmatpush1.bf16.msra.mxu0 %v7187_v53  ;;  %7239 = vmatpush3.bf16.msra.mxu1 %v10780_v59 }
 0x73d   : > { %7232 = vmatprep.subr.bf16.mxu1 %v11183_v57 }
 0x73f   : > { %v4274_v55 = vpop.f32.mrb[190].mxu0  ;;  %v4564_v44 = vpop.f32.mrb[54].mxu1 }
 0x740   : > { %v7191_v41 = vpack.c.bf16 %v4274_v55, %v4268_v18  ;;  %v4565_v21 = vadd.f32 %v10756_v23, %v4564_v44  ;;  %v4276_v58 = vpop.f32.mrb[191].mxu0  ;;  %v6436_v12 = vpop.f32.mrb[55].mxu1 }
 0x741   : > { %v7189_v45 = vpack.c.bf16 %v4276_v58, %v4270_v11 }
 0x742   : > { %v10786_v42 = vpack.c.bf16 %v4565_v21, %v4560_v56 }
 0x743   : > { %v4280_v6 = vpop.f32.mrb[192].mxu0  ;;  %v4569_v16 = vpop.f32.mrb[56].mxu1  ;;  %7190 = vmatprep.subr.bf16.mxu0 %v7189_v45 }
 0x744   : > { %v4570_v27 = vadd.f32 %v10758_v32, %v4569_v16  ;;  %v4282_v53 = vpop.f32.mrb[193].mxu0  ;;  %v6439_v51 = vpop.f32.mrb[57].mxu1  ;;  %7192 = vmatpush1.bf16.msra.mxu0 %v7191_v41  ;;  %7240 = vmatpush3.bf16.msra.mxu1 %v10786_v42 }
 0x745   : > { %7233 = vmatprep.subr.bf16.mxu1 %v11183_v57 }
 0x747   : > { %v4286_v33 = vpop.f32.mrb[194].mxu0  ;;  %v4574_v43 = vpop.f32.mrb[58].mxu1 }
 0x748   : > { %v7195_v23 = vpack.c.bf16 %v4286_v33, %v4280_v6  ;;  %v4575_v14 = vadd.f32 %v10760_v5, %v4574_v43  ;;  %v4288_v18 = vpop.f32.mrb[195].mxu0  ;;  %v6442_v8 = vpop.f32.mrb[59].mxu1 }
 0x749   : > { %v7193_v56 = vpack.c.bf16 %v4288_v18, %v4282_v53 }
 0x74a   : > { %v10792_v11 = vpack.c.bf16 %v4575_v14, %v4570_v27 }
 0x74b   : > { %v4292_v50 = vpop.f32.mrb[196].mxu0  ;;  %v4579_v55 = vpop.f32.mrb[0].mxu1  ;;  %7194 = vmatprep.subr.bf16.mxu0 %v7193_v56 }
 0x74c   : > { %v4580_v32 = vadd.f32 %v10762_v2, %v4579_v55  ;;  %v4294_v44 = vpop.f32.mrb[197].mxu0  ;;  %v6445_v41 = vpop.f32.mrb[1].mxu1  ;;  %7196 = vmatpush1.bf16.msra.mxu0 %v7195_v23  ;;  %7241 = vmatpush3.bf16.msra.mxu1 %v10792_v11 }
 0x74d   : > { %7234 = vmatprep.subr.bf16.mxu1 %v11183_v57 }
 0x74f   : > { %v4298_v21 = vpop.f32.mrb[198].mxu0  ;;  %v4584_v58 = vpop.f32.mrb[2].mxu1 }
 0x750   : > { %v7199_v5 = vpack.c.bf16 %v4298_v21, %v4292_v50  ;;  %v4585_v12 = vadd.f32 %v10764_v48, %v4584_v58  ;;  %v4300_v45 = vpop.f32.mrb[199].mxu0  ;;  %v6448_v6 = vpop.f32.mrb[3].mxu1 }
 0x751   : > { %v7197_v16 = vpack.c.bf16 %v4300_v45, %v4294_v44 }
 0x752   : > { %v10798_v27 = vpack.c.bf16 %v4585_v12, %v4580_v32 }
 0x753   : > { %v4304_v53 = vpop.f32.mrb[200].mxu0  ;;  %v4589_v51 = vpop.f32.mrb[4].mxu1  ;;  %7198 = vmatprep.subr.bf16.mxu0 %v7197_v16 }
 0x754   : > { %v4590_v2 = vadd.f32 %v10766_v31, %v4589_v51  ;;  %v4306_v33 = vpop.f32.mrb[201].mxu0  ;;  %v6451_v43 = vpop.f32.mrb[5].mxu1  ;;  %7200 = vmatpush1.bf16.msra.mxu0 %v7199_v5  ;;  %7242 = vmatpush3.bf16.msra.mxu1 %v10798_v27 }
 0x755   : > { %7235 = vmatprep.subr.bf16.mxu1 %v11183_v57 }
 0x757   : > { %v4310_v23 = vpop.f32.mrb[202].mxu0  ;;  %v4594_v14 = vpop.f32.mrb[6].mxu1 }
 0x758   : > { %v7203_v48 = vpack.c.bf16 %v4310_v23, %v4304_v53  ;;  %v4595_v18 = vadd.f32 %v10768_v25, %v4594_v14  ;;  %v4312_v8 = vpop.f32.mrb[203].mxu0  ;;  %v6454_v56 = vpop.f32.mrb[7].mxu1  ;;  %v10832_v23 = vld [vmem:[%s8894_s23 + $0x8] sm:$0xff]  ;;  %v7397_v14 = vld [vmem:[%s8894_s23 + $0x30] sm:$0xff] }
 0x759   : > { %v7201_v50 = vpack.c.bf16 %v4312_v8, %v4306_v33  ;;  %v7403_v8 = vld [vmem:[%s8894_s23 + $0x48] sm:$0xff]  ;;  %v7406_v56 = vld [vmem:[%s8894_s23 + $0x60] sm:$0xff] }
 0x75a   : > { %v10804_v55 = vpack.c.bf16 %v4595_v18, %v4590_v2  ;;  %v7401_v18 = vld [vmem:[%s8894_s23 + $0x40] sm:$0xff] }
 0x75b   : > { %v4316_v32 = vpop.f32.mrb[204].mxu0  ;;  %v4599_v44 = vpop.f32.mrb[8].mxu1  ;;  %7202 = vmatprep.subr.bf16.mxu0 %v7201_v50  ;;  %v7408_v50 = vld [vmem:[%s8894_s23 + $0x70] sm:$0xff] }
 0x75c   : > { %v4600_v31 = vadd.f32 %v10770_v60, %v4599_v44  ;;  %v4318_v41 = vpop.f32.mrb[205].mxu0  ;;  %v6457_v21 = vpop.f32.mrb[9].mxu1  ;;  %7204 = vmatpush1.bf16.msra.mxu0 %v7203_v48  ;;  %7243 = vmatpush3.bf16.msra.mxu1 %v10804_v55  ;;  %v7399_v48 = vld [vmem:[%s8894_s23 + $0x38] sm:$0xff] }
 0x75d   : > { %7236 = vmatprep.subr.bf16.mxu1 %v11183_v57 }
 0x75f   : > { %v4322_v58 = vpop.f32.mrb[206].mxu0  ;;  %v4604_v5 = vpop.f32.mrb[10].mxu1 }
 0x760   : > { %v7207_v25 = vpack.c.bf16 %v4322_v58, %v4316_v32  ;;  %v4605_v12 = vadd.f32 %v10772_v22, %v4604_v5  ;;  %v4324_v45 = vpop.f32.mrb[207].mxu0  ;;  %v6460_v6 = vpop.f32.mrb[11].mxu1  ;;  %v10819_v22 = vld [vmem:[%s8894_s23] sm:$0xff] }
 0x761   : > { %v7205_v16 = vpack.c.bf16 %v4324_v45, %v4318_v41 }
 0x762   : > { %v10810_v53 = vpack.c.bf16 %v4605_v12, %v4600_v31 }
 0x763   : > { %v4328_v60 = vpop.f32.mrb[208].mxu0  ;;  %v4609_v51 = vpop.f32.mrb[12].mxu1  ;;  %7206 = vmatprep.subr.bf16.mxu0 %v7205_v16 }
 0x764   : > { %v10813_v2 = vadd.f32 %v10774_v36, %v4609_v51  ;;  %v4330_v33 = vpop.f32.mrb[209].mxu0  ;;  %v6463_v43 = vpop.f32.mrb[13].mxu1  ;;  %7208 = vmatpush1.bf16.msra.mxu0 %v7207_v25  ;;  %7244 = vmatpush3.bf16.msra.mxu1 %v10810_v53  ;;  %v7395_v36 = vld [vmem:[%s8894_s23 + $0x28] sm:$0xff] }
 0x765   : > { %4659 = vmatprep.subr.mxu0 %v4330_v33  ;;  %7237 = vmatprep.subr.mxu1 %v11184_v62 }
 0x768   : > { %4660 = vmatpush1.msra.mxu0 %v4328_v60  ;;  %7245 = vmatpush3.msra.mxu1 %v10813_v2 }
 0x769   : > { %5574 = vmatmul.mubr.msk.f32.vlgmr.msra.gmra.mrb[210].mxu0 %vm2309_vm4, %v10819_v22  ;;  %7209 = vmatprep.subr.bf16.mxu0 %v11183_v57 }
 0x76a   : > { %6510 = vmatmul.mubr.msk.f32.vlgmr.msra.gmra.mrb[14].mxu1 %vm2309_vm4, %v7395_v36  ;;  %7211 = vmatpush3.bf16.msra.mxu0 %v10776_v35  ;;  %v10844_v35 = vld [vmem:[%s8894_s23 + $0x10] sm:$0xff] }
 0x76b   : > { %4701 = vmatprep.mubr.f32.mxu0 %v11184_v62  ;;  %6512 = vmatprep.mubr.msk.f32.mxu1 %vm7419_vm2, %v11184_v62 }
 0x76c   : > { %7212 = vmatprep.subr.bf16.mxu0 %v11183_v57 }
 0x76d   : > { %5575 = vmatmul.mubr.msk.f32.gmra.mrb[212].mxu0 %vm2309_vm4, %v10832_v23 }
 0x76e   : > { %6513 = vmatmul.mubr.msk.f32.gmra.mrb[16].mxu1 %vm2309_vm4, %v7397_v14  ;;  %7214 = vmatpush3.bf16.msra.mxu0 %v10780_v59  ;;  %v7400_v59 = vld [vmem:[%s8894_s23 + $0x18] sm:$0xff] }
 0x76f   : > { %4707 = vmatprep.mubr.f32.mxu0 %v11184_v62  ;;  %6515 = vmatprep.mubr.msk.f32.mxu1 %vm7419_vm2, %v11184_v62 }
 0x770   : > { %7215 = vmatprep.subr.bf16.mxu0 %v11183_v57 }
 0x771   : > { %5576 = vmatmul.mubr.msk.f32.gmra.mrb[214].mxu0 %vm2309_vm4, %v10844_v35 }
 0x772   : > { %6516 = vmatmul.mubr.msk.f32.gmra.mrb[18].mxu1 %vm2309_vm4, %v7399_v48  ;;  %7217 = vmatpush3.bf16.msra.mxu0 %v10786_v42  ;;  %v7402_v42 = vld [vmem:[%s8894_s23 + $0x20] sm:$0xff] }
 0x773   : > { %4713 = vmatprep.mubr.f32.mxu0 %v11184_v62  ;;  %6518 = vmatprep.mubr.msk.f32.mxu1 %vm7419_vm2, %v11184_v62 }
 0x774   : > { %7218 = vmatprep.subr.bf16.mxu0 %v11183_v57 }
 0x775   : > { %5577 = vmatmul.mubr.msk.f32.gmra.mrb[216].mxu0 %vm2309_vm4, %v7400_v59 }
 0x776   : > { %6519 = vmatmul.mubr.msk.f32.gmra.mrb[20].mxu1 %vm2309_vm4, %v7401_v18  ;;  %7220 = vmatpush3.bf16.msra.mxu0 %v10792_v11  ;;  %v7404_v11 = vld [vmem:[%s8894_s23 + $0x50] sm:$0xff] }
 0x777   : > { %4719 = vmatprep.mubr.f32.mxu0 %v11184_v62  ;;  %6521 = vmatprep.mubr.msk.f32.mxu1 %vm7419_vm2, %v11184_v62 }
 0x778   : > { %7221 = vmatprep.subr.bf16.mxu0 %v11183_v57 }
 0x779   : > { %5578 = vmatmul.mubr.msk.f32.gmra.mrb[218].mxu0 %vm2309_vm4, %v7402_v42 }
 0x77a   : > { %6522 = vmatmul.mubr.msk.f32.gmra.mrb[22].mxu1 %vm2309_vm4, %v7403_v8  ;;  %7223 = vmatpush3.bf16.msra.mxu0 %v10798_v27  ;;  %v7405_v27 = vld [vmem:[%s8894_s23 + $0x58] sm:$0xff] }
 0x77b   : > { %4725 = vmatprep.mubr.f32.mxu0 %v11184_v62  ;;  %6524 = vmatprep.mubr.msk.f32.mxu1 %vm7419_vm2, %v11184_v62 }
 0x77c   : > { %7224 = vmatprep.subr.bf16.mxu0 %v11183_v57 }
 0x77d   : > { %5579 = vmatmul.mubr.msk.f32.gmra.mrb[220].mxu0 %vm2309_vm4, %v7395_v36 }
 0x77e   : > { %6525 = vmatmul.mubr.msk.f32.gmra.mrb[24].mxu1 %vm2309_vm4, %v7404_v11  ;;  %7226 = vmatpush3.bf16.msra.mxu0 %v10804_v55  ;;  %v5573_v55 = vld [vmem:[%s11098_s9 + $0x6] sm:$0x7] }
 0x77f   : > { %4731 = vmatprep.mubr.f32.mxu0 %v11184_v62  ;;  %6527 = vmatprep.mubr.msk.f32.mxu1 %vm7419_vm2, %v11184_v62  ;;  %v10937_v32 = vrot.slane %v5573_v55, %v7966_v26  ;;  %v10940_v44 = vrot.slane %v5573_v55, %v11231_v3  ;;  %v10943_v31 = vrot.slane %v5573_v55, %v7972_v39 }
 0x780   : > { %7227 = vmatprep.subr.bf16.mxu0 %v11183_v57  ;;  %v7407_v57 = vld [vmem:[%s8894_s23 + $0x68] sm:$0xff] }
 0x781   : > { %5580 = vmatmul.mubr.msk.f32.gmra.mrb[222].mxu0 %vm2309_vm4, %v7397_v14 }
 0x782   : > { %6528 = vmatmul.mubr.msk.f32.gmra.mrb[26].mxu1 %vm2309_vm4, %v7405_v27  ;;  %7229 = vmatpush3.bf16.msra.mxu0 %v10810_v53 }
 0x783   : > { %4737 = vmatprep.mubr.f32.mxu0 %v11184_v62  ;;  %6530 = vmatprep.mubr.msk.f32.mxu1 %vm7419_vm2, %v11184_v62 }
 0x784   : > { %6492 = vmatprep.subr.mxu0 %v11184_v62 }
 0x785   : > { %5581 = vmatmul.mubr.msk.f32.gmra.mrb[224].mxu0 %vm2309_vm4, %v7399_v48 }
 0x786   : > { %6531 = vmatmul.mubr.msk.f32.gmra.mrb[28].mxu1 %vm2309_vm4, %v7406_v56  ;;  %6493 = vmatpush3.msra.mxu0 %v10813_v2 }
 0x787   : > { %4743 = vmatprep.mubr.f32.mxu0 %v11184_v62  ;;  %6533 = vmatprep.mubr.msk.f32.mxu1 %vm7419_vm2, %v11184_v62 }
 0x789   : > { %5582 = vmatmul.mubr.msk.f32.gmra.mrb[226].mxu0 %vm2309_vm4, %v7401_v18 }
 0x78a   : > { %6534 = vmatmul.mubr.msk.f32.gmra.mrb[60].mxu1 %vm2309_vm4, %v7407_v57  ;;  %4749 = vmatprep.mubr.f32.mxu0 %v11184_v62 }
 0x78b   : > { %6536 = vmatprep.mubr.msk.f32.mxu1 %vm7419_vm2, %v11184_v62 }
 0x78d   : > { %5583 = vmatmul.mubr.msk.f32.gmra.mrb[228].mxu0 %vm2309_vm4, %v7403_v8 }
 0x78e   : > { %6537 = vmatmul.mubr.msk.f32.gmra.mrb[62].mxu1 %vm2309_vm4, %v7408_v50  ;;  %4755 = vmatprep.mubr.f32.mxu0 %v11184_v62 }
 0x791   : > { %5584 = vmatmul.mubr.msk.f32.gmra.mrb[230].mxu0 %vm2309_vm4, %v7404_v11 }
 0x792   : > { %4761 = vmatprep.mubr.f32.mxu0 %v11184_v62 }
 0x795   : > { %5585 = vmatmul.mubr.msk.f32.gmra.mrb[232].mxu0 %vm2309_vm4, %v7405_v27 }
 0x796   : > { %4767 = vmatprep.mubr.f32.mxu0 %v11184_v62 }
 0x799   : > { %5586 = vmatmul.mubr.msk.f32.gmra.mrb[234].mxu0 %vm2309_vm4, %v7406_v56 }
 0x79a   : > { %4773 = vmatprep.mubr.f32.mxu0 %v11184_v62 }
 0x79d   : > { %5587 = vmatmul.mubr.msk.f32.gmra.mrb[236].mxu0 %vm2309_vm4, %v7407_v57 }
 0x79e   : > { %4779 = vmatprep.mubr.f32.mxu0 %v11184_v62 }
 0x7a1   : > { %5588 = vmatmul.mubr.msk.f32.gmra.mrb[238].mxu0 %vm2309_vm4, %v7408_v50 }
 0x7a2   : > { %6494 = vmatprep.mubr.msk.f32.mxu0 %vm7419_vm2, %v11184_v62 }
 0x7a5   : > { %6495 = vmatmul.mubr.msk.f32.vlgmr.msra.gmra.mrb[240].mxu0 %vm2309_vm4, %v10819_v22 }
 0x7a6   : > { %6497 = vmatprep.mubr.msk.f32.mxu0 %vm7419_vm2, %v11184_v62 }
 0x7a9   : > { %6498 = vmatmul.mubr.msk.f32.gmra.mrb[242].mxu0 %vm2309_vm4, %v10832_v23 }
 0x7aa   : > { %6500 = vmatprep.mubr.msk.f32.mxu0 %vm7419_vm2, %v11184_v62 }
 0x7ad   : > { %6501 = vmatmul.mubr.msk.f32.gmra.mrb[244].mxu0 %vm2309_vm4, %v10844_v35 }
 0x7ae   : > { %6503 = vmatprep.mubr.msk.f32.mxu0 %vm7419_vm2, %v11184_v62 }
 0x7b1   : > { %6504 = vmatmul.mubr.msk.f32.gmra.mrb[246].mxu0 %vm2309_vm4, %v7400_v59 }
 0x7b2   : > { %6506 = vmatprep.mubr.msk.f32.mxu0 %vm7419_vm2, %v11184_v62 }
 0x7b5   : > { %6507 = vmatmul.mubr.msk.f32.gmra.mrb[248].mxu0 %vm2309_vm4, %v7402_v42 }
 0x83c   : > { %v4697_v41 = vpop.f32.mrb[210].mxu0 }
 0x83d   : > { %v4698_v21 = vadd.f32 %v4697_v41, %v10937_v32  ;;  %v4877_v62 = vpop.f32.mrb[14].mxu1  ;;  %v4699_v58 = vpop.f32.mrb[211].mxu0 }
 0x83e   : > { %v4878_v5 = vadd.f32 %v4877_v62, %v10940_v44  ;;  %v4700_v25 = vadd.f32 %v4699_v58, %v10943_v31  ;;  %v6511_v12 = vpop.f32.mrb[15].mxu1 }
 0x83f   : > { %v4926_v26 = vadd.f32 %v4698_v21, %v10274_v10 }
 0x840   : > { %v4943_v39 = vadd.f32 %v4878_v5, %v10659_v61  ;;  %v4927_v3 = vadd.f32 %v4700_v25, %v10268_v1  ;;  %v4703_v45 = vpop.f32.mrb[212].mxu0 }
 0x841   : > { %v4971_v6 = vmax.f32 %v4926_v26, 0.0  ;;  %v4704_v16 = vadd.f32 %v4703_v45, %v10937_v32  ;;  %v4882_v53 = vpop.f32.mrb[16].mxu1  ;;  %v4705_v60 = vpop.f32.mrb[213].mxu0 }
 0x842   : > { %v4988_v51 = vmax.f32 %v4943_v39, 0.0  ;;  %v4972_v10 = vmax.f32 %v4927_v3, 0.0  ;;  %v4883_v2 = vadd.f32 %v4882_v53, %v10940_v44  ;;  %v4706_v33 = vadd.f32 %v4705_v60, %v10943_v31  ;;  %v6514_v43 = vpop.f32.mrb[17].mxu1 }
 0x843   : > { %5016 = vst [vmem:[%s10953_s29] sm:$0xff] %v4971_v6  ;;  %v4929_v22 = vadd.f32 %v4704_v16, %v10306_v20 }
 0x844   : > { %5033 = vst [vmem:[%s10953_s29 + $0x88] sm:$0xff] %v4988_v51  ;;  %5017 = vst [vmem:[%s10953_s29 + $0x8] sm:$0xff] %v4972_v10  ;;  %v4946_v1 = vadd.f32 %v4883_v2, %v10669_v63  ;;  %v4930_v61 = vadd.f32 %v4706_v33, %v10300_v49  ;;  %v4709_v36 = vpop.f32.mrb[214].mxu0 }
 0x845   : > { %v4974_v23 = vmax.f32 %v4929_v22, 0.0  ;;  %v4710_v14 = vadd.f32 %v4709_v36, %v10937_v32  ;;  %v4887_v35 = vpop.f32.mrb[18].mxu1  ;;  %v4711_v48 = vpop.f32.mrb[215].mxu0 }
 0x846   : > { %v4991_v59 = vmax.f32 %v4946_v1, 0.0  ;;  %v4975_v18 = vmax.f32 %v4930_v61, 0.0  ;;  %v4888_v42 = vadd.f32 %v4887_v35, %v10940_v44  ;;  %v4712_v20 = vadd.f32 %v4711_v48, %v10943_v31  ;;  %v6517_v8 = vpop.f32.mrb[19].mxu1 }
 0x847   : > { %5019 = vst [vmem:[%s10953_s29 + $0x18] sm:$0xff] %v4974_v23  ;;  %v4932_v11 = vadd.f32 %v4710_v14, %v10339_v52 }
 0x848   : > { %5036 = vst [vmem:[%s10953_s29 + $0xa0] sm:$0xff] %v4991_v59  ;;  %5020 = vst [vmem:[%s10953_s29 + $0x20] sm:$0xff] %v4975_v18  ;;  %v4949_v49 = vadd.f32 %v4888_v42, %v10679_v34  ;;  %v4933_v63 = vadd.f32 %v4712_v20, %v10333_v46  ;;  %v4715_v27 = vpop.f32.mrb[216].mxu0 }
 0x849   : > { %v4977_v56 = vmax.f32 %v4932_v11, 0.0  ;;  %v4716_v57 = vadd.f32 %v4715_v27, %v10937_v32  ;;  %v4892_v50 = vpop.f32.mrb[20].mxu1  ;;  %v4717_v55 = vpop.f32.mrb[217].mxu0 }
 0x84a   : > { %v4994_v41 = vmax.f32 %v4949_v49, 0.0  ;;  %v4978_v21 = vmax.f32 %v4933_v63, 0.0  ;;  %v4893_v62 = vadd.f32 %v4892_v50, %v10940_v44  ;;  %v4718_v52 = vadd.f32 %v4717_v55, %v10943_v31  ;;  %v6520_v58 = vpop.f32.mrb[21].mxu1 }
 0x84b   : > { %5022 = vst [vmem:[%s10953_s29 + $0x30] sm:$0xff] %v4977_v56  ;;  %v4935_v5 = vadd.f32 %v4716_v57, %v10372_v0 }
 0x84c   : > { %5039 = vst [vmem:[%s10953_s29 + $0xb8] sm:$0xff] %v4994_v41  ;;  %5023 = vst [vmem:[%s10953_s29 + $0x38] sm:$0xff] %v4978_v21  ;;  %v4952_v46 = vadd.f32 %v4893_v62, %v10689_v7  ;;  %v4936_v34 = vadd.f32 %v4718_v52, %v10366_v15  ;;  %v4721_v25 = vpop.f32.mrb[218].mxu0 }
 0x84d   : > { %v4980_v12 = vmax.f32 %v4935_v5, 0.0  ;;  %v4722_v26 = vadd.f32 %v4721_v25, %v10937_v32  ;;  %v4897_v39 = vpop.f32.mrb[22].mxu1  ;;  %v4723_v3 = vpop.f32.mrb[219].mxu0 }
 0x84e   : > { %v4997_v45 = vmax.f32 %v4952_v46, 0.0  ;;  %v4981_v6 = vmax.f32 %v4936_v34, 0.0  ;;  %v4898_v16 = vadd.f32 %v4897_v39, %v10940_v44  ;;  %v4724_v0 = vadd.f32 %v4723_v3, %v10943_v31  ;;  %v6523_v53 = vpop.f32.mrb[23].mxu1 }
 0x84f   : > { %5025 = vst [vmem:[%s10953_s29 + $0x48] sm:$0xff] %v4980_v12  ;;  %v4938_v60 = vadd.f32 %v4722_v26, %v10405_v4 }
 0x850   : > { %5042 = vst [vmem:[%s10953_s29 + $0xd0] sm:$0xff] %v4997_v45  ;;  %5026 = vst [vmem:[%s10953_s29 + $0x50] sm:$0xff] %v4981_v6  ;;  %v4955_v15 = vadd.f32 %v4898_v16, %v10699_v19  ;;  %v4939_v7 = vadd.f32 %v4724_v0, %v10399_v30  ;;  %v4727_v51 = vpop.f32.mrb[220].mxu0 }
 0x851   : > { %v4983_v10 = vmax.f32 %v4938_v60, 0.0  ;;  %v4728_v2 = vadd.f32 %v4727_v51, %v10937_v32  ;;  %v4902_v33 = vpop.f32.mrb[24].mxu1  ;;  %v4729_v43 = vpop.f32.mrb[221].mxu0 }
 0x852   : > { %v5000_v22 = vmax.f32 %v4955_v15, 0.0  ;;  %v4984_v1 = vmax.f32 %v4939_v7, 0.0  ;;  %v4903_v61 = vadd.f32 %v4902_v33, %v10940_v44  ;;  %v4730_v4 = vadd.f32 %v4729_v43, %v10943_v31  ;;  %v6526_v36 = vpop.f32.mrb[25].mxu1  ;;  %v11263_v33 = vld [vmem:[#allocation24_spill] sm:$0xff] }
 0x853   : > { %5028 = vst [vmem:[%s10953_s29 + $0x60] sm:$0xff] %v4983_v10  ;;  %v4941_v23 = vadd.f32 %v4728_v2, %v10438_v37  ;;  %v11264_v43 = vld [vmem:[#allocation12_spill] sm:$0xff] }
 0x854   : > { %5045 = vst [vmem:[%s10953_s29 + $0xe8] sm:$0xff] %v5000_v22  ;;  %5029 = vst [vmem:[%s10953_s29 + $0x68] sm:$0xff] %v4984_v1  ;;  %v4958_v30 = vadd.f32 %v4903_v61, %v10709_v13  ;;  %v4942_v19 = vadd.f32 %v4730_v4, %v10432_v54  ;;  %v4733_v14 = vpop.f32.mrb[222].mxu0  ;;  %v11265_v1 = vld [vmem:[#allocation23_spill] sm:$0xff] }
 0x855   : > { %v4986_v35 = vmax.f32 %v4941_v23, 0.0  ;;  %v4734_v48 = vadd.f32 %v4733_v14, %v10937_v32  ;;  %v4907_v59 = vpop.f32.mrb[26].mxu1  ;;  %v4735_v18 = vpop.f32.mrb[223].mxu0 }
 0x856   : > { %v5003_v42 = vmax.f32 %v4958_v30, 0.0  ;;  %v4987_v20 = vmax.f32 %v4942_v19, 0.0  ;;  %v4908_v8 = vadd.f32 %v4907_v59, %v10940_v44  ;;  %v4736_v37 = vadd.f32 %v4735_v18, %v10943_v31  ;;  %v6529_v11 = vpop.f32.mrb[27].mxu1  ;;  %v11267_v18 = vld [vmem:[#allocation25_spill] sm:$0xff] }
 0x857   : > { %5031 = vst [vmem:[%s10953_s29 + $0x78] sm:$0xff] %v4986_v35  ;;  %v4944_v49 = vadd.f32 %v4734_v48, %v10471_v9  ;;  %v11266_v48 = vld [vmem:[#allocation26_spill] sm:$0xff] }
 0x858   : > { %5048 = vst [vmem:[%s10953_s29 + $0x100] sm:$0xff] %v5003_v42  ;;  %5032 = vst [vmem:[%s10953_s29 + $0x80] sm:$0xff] %v4987_v20  ;;  %v4961_v54 = vadd.f32 %v4908_v8, %v10719_v24  ;;  %v4945_v13 = vadd.f32 %v4736_v37, %v10465_v17  ;;  %v4739_v63 = vpop.f32.mrb[224].mxu0 }
 0x859   : > { %v4989_v27 = vmax.f32 %v4944_v49, 0.0  ;;  %v4740_v56 = vadd.f32 %v4739_v63, %v10937_v32  ;;  %v4912_v57 = vpop.f32.mrb[28].mxu1  ;;  %v4741_v50 = vpop.f32.mrb[225].mxu0 }
 0x85a   : > { %v5006_v55 = vmax.f32 %v4961_v54, 0.0  ;;  %v4990_v41 = vmax.f32 %v4945_v13, 0.0  ;;  %v4913_v21 = vadd.f32 %v4912_v57, %v10940_v44  ;;  %v4742_v9 = vadd.f32 %v4741_v50, %v10943_v31  ;;  %v6532_v62 = vpop.f32.mrb[29].mxu1  ;;  %v11268_v13 = vld [vmem:[#allocation28_spill] sm:$0xff] }
 0x85b   : > { %5034 = vst [vmem:[%s10953_s29 + $0x90] sm:$0xff] %v4989_v27  ;;  %v4947_v52 = vadd.f32 %v4740_v56, %v10495_v40  ;;  %v11269_v27 = vld [vmem:[#allocation27_spill] sm:$0xff]  ;;  %v11270_v62 = vld [vmem:[#allocation2_spill] sm:$0xff] }
 0x85c   : > { %5051 = vst [vmem:[%s10953_s29 + $0x118] sm:$0xff] %v5006_v55  ;;  %5035 = vst [vmem:[%s10953_s29 + $0x98] sm:$0xff] %v4990_v41  ;;  %v4964_v17 = vadd.f32 %v4913_v21, %v10729_v29  ;;  %v4948_v24 = vadd.f32 %v4742_v9, %v10492_v28  ;;  %v4745_v58 = vpop.f32.mrb[226].mxu0  ;;  %v11262_v29 = vld [vmem:[#allocation22_spill] sm:$0xff] }
 0x85d   : > { %v4992_v5 = vmax.f32 %v4947_v52, 0.0  ;;  %v4746_v46 = vadd.f32 %v4745_v58, %v10937_v32  ;;  %v4917_v34 = vpop.f32.mrb[60].mxu1  ;;  %v4747_v25 = vpop.f32.mrb[227].mxu0 }
 0x85e   : > { %v5009_v12 = vmax.f32 %v4964_v17, 0.0  ;;  %v4993_v26 = vmax.f32 %v4948_v24, 0.0  ;;  %v4918_v39 = vadd.f32 %v4917_v34, %v10940_v44  ;;  %v4748_v40 = vadd.f32 %v4747_v25, %v10943_v31  ;;  %v6535_v3 = vpop.f32.mrb[61].mxu1  ;;  %v11271_v17 = vld [vmem:[#allocation29_spill] sm:$0xff] }
 0x85f   : > { %5037 = vst [vmem:[%s10953_s29 + $0xa8] sm:$0xff] %v4992_v5  ;;  %v4950_v45 = vadd.f32 %v4746_v46, %v10510_v38 }
 0x860   : > { %5054 = vst [vmem:[%s10953_s29 + $0x130] sm:$0xff] %v5009_v12  ;;  %5038 = vst [vmem:[%s10953_s29 + $0xb0] sm:$0xff] %v4993_v26  ;;  %v4967_v28 = vadd.f32 %v4918_v39, %v10739_v47  ;;  %v4951_v6 = vadd.f32 %v4748_v40, %v11262_v29  ;;  %v4751_v16 = vpop.f32.mrb[228].mxu0  ;;  %v11272_v26 = vld [vmem:[#allocation4_spill] sm:$0xff]  ;;  %v11273_v40 = vld [vmem:[#allocation3_spill] sm:$0xff] }
 0x861   : > { %v4995_v0 = vmax.f32 %v4950_v45, 0.0  ;;  %v4752_v53 = vadd.f32 %v4751_v16, %v10937_v32  ;;  %v4922_v60 = vpop.f32.mrb[62].mxu1  ;;  %v4753_v15 = vpop.f32.mrb[229].mxu0 }
 0x862   : > { %v5012_v7 = vmax.f32 %v4967_v28, 0.0  ;;  %v4996_v51 = vmax.f32 %v4951_v6, 0.0  ;;  %v4923_v10 = vadd.f32 %v4922_v60, %v10940_v44  ;;  %v4754_v38 = vadd.f32 %v4753_v15, %v10943_v31  ;;  %v6538_v2 = vpop.f32.mrb[63].mxu1  ;;  %v11275_v15 = vld [vmem:[#allocation5_spill] sm:$0xff] }
 0x863   : > { %5040 = vst [vmem:[%s10953_s29 + $0xc0] sm:$0xff] %v4995_v0  ;;  %v4953_v47 = vadd.f32 %v4752_v53, %v11263_v33  ;;  %v11274_v53 = vld [vmem:[#allocation6_spill] sm:$0xff] }
 0x864   : > { %5057 = vst [vmem:[%s10953_s29 + $0x148] sm:$0xff] %v5012_v7  ;;  %5041 = vst [vmem:[%s10953_s29 + $0xc8] sm:$0xff] %v4996_v51  ;;  %v4970_v22 = vadd.f32 %v4923_v10, %v11264_v43  ;;  %v4954_v61 = vadd.f32 %v4754_v38, %v11265_v1  ;;  %v4757_v4 = vpop.f32.mrb[230].mxu0 }
 0x865   : > { %v4998_v36 = vmax.f32 %v4953_v47, 0.0  ;;  %v4758_v23 = vadd.f32 %v4757_v4, %v10937_v32  ;;  %v4759_v30 = vpop.f32.mrb[231].mxu0 }
 0x866   : > { %v5015_v19 = vmax.f32 %v4970_v22, 0.0  ;;  %v4999_v14 = vmax.f32 %v4954_v61, 0.0  ;;  %v4760_v35 = vadd.f32 %v4759_v30, %v10943_v31  ;;  %v11277_v61 = vld [vmem:[#allocation8_spill] sm:$0xff] }
 0x867   : > { %5043 = vst [vmem:[%s10953_s29 + $0xd8] sm:$0xff] %v4998_v36  ;;  %v4956_v59 = vadd.f32 %v4758_v23, %v11266_v48 }
 0x868   : > { %5060 = vst [vmem:[%s10953_s29 + $0x160] sm:$0xff] %v5015_v19  ;;  %5044 = vst [vmem:[%s10953_s29 + $0xe0] sm:$0xff] %v4999_v14  ;;  %v4957_v42 = vadd.f32 %v4760_v35, %v11267_v18  ;;  %v4763_v20 = vpop.f32.mrb[232].mxu0  ;;  %v11278_v14 = vld [vmem:[#allocation9_spill] sm:$0xff] }
 0x869   : > { %v5001_v8 = vmax.f32 %v4956_v59, 0.0  ;;  %v4764_v37 = vadd.f32 %v4763_v20, %v10937_v32  ;;  %v4765_v11 = vpop.f32.mrb[233].mxu0  ;;  %v11279_v20 = vld [vmem:[#allocation10_spill] sm:$0xff] }
 0x86a   : > { %v5002_v49 = vmax.f32 %v4957_v42, 0.0  ;;  %v4766_v54 = vadd.f32 %v4765_v11, %v10943_v31 }
 0x86b   : > { %5046 = vst [vmem:[%s10953_s29 + $0xf0] sm:$0xff] %v5001_v8  ;;  %v4959_v63 = vadd.f32 %v4764_v37, %v11268_v13  ;;  %v11280_v13 = vld [vmem:[#allocation11_spill] sm:$0xff] }
 0x86c   : > { %5047 = vst [vmem:[%s10953_s29 + $0xf8] sm:$0xff] %v5002_v49  ;;  %v4960_v56 = vadd.f32 %v4766_v54, %v11269_v27  ;;  %v4769_v57 = vpop.f32.mrb[234].mxu0 }
 0x86d   : > { %v5004_v50 = vmax.f32 %v4959_v63, 0.0  ;;  %v4770_v55 = vadd.f32 %v4769_v57, %v10937_v32  ;;  %v4771_v41 = vpop.f32.mrb[235].mxu0 }
 0x86e   : > { %v5005_v21 = vmax.f32 %v4960_v56, 0.0  ;;  %v4772_v9 = vadd.f32 %v4771_v41, %v10943_v31 }
 0x86f   : > { %5049 = vst [vmem:[%s10953_s29 + $0x108] sm:$0xff] %v5004_v50  ;;  %v4962_v52 = vadd.f32 %v4770_v55, %v11270_v62 }
 0x870   : > { %5050 = vst [vmem:[%s10953_s29 + $0x110] sm:$0xff] %v5005_v21  ;;  %v4963_v24 = vadd.f32 %v4772_v9, %v11271_v17  ;;  %v4775_v58 = vpop.f32.mrb[236].mxu0 }
 0x871   : > { %v5007_v5 = vmax.f32 %v4962_v52, 0.0  ;;  %v4776_v46 = vadd.f32 %v4775_v58, %v10937_v32  ;;  %v4777_v34 = vpop.f32.mrb[237].mxu0 }
 0x872   : > { %v5008_v25 = vmax.f32 %v4963_v24, 0.0  ;;  %v4778_v12 = vadd.f32 %v4777_v34, %v10943_v31 }
 0x873   : > { %5052 = vst [vmem:[%s10953_s29 + $0x120] sm:$0xff] %v5007_v5  ;;  %v4965_v39 = vadd.f32 %v4776_v46, %v11272_v26 }
 0x874   : > { %5053 = vst [vmem:[%s10953_s29 + $0x128] sm:$0xff] %v5008_v25  ;;  %v4966_v3 = vadd.f32 %v4778_v12, %v11273_v40  ;;  %v4781_v45 = vpop.f32.mrb[238].mxu0 }
 0x875   : > { %v5010_v28 = vmax.f32 %v4965_v39, 0.0  ;;  %v4782_v29 = vadd.f32 %v4781_v45, %v10937_v32  ;;  %v4783_v6 = vpop.f32.mrb[239].mxu0  ;;  %v11276_v32 = vld [vmem:[#allocation7_spill] sm:$0xff] }
 0x876   : > { %v5011_v16 = vmax.f32 %v4966_v3, 0.0  ;;  %v4784_v0 = vadd.f32 %v4783_v6, %v10943_v31 }
 0x877   : > { %5055 = vst [vmem:[%s10953_s29 + $0x138] sm:$0xff] %v5010_v28  ;;  %v4968_v60 = vadd.f32 %v4782_v29, %v11274_v53 }
 0x878   : > { %5056 = vst [vmem:[%s10953_s29 + $0x140] sm:$0xff] %v5011_v16  ;;  %v4969_v7 = vadd.f32 %v4784_v0, %v11275_v15  ;;  %v4852_v51 = vpop.f32.mrb[240].mxu0 }
 0x879   : > { %v5013_v10 = vmax.f32 %v4968_v60, 0.0  ;;  %v4853_v38 = vadd.f32 %v4852_v51, %v10940_v44  ;;  %v6496_v2 = vpop.f32.mrb[241].mxu0 }
 0x87a   : > { %v5014_v33 = vmax.f32 %v4969_v7, 0.0 }
 0x87b   : > { %5058 = vst [vmem:[%s10953_s29 + $0x150] sm:$0xff] %v5013_v10  ;;  %v4928_v47 = vadd.f32 %v4853_v38, %v11276_v32 }
 0x87c   : > { %5059 = vst [vmem:[%s10953_s29 + $0x158] sm:$0xff] %v5014_v33  ;;  %v4857_v43 = vpop.f32.mrb[242].mxu0 }
 0x87d   : > { %v4973_v31 = vmax.f32 %v4928_v47, 0.0  ;;  %v4858_v22 = vadd.f32 %v4857_v43, %v10940_v44  ;;  %v6499_v1 = vpop.f32.mrb[243].mxu0 }
 0x87f   : > { %5018 = vst [vmem:[%s10953_s29 + $0x10] sm:$0xff] %v4973_v31  ;;  %v4931_v4 = vadd.f32 %v4858_v22, %v11277_v61 }
 0x880   : > { %v4862_v36 = vpop.f32.mrb[244].mxu0 }
 0x881   : > { %v4976_v23 = vmax.f32 %v4931_v4, 0.0  ;;  %v4863_v30 = vadd.f32 %v4862_v36, %v10940_v44  ;;  %v6502_v19 = vpop.f32.mrb[245].mxu0 }
 0x883   : > { %5021 = vst [vmem:[%s10953_s29 + $0x28] sm:$0xff] %v4976_v23  ;;  %v4934_v35 = vadd.f32 %v4863_v30, %v11278_v14 }
 0x884   : > { %v4867_v48 = vpop.f32.mrb[246].mxu0 }
 0x885   : > { %v4979_v59 = vmax.f32 %v4934_v35, 0.0  ;;  %v4868_v18 = vadd.f32 %v4867_v48, %v10940_v44  ;;  %v6505_v42 = vpop.f32.mrb[247].mxu0 }
 0x887   : > { %5024 = vst [vmem:[%s10953_s29 + $0x40] sm:$0xff] %v4979_v59  ;;  %v4937_v8 = vadd.f32 %v4868_v18, %v11279_v20 }
 0x888   : > { %v4872_v37 = vpop.f32.mrb[248].mxu0 }
 0x889   : > { %v4982_v11 = vmax.f32 %v4937_v8, 0.0  ;;  %v4873_v49 = vadd.f32 %v4872_v37, %v10940_v44  ;;  %v6508_v54 = vpop.f32.mrb[249].mxu0 }
 0x88b   : > { %5027 = vst [vmem:[%s10953_s29 + $0x58] sm:$0xff] %v4982_v11  ;;  %v4940_v63 = vadd.f32 %v4873_v49, %v11280_v13 }
 0x88d   : > { %v4985_v27 = vmax.f32 %v4940_v63, 0.0 }
 0x88f   : > { %5030 = vst [vmem:[%s10953_s29 + $0x70] sm:$0xff] %v4985_v27 }
 0x890 PF: > { %s20_s13 = sadd.s32 1, %s7415_s13  }
 0x891   : > { %p17_p4 = scmp.ge.s32.totalorder %s20_s13, 4  }
 0x893   :  { %19 = sbr.rel (!%p17_p4) target bundleno = 1 (0x1), region = 100 }

</bundles_post_ra>
